<compile_context>
chip_gen: v7x
topology: tpu7x:2x2x1
jax: 0.10.0
libtpu: 0.0.40
codegen_flags: <defaults>
</compile_context>

<pallas_src>
import functools

import jax
import jax.numpy as jnp
from jax.experimental import pallas as pl
from jax.experimental.pallas import tpu as pltpu


# -----------------------------------------------------------------------------
# Per-step cell math (pure jnp helpers used inside the kernels)
# -----------------------------------------------------------------------------
def _lstm_step(gx_t, h, c, whh, valid, H):
    """One masked LSTM cell update. gx_t already holds x@W_ih + b_ih + b_hh."""
    g = gx_t + jnp.dot(h.astype(whh.dtype), whh, preferred_element_type=jnp.float32)
    # PyTorch gate order i, f, g, o; activations per contiguous block.
    if_gates = jax.nn.sigmoid(g[:, :2 * H])
    g_gate = jnp.tanh(g[:, 2 * H:3 * H])
    o_gate = jax.nn.sigmoid(g[:, 3 * H:4 * H])
    i_gate = if_gates[:, :H]
    f_gate = if_gates[:, H:2 * H]
    c_new = f_gate * c + i_gate * g_gate
    h_new = o_gate * jnp.tanh(c_new)
    c = jnp.where(valid, c_new, c)        # state frozen outside the valid prefix
    h = jnp.where(valid, h_new, h)
    out = jnp.where(valid, h_new, 0.0)    # pad_packed semantics: padded rows -> 0
    return h, c, out


def _gru_step(gx_t, h, whh, bhh, valid, H):
    """One masked GRU cell update. gx_t already holds x@W_ih + b_ih."""
    gh = jnp.dot(h.astype(whh.dtype), whh, preferred_element_type=jnp.float32) + bhh
    rz = jax.nn.sigmoid(gx_t[:, :2 * H] + gh[:, :2 * H])   # sigmoid only on r, z
    r = rz[:, :H]
    z = rz[:, H:2 * H]
    n = jnp.tanh(gx_t[:, 2 * H:3 * H] + r * gh[:, 2 * H:3 * H])
    h_new = (1.0 - z) * n + z * h
    h = jnp.where(valid, h_new, h)
    out = jnp.where(valid, h_new, 0.0)
    return h, out


# -----------------------------------------------------------------------------
# Fused bidirectional layer kernel (factory closes over static config)
# -----------------------------------------------------------------------------
def make_rnn_layer_kernel(use_gru, T, B, H, with_head):
    GH = (3 if use_gru else 4) * H

    def kernel(*refs):
        if use_gru:
            x_ref, len_ref, wih_ref, whh_ref, bih_ref, bhh_ref = refs[:6]
            rest = refs[6:]
            bias = bih_ref[...]                                   # (1, 2*GH)
        else:
            x_ref, len_ref, wih_ref, whh_ref, b_ref = refs[:5]
            rest = refs[5:]
            bias = b_ref[...]                                     # (1, 2*GH)
        if with_head:
            w1_ref, b1_ref, w2_ref, b2_ref, out_ref, gx_ref = rest
        else:
            seq_ref, gx_ref = rest

        lens = len_ref[...]                                       # (B, 1) int32

        # Hoisted input projection for BOTH directions: a single MXU GEMM over
        # all T*B rows (bias folded in), split once into per-direction slabs
        # with two full-block scratch stores.
        gx = jnp.dot(x_ref[...], wih_ref[...],
                     preferred_element_type=jnp.float32) + bias    # (T*B, 2*GH)
        gx_ref[0] = gx[:, :GH]
        gx_ref[1] = gx[:, GH:]

        whh_f = whh_ref[0]                                         # (H, GH) bf16
        whh_b = whh_ref[1]
        if use_gru:
            bhh_f = bhh_ref[0]                                     # (1, GH) f32
            bhh_b = bhh_ref[1]

        zeros = jnp.zeros((B, H), jnp.float32)
        h_f = zeros
        h_b = zeros
        if not use_gru:
            c_f = zeros
            c_b = zeros

        # Fused fwd+bwd recurrence, statically unrolled: the time index is a
        # Python constant, so every gx read / seq write uses a static,
        # sublane-aligned VMEM offset (B is padded to a multiple of 8).
        # TODO(synk): for long sequences, chunk T (grid axis / emit_pipeline with
        # h,c carried in persistent scratch) instead of full unroll + resident gx.
        for s in range(T):
            tf = s
            tb = T - 1 - s
            valid_f = lens > tf                                    # (B, 1) bool
            valid_b = lens > tb

            gx_f = gx_ref[0, tf * B:(tf + 1) * B, :]               # (B, GH) f32
            gx_b = gx_ref[1, tb * B:(tb + 1) * B, :]

            if use_gru:
                h_f, out_f = _gru_step(gx_f, h_f, whh_f, bhh_f, valid_f, H)
                h_b, out_b = _gru_step(gx_b, h_b, whh_b, bhh_b, valid_b, H)
            else:
                h_f, c_f, out_f = _lstm_step(gx_f, h_f, c_f, whh_f, valid_f, H)
                h_b, c_b, out_b = _lstm_step(gx_b, h_b, c_b, whh_b, valid_b, H)

            if not with_head:
                # Single lane-concatenated (T, B, 2H) bf16 layer output:
                # fwd features in lanes [0:H], bwd in [H:2H].
                seq_ref[tf, :, 0:H] = out_f.astype(seq_ref.dtype)
                seq_ref[tb, :, H:2 * H] = out_b.astype(seq_ref.dtype)

        if with_head:
            # feat = concat(h_f, h_b); fused into the first MLP matmul by
            # splitting W1 into row blocks (no in-kernel concatenate needed).
            # self.drop is identity in eval mode.
            h1 = (jnp.dot(h_f, w1_ref[0:H, :], preferred_element_type=jnp.float32)
                  + jnp.dot(h_b, w1_ref[H:2 * H, :], preferred_element_type=jnp.float32)
                  + b1_ref[...])
            h1 = jnp.maximum(h1, 0.0)
            out_ref[...] = (jnp.dot(h1, w2_ref[...], preferred_element_type=jnp.float32)
                            + b2_ref[...])

    return kernel


# -----------------------------------------------------------------------------
# pallas_call wrapper (one call per layer, no grid: whole problem in VMEM)
# -----------------------------------------------------------------------------
def _rnn_layer_call(x_2d, lengths, lp, use_gru, H, T, B, head=None):
    TB, _ = x_2d.shape
    GH = (3 if use_gru else 4) * H
    with_head = head is not None
    kernel = make_rnn_layer_kernel(use_gru, T, B, H, with_head)

    if use_gru:
        args = [x_2d, lengths, lp["wih"], lp["whh"], lp["bih"], lp["bhh"]]
    else:
        args = [x_2d, lengths, lp["wih"], lp["whh"], lp["b"]]
    if with_head:
        w1, b1, w2, b2 = head
        args += [w1, b1, w2, b2]
        out_shape = jax.ShapeDtypeStruct((B, w2.shape[1]), jnp.float32)
    else:
        out_shape = jax.ShapeDtypeStruct((T, B, 2 * H), jnp.bfloat16)

    return pl.pallas_call(
        kernel,
        out_shape=out_shape,
        scratch_shapes=[pltpu.VMEM((2, TB, GH), jnp.float32)],   # hoisted x-projection
        compiler_params=pltpu.CompilerParams(vmem_limit_bytes=32 * 1024 * 1024),
    )(*args)


# -----------------------------------------------------------------------------
# Model forward (JAX glue: embedding gather + batch padding + layer stacking)
# -----------------------------------------------------------------------------
def model_forward(text, text_len, params, use_gru, hidden):
    B, T = text.shape
    H = hidden
    B_pad = ((B + 7) // 8) * 8            # sublane-align the batch

    lengths = jnp.zeros((B_pad, 1), jnp.int32)
    lengths = lengths.at[:B, 0].set(text_len.astype(jnp.int32))   # pad rows: len 0

    # Embedding lookup in time-major order; flatten to (T*B_pad, E) so the
    # kernel runs the input projection as one GEMM. bf16 activations, f32 acc.
    x = jnp.take(params["emb"], text.T, axis=0)                   # (T, B, E)
    if B_pad != B:
        x = jnp.pad(x, ((0, 0), (0, B_pad - B), (0, 0)))
    x = x.astype(jnp.bfloat16).reshape(T * B_pad, -1)

    layers = params["gru"] if use_gru else params["lstm"]
    logits = None
    for li, lp in enumerate(layers):
        if li == len(layers) - 1:
            # Last layer: recurrence + feature concat + MLP head fused in-kernel.
            logits = _rnn_layer_call(x, lengths, lp, use_gru, H, T, B_pad,
                                     head=params["mlp"])
        else:
            seq = _rnn_layer_call(x, lengths, lp, use_gru, H, T, B_pad)
            # Inter-layer GRU dropout is identity in eval mode; the layer output
            # is already lane-concatenated fwd|bwd -> flat reshape only.
            x = seq.reshape(T * B_pad, 2 * H)
    return logits[:B]


# -----------------------------------------------------------------------------
# Deterministic parameter init (shapes follow the PyTorch module __init__).
# W_ih is stored transposed and concatenated fwd|bwd along gate columns
# ((F, 2*G*H), bf16); W_hh is stacked per direction ((2, H, G*H), bf16);
# biases stay f32.
# -----------------------------------------------------------------------------
def init_params(key, vocab_size, emb_dim, hidden, mlp_hidden, num_classes):
    keys = iter(jax.random.split(key, 64))

    def u(shape, s):
        return jax.random.uniform(next(keys), shape, jnp.float32, -s, s)

    scale = 1.0 / float(hidden) ** 0.5

    def rnn_params(gate_mult, separate_bias):
        layers = []
        for layer in range(2):
            in_dim = emb_dim if layer == 0 else 2 * hidden
            GH = gate_mult * hidden
            wih = jnp.concatenate([u((in_dim, GH), scale),
                                   u((in_dim, GH), scale)], axis=1)   # (F, 2*GH)
            whh = jnp.stack([u((hidden, GH), scale),
                             u((hidden, GH), scale)])                 # (2, H, GH)
            bih = jnp.concatenate([u((1, GH), scale),
                                   u((1, GH), scale)], axis=1)        # (1, 2*GH)
            bhh = jnp.stack([u((1, GH), scale), u((1, GH), scale)])   # (2, 1, GH)
            p = {"wih": wih.astype(jnp.bfloat16),
                 "whh": whh.astype(jnp.bfloat16)}
            if separate_bias:
                p["bih"] = bih
                p["bhh"] = bhh
            else:
                # LSTM: b_ih + b_hh can be folded into the hoisted projection.
                p["b"] = bih + jnp.concatenate([bhh[0], bhh[1]], axis=1)
            layers.append(p)
        return layers

    return {
        "emb": jax.random.normal(next(keys), (vocab_size, emb_dim), jnp.float32),
        "lstm": rnn_params(4, separate_bias=False),
        "gru": rnn_params(3, separate_bias=True),
        "mlp": (
            u((2 * hidden, mlp_hidden), 1.0 / (2 * hidden) ** 0.5),
            u((1, mlp_hidden), 1.0 / (2 * hidden) ** 0.5),
            u((mlp_hidden, num_classes), 1.0 / mlp_hidden ** 0.5),
            u((1, num_classes), 1.0 / mlp_hidden ** 0.5),
        ),
    }


# -----------------------------------------------------------------------------
if __name__ == "__main__":
    VOCAB, EMB, HIDDEN, T, B = 100, 32, 32, 8, 4
    MLP_HIDDEN, NUM_CLASSES = 32, 4

    key = jax.random.PRNGKey(0)
    k_p, k_txt = jax.random.split(key)
    params = init_params(k_p, VOCAB, EMB, HIDDEN, MLP_HIDDEN, NUM_CLASSES)

    text = jax.random.randint(k_txt, (B, T), 0, VOCAB, dtype=jnp.int32)
    text_len = jnp.array([8, 5, 3, 6], dtype=jnp.int32)   # lengths >= 1 assumed

    # The module's forward as written (`if self.gru == 0:` is always False)
    # executes the GRU branch; run it, plus the LSTM branch for completeness.
    gru_fwd = jax.jit(functools.partial(model_forward, use_gru=True, hidden=HIDDEN))
    lstm_fwd = jax.jit(functools.partial(model_forward, use_gru=False, hidden=HIDDEN))

    out_gru = gru_fwd(text, text_len, params)
    out_lstm = lstm_fwd(text, text_len, params)
    jax.block_until_ready(out_gru)
    jax.block_until_ready(out_lstm)

    assert out_gru.shape == (B, NUM_CLASSES) and out_lstm.shape == (B, NUM_CLASSES)
    assert bool(jnp.all(jnp.isfinite(out_gru))) and bool(jnp.all(jnp.isfinite(out_lstm)))
    print("KERNEL_OK")
</pallas_src>

<mosaic_0001>
module attributes {stable_mosaic.version = 11 : i64} {
  func.func @kernel(%arg0: memref<64x32xbf16, #tpu.memory_space<vmem>>, %arg1: memref<8x1xi32, #tpu.memory_space<vmem>>, %arg2: memref<32x192xbf16, #tpu.memory_space<vmem>>, %arg3: memref<2x32x96xbf16, #tpu.memory_space<vmem>>, %arg4: memref<1x192xf32, #tpu.memory_space<vmem>>, %arg5: memref<2x1x96xf32, #tpu.memory_space<vmem>>, %arg6: memref<8x8x64xbf16, #tpu.memory_space<vmem>>, %arg7: memref<2x64x96xf32, #tpu.memory_space<vmem>>) attributes {dimension_semantics = [], scalar_prefetch = 0 : i64, scratch_operands = 1 : i64, tpu.core_type = #tpu.core_type<tc>} {
    %c0 = arith.constant 0 : index
    %c0_0 = arith.constant 0 : index
    %0 = vector.load %arg4[%c0, %c0_0] : memref<1x192xf32, #tpu.memory_space<vmem>>, vector<1x192xf32>
    %c0_1 = arith.constant 0 : index
    %c0_2 = arith.constant 0 : index
    %1 = vector.load %arg1[%c0_1, %c0_2] : memref<8x1xi32, #tpu.memory_space<vmem>>, vector<8x1xi32>
    %c0_3 = arith.constant 0 : index
    %c0_4 = arith.constant 0 : index
    %2 = vector.load %arg0[%c0_3, %c0_4] : memref<64x32xbf16, #tpu.memory_space<vmem>>, vector<64x32xbf16>
    %c0_5 = arith.constant 0 : index
    %c0_6 = arith.constant 0 : index
    %3 = vector.load %arg2[%c0_5, %c0_6] : memref<32x192xbf16, #tpu.memory_space<vmem>>, vector<32x192xbf16>
    %cst = arith.constant dense<0.000000e+00> : vector<64x192xf32>
    %4 = tpu.matmul %2, %3, %cst {dimension_numbers = #tpu.dot_dimension_numbers<[1], [0], [0], [1], [0, 0, 1, 1], [], []>} : vector<64x32xbf16>, vector<32x192xbf16>, vector<64x192xf32> -> vector<64x192xf32>
    %5 = vector.broadcast %0 : vector<1x192xf32> to vector<64x192xf32>
    %6 = arith.addf %4, %5 : vector<64x192xf32>
    %7 = vector.extract_strided_slice %6 {offsets = [0, 0], sizes = [64, 96], strides = [1, 1]} : vector<64x192xf32> to vector<64x96xf32>
    %c0_7 = arith.constant 0 : index
    %c0_8 = arith.constant 0 : index
    %c0_9 = arith.constant 0 : index
    %8 = vector.load %arg7[%c0_7, %c0_8, %c0_9] : memref<2x64x96xf32, #tpu.memory_space<vmem>>, vector<1x64x96xf32>
    %9 = vector.shape_cast %8 : vector<1x64x96xf32> to vector<64x96xf32>
    %10 = vector.shape_cast %7 : vector<64x96xf32> to vector<1x64x96xf32>
    tpu.vector_store %arg7[%c0_7, %c0_8, %c0_9], %10 {strides = array<i32>} : memref<2x64x96xf32, #tpu.memory_space<vmem>>, vector<1x64x96xf32>,
    %11 = vector.extract_strided_slice %6 {offsets = [0, 96], sizes = [64, 96], strides = [1, 1]} : vector<64x192xf32> to vector<64x96xf32>
    %c1 = arith.constant 1 : index
    %c0_10 = arith.constant 0 : index
    %c0_11 = arith.constant 0 : index
    %12 = vector.load %arg7[%c1, %c0_10, %c0_11] : memref<2x64x96xf32, #tpu.memory_space<vmem>>, vector<1x64x96xf32>
    %13 = vector.shape_cast %12 : vector<1x64x96xf32> to vector<64x96xf32>
    %14 = vector.shape_cast %11 : vector<64x96xf32> to vector<1x64x96xf32>
    tpu.vector_store %arg7[%c1, %c0_10, %c0_11], %14 {strides = array<i32>} : memref<2x64x96xf32, #tpu.memory_space<vmem>>, vector<1x64x96xf32>,
    %c0_12 = arith.constant 0 : index
    %c0_13 = arith.constant 0 : index
    %c0_14 = arith.constant 0 : index
    %15 = vector.load %arg3[%c0_12, %c0_13, %c0_14] : memref<2x32x96xbf16, #tpu.memory_space<vmem>>, vector<1x32x96xbf16>
    %16 = vector.shape_cast %15 : vector<1x32x96xbf16> to vector<32x96xbf16>
    %c1_15 = arith.constant 1 : index
    %c0_16 = arith.constant 0 : index
    %c0_17 = arith.constant 0 : index
    %17 = vector.load %arg3[%c1_15, %c0_16, %c0_17] : memref<2x32x96xbf16, #tpu.memory_space<vmem>>, vector<1x32x96xbf16>
    %18 = vector.shape_cast %17 : vector<1x32x96xbf16> to vector<32x96xbf16>
    %c0_18 = arith.constant 0 : index
    %c0_19 = arith.constant 0 : index
    %c0_20 = arith.constant 0 : index
    %19 = vector.load %arg5[%c0_18, %c0_19, %c0_20] : memref<2x1x96xf32, #tpu.memory_space<vmem>>, vector<1x1x96xf32>
    %20 = vector.shape_cast %19 : vector<1x1x96xf32> to vector<1x96xf32>
    %c1_21 = arith.constant 1 : index
    %c0_22 = arith.constant 0 : index
    %c0_23 = arith.constant 0 : index
    %21 = vector.load %arg5[%c1_21, %c0_22, %c0_23] : memref<2x1x96xf32, #tpu.memory_space<vmem>>, vector<1x1x96xf32>
    %22 = vector.shape_cast %21 : vector<1x1x96xf32> to vector<1x96xf32>
    %cst_24 = arith.constant 0.000000e+00 : f32
    %23 = vector.broadcast %cst_24 : f32 to vector<8x32xf32>
    %c0_i32 = arith.constant 0 : i32
    %24 = vector.broadcast %c0_i32 : i32 to vector<8x1xi32>
    %25 = arith.cmpi sgt, %1, %24 : vector<8x1xi32>
    %c7_i32 = arith.constant 7 : i32
    %26 = vector.broadcast %c7_i32 : i32 to vector<8x1xi32>
    %27 = arith.cmpi sgt, %1, %26 : vector<8x1xi32>
    %c0_25 = arith.constant 0 : index
    %c0_26 = arith.constant 0 : index
    %c0_27 = arith.constant 0 : index
    %28 = vector.load %arg7[%c0_25, %c0_26, %c0_27] : memref<2x64x96xf32, #tpu.memory_space<vmem>>, vector<1x8x96xf32>
    %29 = vector.shape_cast %28 : vector<1x8x96xf32> to vector<8x96xf32>
    %c1_28 = arith.constant 1 : index
    %c56 = arith.constant 56 : index
    %c0_29 = arith.constant 0 : index
    %30 = vector.load %arg7[%c1_28, %c56, %c0_29] : memref<2x64x96xf32, #tpu.memory_space<vmem>>, vector<1x8x96xf32>
    %31 = vector.shape_cast %30 : vector<1x8x96xf32> to vector<8x96xf32>
    %32 = arith.truncf %23 : vector<8x32xf32> to vector<8x32xbf16>
    %cst_30 = arith.constant dense<0.000000e+00> : vector<8x96xf32>
    %33 = tpu.matmul %32, %16, %cst_30 {dimension_numbers = #tpu.dot_dimension_numbers<[1], [0], [0], [1], [0, 0, 1, 1], [], []>} : vector<8x32xbf16>, vector<32x96xbf16>, vector<8x96xf32> -> vector<8x96xf32>
    %34 = vector.broadcast %20 : vector<1x96xf32> to vector<8x96xf32>
    %35 = arith.addf %33, %34 : vector<8x96xf32>
    %36 = vector.extract_strided_slice %29 {offsets = [0, 0], sizes = [8, 64], strides = [1, 1]} : vector<8x96xf32> to vector<8x64xf32>
    %37 = vector.extract_strided_slice %35 {offsets = [0, 0], sizes = [8, 64], strides = [1, 1]} : vector<8x96xf32> to vector<8x64xf32>
    %38 = arith.addf %36, %37 : vector<8x64xf32>
    %39 = arith.negf %38 : vector<8x64xf32>
    %40 = math.exp %39 : vector<8x64xf32>
    %cst_31 = arith.constant 1.000000e+00 : f32
    %41 = vector.broadcast %cst_31 : f32 to vector<8x64xf32>
    %42 = arith.addf %41, %40 : vector<8x64xf32>
    %43 = arith.divf %41, %42 : vector<8x64xf32>
    %44 = vector.extract_strided_slice %43 {offsets = [0, 0], sizes = [8, 32], strides = [1, 1]} : vector<8x64xf32> to vector<8x32xf32>
    %45 = vector.extract_strided_slice %43 {offsets = [0, 32], sizes = [8, 32], strides = [1, 1]} : vector<8x64xf32> to vector<8x32xf32>
    %46 = vector.extract_strided_slice %29 {offsets = [0, 64], sizes = [8, 32], strides = [1, 1]} : vector<8x96xf32> to vector<8x32xf32>
    %47 = vector.extract_strided_slice %35 {offsets = [0, 64], sizes = [8, 32], strides = [1, 1]} : vector<8x96xf32> to vector<8x32xf32>
    %48 = arith.mulf %44, %47 : vector<8x32xf32>
    %49 = arith.addf %46, %48 : vector<8x32xf32>
    %50 = math.tanh %49 : vector<8x32xf32>
    %cst_32 = arith.constant 1.000000e+00 : f32
    %51 = vector.broadcast %cst_32 : f32 to vector<8x32xf32>
    %52 = arith.subf %51, %45 : vector<8x32xf32>
    %53 = arith.mulf %52, %50 : vector<8x32xf32>
    %54 = arith.mulf %45, %23 : vector<8x32xf32>
    %55 = arith.addf %53, %54 : vector<8x32xf32>
    %56 = vector.shape_cast %25 : vector<8x1xi1> to vector<8x1xi1>
    %57 = vector.broadcast %56 : vector<8x1xi1> to vector<8x32xi1>
    %58 = arith.select %57, %55, %23 : vector<8x32xi1>, vector<8x32xf32>
    %cst_33 = arith.constant 0.000000e+00 : f32
    %59 = vector.shape_cast %25 : vector<8x1xi1> to vector<8x1xi1>
    %60 = vector.broadcast %59 : vector<8x1xi1> to vector<8x32xi1>
    %61 = vector.broadcast %cst_33 : f32 to vector<8x32xf32>
    %62 = arith.select %60, %55, %61 : vector<8x32xi1>, vector<8x32xf32>
    %63 = arith.truncf %23 : vector<8x32xf32> to vector<8x32xbf16>
    %cst_34 = arith.constant dense<0.000000e+00> : vector<8x96xf32>
    %64 = tpu.matmul %63, %18, %cst_34 {dimension_numbers = #tpu.dot_dimension_numbers<[1], [0], [0], [1], [0, 0, 1, 1], [], []>} : vector<8x32xbf16>, vector<32x96xbf16>, vector<8x96xf32> -> vector<8x96xf32>
    %65 = vector.broadcast %22 : vector<1x96xf32> to vector<8x96xf32>
    %66 = arith.addf %64, %65 : vector<8x96xf32>
    %67 = vector.extract_strided_slice %31 {offsets = [0, 0], sizes = [8, 64], strides = [1, 1]} : vector<8x96xf32> to vector<8x64xf32>
    %68 = vector.extract_strided_slice %66 {offsets = [0, 0], sizes = [8, 64], strides = [1, 1]} : vector<8x96xf32> to vector<8x64xf32>
    %69 = arith.addf %67, %68 : vector<8x64xf32>
    %70 = arith.negf %69 : vector<8x64xf32>
    %71 = math.exp %70 : vector<8x64xf32>
    %cst_35 = arith.constant 1.000000e+00 : f32
    %72 = vector.broadcast %cst_35 : f32 to vector<8x64xf32>
    %73 = arith.addf %72, %71 : vector<8x64xf32>
    %74 = arith.divf %72, %73 : vector<8x64xf32>
    %75 = vector.extract_strided_slice %74 {offsets = [0, 0], sizes = [8, 32], strides = [1, 1]} : vector<8x64xf32> to vector<8x32xf32>
    %76 = vector.extract_strided_slice %74 {offsets = [0, 32], sizes = [8, 32], strides = [1, 1]} : vector<8x64xf32> to vector<8x32xf32>
    %77 = vector.extract_strided_slice %31 {offsets = [0, 64], sizes = [8, 32], strides = [1, 1]} : vector<8x96xf32> to vector<8x32xf32>
    %78 = vector.extract_strided_slice %66 {offsets = [0, 64], sizes = [8, 32], strides = [1, 1]} : vector<8x96xf32> to vector<8x32xf32>
    %79 = arith.mulf %75, %78 : vector<8x32xf32>
    %80 = arith.addf %77, %79 : vector<8x32xf32>
    %81 = math.tanh %80 : vector<8x32xf32>
    %cst_36 = arith.constant 1.000000e+00 : f32
    %82 = vector.broadcast %cst_36 : f32 to vector<8x32xf32>
    %83 = arith.subf %82, %76 : vector<8x32xf32>
    %84 = arith.mulf %83, %81 : vector<8x32xf32>
    %85 = arith.mulf %76, %23 : vector<8x32xf32>
    %86 = arith.addf %84, %85 : vector<8x32xf32>
    %87 = vector.shape_cast %27 : vector<8x1xi1> to vector<8x1xi1>
    %88 = vector.broadcast %87 : vector<8x1xi1> to vector<8x32xi1>
    %89 = arith.select %88, %86, %23 : vector<8x32xi1>, vector<8x32xf32>
    %cst_37 = arith.constant 0.000000e+00 : f32
    %90 = vector.shape_cast %27 : vector<8x1xi1> to vector<8x1xi1>
    %91 = vector.broadcast %90 : vector<8x1xi1> to vector<8x32xi1>
    %92 = vector.broadcast %cst_37 : f32 to vector<8x32xf32>
    %93 = arith.select %91, %86, %92 : vector<8x32xi1>, vector<8x32xf32>
    %94 = arith.truncf %62 : vector<8x32xf32> to vector<8x32xbf16>
    %c0_38 = arith.constant 0 : index
    %c0_39 = arith.constant 0 : index
    %c0_40 = arith.constant 0 : index
    %95 = vector.load %arg6[%c0_38, %c0_39, %c0_40] : memref<8x8x64xbf16, #tpu.memory_space<vmem>>, vector<1x8x32xbf16>
    %96 = vector.shape_cast %95 : vector<1x8x32xbf16> to vector<8x32xbf16>
    %97 = vector.shape_cast %94 : vector<8x32xbf16> to vector<1x8x32xbf16>
    tpu.vector_store %arg6[%c0_38, %c0_39, %c0_40], %97 {strides = array<i32>} : memref<8x8x64xbf16, #tpu.memory_space<vmem>>, vector<1x8x32xbf16>,
    %98 = arith.truncf %93 : vector<8x32xf32> to vector<8x32xbf16>
    %c7 = arith.constant 7 : index
    %c0_41 = arith.constant 0 : index
    %c32 = arith.constant 32 : index
    %99 = vector.load %arg6[%c7, %c0_41, %c32] : memref<8x8x64xbf16, #tpu.memory_space<vmem>>, vector<1x8x32xbf16>
    %100 = vector.shape_cast %99 : vector<1x8x32xbf16> to vector<8x32xbf16>
    %101 = vector.shape_cast %98 : vector<8x32xbf16> to vector<1x8x32xbf16>
    tpu.vector_store %arg6[%c7, %c0_41, %c32], %101 {strides = array<i32>} : memref<8x8x64xbf16, #tpu.memory_space<vmem>>, vector<1x8x32xbf16>,
    %c1_i32 = arith.constant 1 : i32
    %102 = vector.broadcast %c1_i32 : i32 to vector<8x1xi32>
    %103 = arith.cmpi sgt, %1, %102 : vector<8x1xi32>
    %c6_i32 = arith.constant 6 : i32
    %104 = vector.broadcast %c6_i32 : i32 to vector<8x1xi32>
    %105 = arith.cmpi sgt, %1, %104 : vector<8x1xi32>
    %c0_42 = arith.constant 0 : index
    %c8 = arith.constant 8 : index
    %c0_43 = arith.constant 0 : index
    %106 = vector.load %arg7[%c0_42, %c8, %c0_43] : memref<2x64x96xf32, #tpu.memory_space<vmem>>, vector<1x8x96xf32>
    %107 = vector.shape_cast %106 : vector<1x8x96xf32> to vector<8x96xf32>
    %c1_44 = arith.constant 1 : index
    %c48 = arith.constant 48 : index
    %c0_45 = arith.constant 0 : index
    %108 = vector.load %arg7[%c1_44, %c48, %c0_45] : memref<2x64x96xf32, #tpu.memory_space<vmem>>, vector<1x8x96xf32>
    %109 = vector.shape_cast %108 : vector<1x8x96xf32> to vector<8x96xf32>
    %110 = arith.truncf %58 : vector<8x32xf32> to vector<8x32xbf16>
    %cst_46 = arith.constant dense<0.000000e+00> : vector<8x96xf32>
    %111 = tpu.matmul %110, %16, %cst_46 {dimension_numbers = #tpu.dot_dimension_numbers<[1], [0], [0], [1], [0, 0, 1, 1], [], []>} : vector<8x32xbf16>, vector<32x96xbf16>, vector<8x96xf32> -> vector<8x96xf32>
    %112 = vector.broadcast %20 : vector<1x96xf32> to vector<8x96xf32>
    %113 = arith.addf %111, %112 : vector<8x96xf32>
    %114 = vector.extract_strided_slice %107 {offsets = [0, 0], sizes = [8, 64], strides = [1, 1]} : vector<8x96xf32> to vector<8x64xf32>
    %115 = vector.extract_strided_slice %113 {offsets = [0, 0], sizes = [8, 64], strides = [1, 1]} : vector<8x96xf32> to vector<8x64xf32>
    %116 = arith.addf %114, %115 : vector<8x64xf32>
    %117 = arith.negf %116 : vector<8x64xf32>
    %118 = math.exp %117 : vector<8x64xf32>
    %cst_47 = arith.constant 1.000000e+00 : f32
    %119 = vector.broadcast %cst_47 : f32 to vector<8x64xf32>
    %120 = arith.addf %119, %118 : vector<8x64xf32>
    %121 = arith.divf %119, %120 : vector<8x64xf32>
    %122 = vector.extract_strided_slice %121 {offsets = [0, 0], sizes = [8, 32], strides = [1, 1]} : vector<8x64xf32> to vector<8x32xf32>
    %123 = vector.extract_strided_slice %121 {offsets = [0, 32], sizes = [8, 32], strides = [1, 1]} : vector<8x64xf32> to vector<8x32xf32>
    %124 = vector.extract_strided_slice %107 {offsets = [0, 64], sizes = [8, 32], strides = [1, 1]} : vector<8x96xf32> to vector<8x32xf32>
    %125 = vector.extract_strided_slice %113 {offsets = [0, 64], sizes = [8, 32], strides = [1, 1]} : vector<8x96xf32> to vector<8x32xf32>
    %126 = arith.mulf %122, %125 : vector<8x32xf32>
    %127 = arith.addf %124, %126 : vector<8x32xf32>
    %128 = math.tanh %127 : vector<8x32xf32>
    %cst_48 = arith.constant 1.000000e+00 : f32
    %129 = vector.broadcast %cst_48 : f32 to vector<8x32xf32>
    %130 = arith.subf %129, %123 : vector<8x32xf32>
    %131 = arith.mulf %130, %128 : vector<8x32xf32>
    %132 = arith.mulf %123, %58 : vector<8x32xf32>
    %133 = arith.addf %131, %132 : vector<8x32xf32>
    %134 = vector.shape_cast %103 : vector<8x1xi1> to vector<8x1xi1>
    %135 = vector.broadcast %134 : vector<8x1xi1> to vector<8x32xi1>
    %136 = arith.select %135, %133, %58 : vector<8x32xi1>, vector<8x32xf32>
    %cst_49 = arith.constant 0.000000e+00 : f32
    %137 = vector.shape_cast %103 : vector<8x1xi1> to vector<8x1xi1>
    %138 = vector.broadcast %137 : vector<8x1xi1> to vector<8x32xi1>
    %139 = vector.broadcast %cst_49 : f32 to vector<8x32xf32>
    %140 = arith.select %138, %133, %139 : vector<8x32xi1>, vector<8x32xf32>
    %141 = arith.truncf %89 : vector<8x32xf32> to vector<8x32xbf16>
    %cst_50 = arith.constant dense<0.000000e+00> : vector<8x96xf32>
    %142 = tpu.matmul %141, %18, %cst_50 {dimension_numbers = #tpu.dot_dimension_numbers<[1], [0], [0], [1], [0, 0, 1, 1], [], []>} : vector<8x32xbf16>, vector<32x96xbf16>, vector<8x96xf32> -> vector<8x96xf32>
    %143 = vector.broadcast %22 : vector<1x96xf32> to vector<8x96xf32>
    %144 = arith.addf %142, %143 : vector<8x96xf32>
    %145 = vector.extract_strided_slice %109 {offsets = [0, 0], sizes = [8, 64], strides = [1, 1]} : vector<8x96xf32> to vector<8x64xf32>
    %146 = vector.extract_strided_slice %144 {offsets = [0, 0], sizes = [8, 64], strides = [1, 1]} : vector<8x96xf32> to vector<8x64xf32>
    %147 = arith.addf %145, %146 : vector<8x64xf32>
    %148 = arith.negf %147 : vector<8x64xf32>
    %149 = math.exp %148 : vector<8x64xf32>
    %cst_51 = arith.constant 1.000000e+00 : f32
    %150 = vector.broadcast %cst_51 : f32 to vector<8x64xf32>
    %151 = arith.addf %150, %149 : vector<8x64xf32>
    %152 = arith.divf %150, %151 : vector<8x64xf32>
    %153 = vector.extract_strided_slice %152 {offsets = [0, 0], sizes = [8, 32], strides = [1, 1]} : vector<8x64xf32> to vector<8x32xf32>
    %154 = vector.extract_strided_slice %152 {offsets = [0, 32], sizes = [8, 32], strides = [1, 1]} : vector<8x64xf32> to vector<8x32xf32>
    %155 = vector.extract_strided_slice %109 {offsets = [0, 64], sizes = [8, 32], strides = [1, 1]} : vector<8x96xf32> to vector<8x32xf32>
    %156 = vector.extract_strided_slice %144 {offsets = [0, 64], sizes = [8, 32], strides = [1, 1]} : vector<8x96xf32> to vector<8x32xf32>
    %157 = arith.mulf %153, %156 : vector<8x32xf32>
    %158 = arith.addf %155, %157 : vector<8x32xf32>
    %159 = math.tanh %158 : vector<8x32xf32>
    %cst_52 = arith.constant 1.000000e+00 : f32
    %160 = vector.broadcast %cst_52 : f32 to vector<8x32xf32>
    %161 = arith.subf %160, %154 : vector<8x32xf32>
    %162 = arith.mulf %161, %159 : vector<8x32xf32>
    %163 = arith.mulf %154, %89 : vector<8x32xf32>
    %164 = arith.addf %162, %163 : vector<8x32xf32>
    %165 = vector.shape_cast %105 : vector<8x1xi1> to vector<8x1xi1>
    %166 = vector.broadcast %165 : vector<8x1xi1> to vector<8x32xi1>
    %167 = arith.select %166, %164, %89 : vector<8x32xi1>, vector<8x32xf32>
    %cst_53 = arith.constant 0.000000e+00 : f32
    %168 = vector.shape_cast %105 : vector<8x1xi1> to vector<8x1xi1>
    %169 = vector.broadcast %168 : vector<8x1xi1> to vector<8x32xi1>
    %170 = vector.broadcast %cst_53 : f32 to vector<8x32xf32>
    %171 = arith.select %169, %164, %170 : vector<8x32xi1>, vector<8x32xf32>
    %172 = arith.truncf %140 : vector<8x32xf32> to vector<8x32xbf16>
    %c1_54 = arith.constant 1 : index
    %c0_55 = arith.constant 0 : index
    %c0_56 = arith.constant 0 : index
    %173 = vector.load %arg6[%c1_54, %c0_55, %c0_56] : memref<8x8x64xbf16, #tpu.memory_space<vmem>>, vector<1x8x32xbf16>
    %174 = vector.shape_cast %173 : vector<1x8x32xbf16> to vector<8x32xbf16>
    %175 = vector.shape_cast %172 : vector<8x32xbf16> to vector<1x8x32xbf16>
    tpu.vector_store %arg6[%c1_54, %c0_55, %c0_56], %175 {strides = array<i32>} : memref<8x8x64xbf16, #tpu.memory_space<vmem>>, vector<1x8x32xbf16>,
    %176 = arith.truncf %171 : vector<8x32xf32> to vector<8x32xbf16>
    %c6 = arith.constant 6 : index
    %c0_57 = arith.constant 0 : index
    %c32_58 = arith.constant 32 : index
    %177 = vector.load %arg6[%c6, %c0_57, %c32_58] : memref<8x8x64xbf16, #tpu.memory_space<vmem>>, vector<1x8x32xbf16>
    %178 = vector.shape_cast %177 : vector<1x8x32xbf16> to vector<8x32xbf16>
    %179 = vector.shape_cast %176 : vector<8x32xbf16> to vector<1x8x32xbf16>
    tpu.vector_store %arg6[%c6, %c0_57, %c32_58], %179 {strides = array<i32>} : memref<8x8x64xbf16, #tpu.memory_space<vmem>>, vector<1x8x32xbf16>,
    %c2_i32 = arith.constant 2 : i32
    %180 = vector.broadcast %c2_i32 : i32 to vector<8x1xi32>
    %181 = arith.cmpi sgt, %1, %180 : vector<8x1xi32>
    %c5_i32 = arith.constant 5 : i32
    %182 = vector.broadcast %c5_i32 : i32 to vector<8x1xi32>
    %183 = arith.cmpi sgt, %1, %182 : vector<8x1xi32>
    %c0_59 = arith.constant 0 : index
    %c16 = arith.constant 16 : index
    %c0_60 = arith.constant 0 : index
    %184 = vector.load %arg7[%c0_59, %c16, %c0_60] : memref<2x64x96xf32, #tpu.memory_space<vmem>>, vector<1x8x96xf32>
    %185 = vector.shape_cast %184 : vector<1x8x96xf32> to vector<8x96xf32>
    %c1_61 = arith.constant 1 : index
    %c40 = arith.constant 40 : index
    %c0_62 = arith.constant 0 : index
    %186 = vector.load %arg7[%c1_61, %c40, %c0_62] : memref<2x64x96xf32, #tpu.memory_space<vmem>>, vector<1x8x96xf32>
    %187 = vector.shape_cast %186 : vector<1x8x96xf32> to vector<8x96xf32>
    %188 = arith.truncf %136 : vector<8x32xf32> to vector<8x32xbf16>
    %cst_63 = arith.constant dense<0.000000e+00> : vector<8x96xf32>
    %189 = tpu.matmul %188, %16, %cst_63 {dimension_numbers = #tpu.dot_dimension_numbers<[1], [0], [0], [1], [0, 0, 1, 1], [], []>} : vector<8x32xbf16>, vector<32x96xbf16>, vector<8x96xf32> -> vector<8x96xf32>
    %190 = vector.broadcast %20 : vector<1x96xf32> to vector<8x96xf32>
    %191 = arith.addf %189, %190 : vector<8x96xf32>
    %192 = vector.extract_strided_slice %185 {offsets = [0, 0], sizes = [8, 64], strides = [1, 1]} : vector<8x96xf32> to vector<8x64xf32>
    %193 = vector.extract_strided_slice %191 {offsets = [0, 0], sizes = [8, 64], strides = [1, 1]} : vector<8x96xf32> to vector<8x64xf32>
    %194 = arith.addf %192, %193 : vector<8x64xf32>
    %195 = arith.negf %194 : vector<8x64xf32>
    %196 = math.exp %195 : vector<8x64xf32>
    %cst_64 = arith.constant 1.000000e+00 : f32
    %197 = vector.broadcast %cst_64 : f32 to vector<8x64xf32>
    %198 = arith.addf %197, %196 : vector<8x64xf32>
    %199 = arith.divf %197, %198 : vector<8x64xf32>
    %200 = vector.extract_strided_slice %199 {offsets = [0, 0], sizes = [8, 32], strides = [1, 1]} : vector<8x64xf32> to vector<8x32xf32>
    %201 = vector.extract_strided_slice %199 {offsets = [0, 32], sizes = [8, 32], strides = [1, 1]} : vector<8x64xf32> to vector<8x32xf32>
    %202 = vector.extract_strided_slice %185 {offsets = [0, 64], sizes = [8, 32], strides = [1, 1]} : vector<8x96xf32> to vector<8x32xf32>
    %203 = vector.extract_strided_slice %191 {offsets = [0, 64], sizes = [8, 32], strides = [1, 1]} : vector<8x96xf32> to vector<8x32xf32>
    %204 = arith.mulf %200, %203 : vector<8x32xf32>
    %205 = arith.addf %202, %204 : vector<8x32xf32>
    %206 = math.tanh %205 : vector<8x32xf32>
    %cst_65 = arith.constant 1.000000e+00 : f32
    %207 = vector.broadcast %cst_65 : f32 to vector<8x32xf32>
    %208 = arith.subf %207, %201 : vector<8x32xf32>
    %209 = arith.mulf %208, %206 : vector<8x32xf32>
    %210 = arith.mulf %201, %136 : vector<8x32xf32>
    %211 = arith.addf %209, %210 : vector<8x32xf32>
    %212 = vector.shape_cast %181 : vector<8x1xi1> to vector<8x1xi1>
    %213 = vector.broadcast %212 : vector<8x1xi1> to vector<8x32xi1>
    %214 = arith.select %213, %211, %136 : vector<8x32xi1>, vector<8x32xf32>
    %cst_66 = arith.constant 0.000000e+00 : f32
    %215 = vector.shape_cast %181 : vector<8x1xi1> to vector<8x1xi1>
    %216 = vector.broadcast %215 : vector<8x1xi1> to vector<8x32xi1>
    %217 = vector.broadcast %cst_66 : f32 to vector<8x32xf32>
    %218 = arith.select %216, %211, %217 : vector<8x32xi1>, vector<8x32xf32>
    %219 = arith.truncf %167 : vector<8x32xf32> to vector<8x32xbf16>
    %cst_67 = arith.constant dense<0.000000e+00> : vector<8x96xf32>
    %220 = tpu.matmul %219, %18, %cst_67 {dimension_numbers = #tpu.dot_dimension_numbers<[1], [0], [0], [1], [0, 0, 1, 1], [], []>} : vector<8x32xbf16>, vector<32x96xbf16>, vector<8x96xf32> -> vector<8x96xf32>
    %221 = vector.broadcast %22 : vector<1x96xf32> to vector<8x96xf32>
    %222 = arith.addf %220, %221 : vector<8x96xf32>
    %223 = vector.extract_strided_slice %187 {offsets = [0, 0], sizes = [8, 64], strides = [1, 1]} : vector<8x96xf32> to vector<8x64xf32>
    %224 = vector.extract_strided_slice %222 {offsets = [0, 0], sizes = [8, 64], strides = [1, 1]} : vector<8x96xf32> to vector<8x64xf32>
    %225 = arith.addf %223, %224 : vector<8x64xf32>
    %226 = arith.negf %225 : vector<8x64xf32>
    %227 = math.exp %226 : vector<8x64xf32>
    %cst_68 = arith.constant 1.000000e+00 : f32
    %228 = vector.broadcast %cst_68 : f32 to vector<8x64xf32>
    %229 = arith.addf %228, %227 : vector<8x64xf32>
    %230 = arith.divf %228, %229 : vector<8x64xf32>
    %231 = vector.extract_strided_slice %230 {offsets = [0, 0], sizes = [8, 32], strides = [1, 1]} : vector<8x64xf32> to vector<8x32xf32>
    %232 = vector.extract_strided_slice %230 {offsets = [0, 32], sizes = [8, 32], strides = [1, 1]} : vector<8x64xf32> to vector<8x32xf32>
    %233 = vector.extract_strided_slice %187 {offsets = [0, 64], sizes = [8, 32], strides = [1, 1]} : vector<8x96xf32> to vector<8x32xf32>
    %234 = vector.extract_strided_slice %222 {offsets = [0, 64], sizes = [8, 32], strides = [1, 1]} : vector<8x96xf32> to vector<8x32xf32>
    %235 = arith.mulf %231, %234 : vector<8x32xf32>
    %236 = arith.addf %233, %235 : vector<8x32xf32>
    %237 = math.tanh %236 : vector<8x32xf32>
    %cst_69 = arith.constant 1.000000e+00 : f32
    %238 = vector.broadcast %cst_69 : f32 to vector<8x32xf32>
    %239 = arith.subf %238, %232 : vector<8x32xf32>
    %240 = arith.mulf %239, %237 : vector<8x32xf32>
    %241 = arith.mulf %232, %167 : vector<8x32xf32>
    %242 = arith.addf %240, %241 : vector<8x32xf32>
    %243 = vector.shape_cast %183 : vector<8x1xi1> to vector<8x1xi1>
    %244 = vector.broadcast %243 : vector<8x1xi1> to vector<8x32xi1>
    %245 = arith.select %244, %242, %167 : vector<8x32xi1>, vector<8x32xf32>
    %cst_70 = arith.constant 0.000000e+00 : f32
    %246 = vector.shape_cast %183 : vector<8x1xi1> to vector<8x1xi1>
    %247 = vector.broadcast %246 : vector<8x1xi1> to vector<8x32xi1>
    %248 = vector.broadcast %cst_70 : f32 to vector<8x32xf32>
    %249 = arith.select %247, %242, %248 : vector<8x32xi1>, vector<8x32xf32>
    %250 = arith.truncf %218 : vector<8x32xf32> to vector<8x32xbf16>
    %c2 = arith.constant 2 : index
    %c0_71 = arith.constant 0 : index
    %c0_72 = arith.constant 0 : index
    %251 = vector.load %arg6[%c2, %c0_71, %c0_72] : memref<8x8x64xbf16, #tpu.memory_space<vmem>>, vector<1x8x32xbf16>
    %252 = vector.shape_cast %251 : vector<1x8x32xbf16> to vector<8x32xbf16>
    %253 = vector.shape_cast %250 : vector<8x32xbf16> to vector<1x8x32xbf16>
    tpu.vector_store %arg6[%c2, %c0_71, %c0_72], %253 {strides = array<i32>} : memref<8x8x64xbf16, #tpu.memory_space<vmem>>, vector<1x8x32xbf16>,
    %254 = arith.truncf %249 : vector<8x32xf32> to vector<8x32xbf16>
    %c5 = arith.constant 5 : index
    %c0_73 = arith.constant 0 : index
    %c32_74 = arith.constant 32 : index
    %255 = vector.load %arg6[%c5, %c0_73, %c32_74] : memref<8x8x64xbf16, #tpu.memory_space<vmem>>, vector<1x8x32xbf16>
    %256 = vector.shape_cast %255 : vector<1x8x32xbf16> to vector<8x32xbf16>
    %257 = vector.shape_cast %254 : vector<8x32xbf16> to vector<1x8x32xbf16>
    tpu.vector_store %arg6[%c5, %c0_73, %c32_74], %257 {strides = array<i32>} : memref<8x8x64xbf16, #tpu.memory_space<vmem>>, vector<1x8x32xbf16>,
    %c3_i32 = arith.constant 3 : i32
    %258 = vector.broadcast %c3_i32 : i32 to vector<8x1xi32>
    %259 = arith.cmpi sgt, %1, %258 : vector<8x1xi32>
    %c4_i32 = arith.constant 4 : i32
    %260 = vector.broadcast %c4_i32 : i32 to vector<8x1xi32>
    %261 = arith.cmpi sgt, %1, %260 : vector<8x1xi32>
    %c0_75 = arith.constant 0 : index
    %c24 = arith.constant 24 : index
    %c0_76 = arith.constant 0 : index
    %262 = vector.load %arg7[%c0_75, %c24, %c0_76] : memref<2x64x96xf32, #tpu.memory_space<vmem>>, vector<1x8x96xf32>
    %263 = vector.shape_cast %262 : vector<1x8x96xf32> to vector<8x96xf32>
    %c1_77 = arith.constant 1 : index
    %c32_78 = arith.constant 32 : index
    %c0_79 = arith.constant 0 : index
    %264 = vector.load %arg7[%c1_77, %c32_78, %c0_79] : memref<2x64x96xf32, #tpu.memory_space<vmem>>, vector<1x8x96xf32>
    %265 = vector.shape_cast %264 : vector<1x8x96xf32> to vector<8x96xf32>
    %266 = arith.truncf %214 : vector<8x32xf32> to vector<8x32xbf16>
    %cst_80 = arith.constant dense<0.000000e+00> : vector<8x96xf32>
    %267 = tpu.matmul %266, %16, %cst_80 {dimension_numbers = #tpu.dot_dimension_numbers<[1], [0], [0], [1], [0, 0, 1, 1], [], []>} : vector<8x32xbf16>, vector<32x96xbf16>, vector<8x96xf32> -> vector<8x96xf32>
    %268 = vector.broadcast %20 : vector<1x96xf32> to vector<8x96xf32>
    %269 = arith.addf %267, %268 : vector<8x96xf32>
    %270 = vector.extract_strided_slice %263 {offsets = [0, 0], sizes = [8, 64], strides = [1, 1]} : vector<8x96xf32> to vector<8x64xf32>
    %271 = vector.extract_strided_slice %269 {offsets = [0, 0], sizes = [8, 64], strides = [1, 1]} : vector<8x96xf32> to vector<8x64xf32>
    %272 = arith.addf %270, %271 : vector<8x64xf32>
    %273 = arith.negf %272 : vector<8x64xf32>
    %274 = math.exp %273 : vector<8x64xf32>
    %cst_81 = arith.constant 1.000000e+00 : f32
    %275 = vector.broadcast %cst_81 : f32 to vector<8x64xf32>
    %276 = arith.addf %275, %274 : vector<8x64xf32>
    %277 = arith.divf %275, %276 : vector<8x64xf32>
    %278 = vector.extract_strided_slice %277 {offsets = [0, 0], sizes = [8, 32], strides = [1, 1]} : vector<8x64xf32> to vector<8x32xf32>
    %279 = vector.extract_strided_slice %277 {offsets = [0, 32], sizes = [8, 32], strides = [1, 1]} : vector<8x64xf32> to vector<8x32xf32>
    %280 = vector.extract_strided_slice %263 {offsets = [0, 64], sizes = [8, 32], strides = [1, 1]} : vector<8x96xf32> to vector<8x32xf32>
    %281 = vector.extract_strided_slice %269 {offsets = [0, 64], sizes = [8, 32], strides = [1, 1]} : vector<8x96xf32> to vector<8x32xf32>
    %282 = arith.mulf %278, %281 : vector<8x32xf32>
    %283 = arith.addf %280, %282 : vector<8x32xf32>
    %284 = math.tanh %283 : vector<8x32xf32>
    %cst_82 = arith.constant 1.000000e+00 : f32
    %285 = vector.broadcast %cst_82 : f32 to vector<8x32xf32>
    %286 = arith.subf %285, %279 : vector<8x32xf32>
    %287 = arith.mulf %286, %284 : vector<8x32xf32>
    %288 = arith.mulf %279, %214 : vector<8x32xf32>
    %289 = arith.addf %287, %288 : vector<8x32xf32>
    %290 = vector.shape_cast %259 : vector<8x1xi1> to vector<8x1xi1>
    %291 = vector.broadcast %290 : vector<8x1xi1> to vector<8x32xi1>
    %292 = arith.select %291, %289, %214 : vector<8x32xi1>, vector<8x32xf32>
    %cst_83 = arith.constant 0.000000e+00 : f32
    %293 = vector.shape_cast %259 : vector<8x1xi1> to vector<8x1xi1>
    %294 = vector.broadcast %293 : vector<8x1xi1> to vector<8x32xi1>
    %295 = vector.broadcast %cst_83 : f32 to vector<8x32xf32>
    %296 = arith.select %294, %289, %295 : vector<8x32xi1>, vector<8x32xf32>
    %297 = arith.truncf %245 : vector<8x32xf32> to vector<8x32xbf16>
    %cst_84 = arith.constant dense<0.000000e+00> : vector<8x96xf32>
    %298 = tpu.matmul %297, %18, %cst_84 {dimension_numbers = #tpu.dot_dimension_numbers<[1], [0], [0], [1], [0, 0, 1, 1], [], []>} : vector<8x32xbf16>, vector<32x96xbf16>, vector<8x96xf32> -> vector<8x96xf32>
    %299 = vector.broadcast %22 : vector<1x96xf32> to vector<8x96xf32>
    %300 = arith.addf %298, %299 : vector<8x96xf32>
    %301 = vector.extract_strided_slice %265 {offsets = [0, 0], sizes = [8, 64], strides = [1, 1]} : vector<8x96xf32> to vector<8x64xf32>
    %302 = vector.extract_strided_slice %300 {offsets = [0, 0], sizes = [8, 64], strides = [1, 1]} : vector<8x96xf32> to vector<8x64xf32>
    %303 = arith.addf %301, %302 : vector<8x64xf32>
    %304 = arith.negf %303 : vector<8x64xf32>
    %305 = math.exp %304 : vector<8x64xf32>
    %cst_85 = arith.constant 1.000000e+00 : f32
    %306 = vector.broadcast %cst_85 : f32 to vector<8x64xf32>
    %307 = arith.addf %306, %305 : vector<8x64xf32>
    %308 = arith.divf %306, %307 : vector<8x64xf32>
    %309 = vector.extract_strided_slice %308 {offsets = [0, 0], sizes = [8, 32], strides = [1, 1]} : vector<8x64xf32> to vector<8x32xf32>
    %310 = vector.extract_strided_slice %308 {offsets = [0, 32], sizes = [8, 32], strides = [1, 1]} : vector<8x64xf32> to vector<8x32xf32>
    %311 = vector.extract_strided_slice %265 {offsets = [0, 64], sizes = [8, 32], strides = [1, 1]} : vector<8x96xf32> to vector<8x32xf32>
    %312 = vector.extract_strided_slice %300 {offsets = [0, 64], sizes = [8, 32], strides = [1, 1]} : vector<8x96xf32> to vector<8x32xf32>
    %313 = arith.mulf %309, %312 : vector<8x32xf32>
    %314 = arith.addf %311, %313 : vector<8x32xf32>
    %315 = math.tanh %314 : vector<8x32xf32>
    %cst_86 = arith.constant 1.000000e+00 : f32
    %316 = vector.broadcast %cst_86 : f32 to vector<8x32xf32>
    %317 = arith.subf %316, %310 : vector<8x32xf32>
    %318 = arith.mulf %317, %315 : vector<8x32xf32>
    %319 = arith.mulf %310, %245 : vector<8x32xf32>
    %320 = arith.addf %318, %319 : vector<8x32xf32>
    %321 = vector.shape_cast %261 : vector<8x1xi1> to vector<8x1xi1>
    %322 = vector.broadcast %321 : vector<8x1xi1> to vector<8x32xi1>
    %323 = arith.select %322, %320, %245 : vector<8x32xi1>, vector<8x32xf32>
    %cst_87 = arith.constant 0.000000e+00 : f32
    %324 = vector.shape_cast %261 : vector<8x1xi1> to vector<8x1xi1>
    %325 = vector.broadcast %324 : vector<8x1xi1> to vector<8x32xi1>
    %326 = vector.broadcast %cst_87 : f32 to vector<8x32xf32>
    %327 = arith.select %325, %320, %326 : vector<8x32xi1>, vector<8x32xf32>
    %328 = arith.truncf %296 : vector<8x32xf32> to vector<8x32xbf16>
    %c3 = arith.constant 3 : index
    %c0_88 = arith.constant 0 : index
    %c0_89 = arith.constant 0 : index
    %329 = vector.load %arg6[%c3, %c0_88, %c0_89] : memref<8x8x64xbf16, #tpu.memory_space<vmem>>, vector<1x8x32xbf16>
    %330 = vector.shape_cast %329 : vector<1x8x32xbf16> to vector<8x32xbf16>
    %331 = vector.shape_cast %328 : vector<8x32xbf16> to vector<1x8x32xbf16>
    tpu.vector_store %arg6[%c3, %c0_88, %c0_89], %331 {strides = array<i32>} : memref<8x8x64xbf16, #tpu.memory_space<vmem>>, vector<1x8x32xbf16>,
    %332 = arith.truncf %327 : vector<8x32xf32> to vector<8x32xbf16>
    %c4 = arith.constant 4 : index
    %c0_90 = arith.constant 0 : index
    %c32_91 = arith.constant 32 : index
    %333 = vector.load %arg6[%c4, %c0_90, %c32_91] : memref<8x8x64xbf16, #tpu.memory_space<vmem>>, vector<1x8x32xbf16>
    %334 = vector.shape_cast %333 : vector<1x8x32xbf16> to vector<8x32xbf16>
    %335 = vector.shape_cast %332 : vector<8x32xbf16> to vector<1x8x32xbf16>
    tpu.vector_store %arg6[%c4, %c0_90, %c32_91], %335 {strides = array<i32>} : memref<8x8x64xbf16, #tpu.memory_space<vmem>>, vector<1x8x32xbf16>,
    %c4_i32_92 = arith.constant 4 : i32
    %336 = vector.broadcast %c4_i32_92 : i32 to vector<8x1xi32>
    %337 = arith.cmpi sgt, %1, %336 : vector<8x1xi32>
    %c3_i32_93 = arith.constant 3 : i32
    %338 = vector.broadcast %c3_i32_93 : i32 to vector<8x1xi32>
    %339 = arith.cmpi sgt, %1, %338 : vector<8x1xi32>
    %c0_94 = arith.constant 0 : index
    %c32_95 = arith.constant 32 : index
    %c0_96 = arith.constant 0 : index
    %340 = vector.load %arg7[%c0_94, %c32_95, %c0_96] : memref<2x64x96xf32, #tpu.memory_space<vmem>>, vector<1x8x96xf32>
    %341 = vector.shape_cast %340 : vector<1x8x96xf32> to vector<8x96xf32>
    %c1_97 = arith.constant 1 : index
    %c24_98 = arith.constant 24 : index
    %c0_99 = arith.constant 0 : index
    %342 = vector.load %arg7[%c1_97, %c24_98, %c0_99] : memref<2x64x96xf32, #tpu.memory_space<vmem>>, vector<1x8x96xf32>
    %343 = vector.shape_cast %342 : vector<1x8x96xf32> to vector<8x96xf32>
    %344 = arith.truncf %292 : vector<8x32xf32> to vector<8x32xbf16>
    %cst_100 = arith.constant dense<0.000000e+00> : vector<8x96xf32>
    %345 = tpu.matmul %344, %16, %cst_100 {dimension_numbers = #tpu.dot_dimension_numbers<[1], [0], [0], [1], [0, 0, 1, 1], [], []>} : vector<8x32xbf16>, vector<32x96xbf16>, vector<8x96xf32> -> vector<8x96xf32>
    %346 = vector.broadcast %20 : vector<1x96xf32> to vector<8x96xf32>
    %347 = arith.addf %345, %346 : vector<8x96xf32>
    %348 = vector.extract_strided_slice %341 {offsets = [0, 0], sizes = [8, 64], strides = [1, 1]} : vector<8x96xf32> to vector<8x64xf32>
    %349 = vector.extract_strided_slice %347 {offsets = [0, 0], sizes = [8, 64], strides = [1, 1]} : vector<8x96xf32> to vector<8x64xf32>
    %350 = arith.addf %348, %349 : vector<8x64xf32>
    %351 = arith.negf %350 : vector<8x64xf32>
    %352 = math.exp %351 : vector<8x64xf32>
    %cst_101 = arith.constant 1.000000e+00 : f32
    %353 = vector.broadcast %cst_101 : f32 to vector<8x64xf32>
    %354 = arith.addf %353, %352 : vector<8x64xf32>
    %355 = arith.divf %353, %354 : vector<8x64xf32>
    %356 = vector.extract_strided_slice %355 {offsets = [0, 0], sizes = [8, 32], strides = [1, 1]} : vector<8x64xf32> to vector<8x32xf32>
    %357 = vector.extract_strided_slice %355 {offsets = [0, 32], sizes = [8, 32], strides = [1, 1]} : vector<8x64xf32> to vector<8x32xf32>
    %358 = vector.extract_strided_slice %341 {offsets = [0, 64], sizes = [8, 32], strides = [1, 1]} : vector<8x96xf32> to vector<8x32xf32>
    %359 = vector.extract_strided_slice %347 {offsets = [0, 64], sizes = [8, 32], strides = [1, 1]} : vector<8x96xf32> to vector<8x32xf32>
    %360 = arith.mulf %356, %359 : vector<8x32xf32>
    %361 = arith.addf %358, %360 : vector<8x32xf32>
    %362 = math.tanh %361 : vector<8x32xf32>
    %cst_102 = arith.constant 1.000000e+00 : f32
    %363 = vector.broadcast %cst_102 : f32 to vector<8x32xf32>
    %364 = arith.subf %363, %357 : vector<8x32xf32>
    %365 = arith.mulf %364, %362 : vector<8x32xf32>
    %366 = arith.mulf %357, %292 : vector<8x32xf32>
    %367 = arith.addf %365, %366 : vector<8x32xf32>
    %368 = vector.shape_cast %337 : vector<8x1xi1> to vector<8x1xi1>
    %369 = vector.broadcast %368 : vector<8x1xi1> to vector<8x32xi1>
    %370 = arith.select %369, %367, %292 : vector<8x32xi1>, vector<8x32xf32>
    %cst_103 = arith.constant 0.000000e+00 : f32
    %371 = vector.shape_cast %337 : vector<8x1xi1> to vector<8x1xi1>
    %372 = vector.broadcast %371 : vector<8x1xi1> to vector<8x32xi1>
    %373 = vector.broadcast %cst_103 : f32 to vector<8x32xf32>
    %374 = arith.select %372, %367, %373 : vector<8x32xi1>, vector<8x32xf32>
    %375 = arith.truncf %323 : vector<8x32xf32> to vector<8x32xbf16>
    %cst_104 = arith.constant dense<0.000000e+00> : vector<8x96xf32>
    %376 = tpu.matmul %375, %18, %cst_104 {dimension_numbers = #tpu.dot_dimension_numbers<[1], [0], [0], [1], [0, 0, 1, 1], [], []>} : vector<8x32xbf16>, vector<32x96xbf16>, vector<8x96xf32> -> vector<8x96xf32>
    %377 = vector.broadcast %22 : vector<1x96xf32> to vector<8x96xf32>
    %378 = arith.addf %376, %377 : vector<8x96xf32>
    %379 = vector.extract_strided_slice %343 {offsets = [0, 0], sizes = [8, 64], strides = [1, 1]} : vector<8x96xf32> to vector<8x64xf32>
    %380 = vector.extract_strided_slice %378 {offsets = [0, 0], sizes = [8, 64], strides = [1, 1]} : vector<8x96xf32> to vector<8x64xf32>
    %381 = arith.addf %379, %380 : vector<8x64xf32>
    %382 = arith.negf %381 : vector<8x64xf32>
    %383 = math.exp %382 : vector<8x64xf32>
    %cst_105 = arith.constant 1.000000e+00 : f32
    %384 = vector.broadcast %cst_105 : f32 to vector<8x64xf32>
    %385 = arith.addf %384, %383 : vector<8x64xf32>
    %386 = arith.divf %384, %385 : vector<8x64xf32>
    %387 = vector.extract_strided_slice %386 {offsets = [0, 0], sizes = [8, 32], strides = [1, 1]} : vector<8x64xf32> to vector<8x32xf32>
    %388 = vector.extract_strided_slice %386 {offsets = [0, 32], sizes = [8, 32], strides = [1, 1]} : vector<8x64xf32> to vector<8x32xf32>
    %389 = vector.extract_strided_slice %343 {offsets = [0, 64], sizes = [8, 32], strides = [1, 1]} : vector<8x96xf32> to vector<8x32xf32>
    %390 = vector.extract_strided_slice %378 {offsets = [0, 64], sizes = [8, 32], strides = [1, 1]} : vector<8x96xf32> to vector<8x32xf32>
    %391 = arith.mulf %387, %390 : vector<8x32xf32>
    %392 = arith.addf %389, %391 : vector<8x32xf32>
    %393 = math.tanh %392 : vector<8x32xf32>
    %cst_106 = arith.constant 1.000000e+00 : f32
    %394 = vector.broadcast %cst_106 : f32 to vector<8x32xf32>
    %395 = arith.subf %394, %388 : vector<8x32xf32>
    %396 = arith.mulf %395, %393 : vector<8x32xf32>
    %397 = arith.mulf %388, %323 : vector<8x32xf32>
    %398 = arith.addf %396, %397 : vector<8x32xf32>
    %399 = vector.shape_cast %339 : vector<8x1xi1> to vector<8x1xi1>
    %400 = vector.broadcast %399 : vector<8x1xi1> to vector<8x32xi1>
    %401 = arith.select %400, %398, %323 : vector<8x32xi1>, vector<8x32xf32>
    %cst_107 = arith.constant 0.000000e+00 : f32
    %402 = vector.shape_cast %339 : vector<8x1xi1> to vector<8x1xi1>
    %403 = vector.broadcast %402 : vector<8x1xi1> to vector<8x32xi1>
    %404 = vector.broadcast %cst_107 : f32 to vector<8x32xf32>
    %405 = arith.select %403, %398, %404 : vector<8x32xi1>, vector<8x32xf32>
    %406 = arith.truncf %374 : vector<8x32xf32> to vector<8x32xbf16>
    %c4_108 = arith.constant 4 : index
    %c0_109 = arith.constant 0 : index
    %c0_110 = arith.constant 0 : index
    %407 = vector.load %arg6[%c4_108, %c0_109, %c0_110] : memref<8x8x64xbf16, #tpu.memory_space<vmem>>, vector<1x8x32xbf16>
    %408 = vector.shape_cast %407 : vector<1x8x32xbf16> to vector<8x32xbf16>
    %409 = vector.shape_cast %406 : vector<8x32xbf16> to vector<1x8x32xbf16>
    tpu.vector_store %arg6[%c4_108, %c0_109, %c0_110], %409 {strides = array<i32>} : memref<8x8x64xbf16, #tpu.memory_space<vmem>>, vector<1x8x32xbf16>,
    %410 = arith.truncf %405 : vector<8x32xf32> to vector<8x32xbf16>
    %c3_111 = arith.constant 3 : index
    %c0_112 = arith.constant 0 : index
    %c32_113 = arith.constant 32 : index
    %411 = vector.load %arg6[%c3_111, %c0_112, %c32_113] : memref<8x8x64xbf16, #tpu.memory_space<vmem>>, vector<1x8x32xbf16>
    %412 = vector.shape_cast %411 : vector<1x8x32xbf16> to vector<8x32xbf16>
    %413 = vector.shape_cast %410 : vector<8x32xbf16> to vector<1x8x32xbf16>
    tpu.vector_store %arg6[%c3_111, %c0_112, %c32_113], %413 {strides = array<i32>} : memref<8x8x64xbf16, #tpu.memory_space<vmem>>, vector<1x8x32xbf16>,
    %c5_i32_114 = arith.constant 5 : i32
    %414 = vector.broadcast %c5_i32_114 : i32 to vector<8x1xi32>
    %415 = arith.cmpi sgt, %1, %414 : vector<8x1xi32>
    %c2_i32_115 = arith.constant 2 : i32
    %416 = vector.broadcast %c2_i32_115 : i32 to vector<8x1xi32>
    %417 = arith.cmpi sgt, %1, %416 : vector<8x1xi32>
    %c0_116 = arith.constant 0 : index
    %c40_117 = arith.constant 40 : index
    %c0_118 = arith.constant 0 : index
    %418 = vector.load %arg7[%c0_116, %c40_117, %c0_118] : memref<2x64x96xf32, #tpu.memory_space<vmem>>, vector<1x8x96xf32>
    %419 = vector.shape_cast %418 : vector<1x8x96xf32> to vector<8x96xf32>
    %c1_119 = arith.constant 1 : index
    %c16_120 = arith.constant 16 : index
    %c0_121 = arith.constant 0 : index
    %420 = vector.load %arg7[%c1_119, %c16_120, %c0_121] : memref<2x64x96xf32, #tpu.memory_space<vmem>>, vector<1x8x96xf32>
    %421 = vector.shape_cast %420 : vector<1x8x96xf32> to vector<8x96xf32>
    %422 = arith.truncf %370 : vector<8x32xf32> to vector<8x32xbf16>
    %cst_122 = arith.constant dense<0.000000e+00> : vector<8x96xf32>
    %423 = tpu.matmul %422, %16, %cst_122 {dimension_numbers = #tpu.dot_dimension_numbers<[1], [0], [0], [1], [0, 0, 1, 1], [], []>} : vector<8x32xbf16>, vector<32x96xbf16>, vector<8x96xf32> -> vector<8x96xf32>
    %424 = vector.broadcast %20 : vector<1x96xf32> to vector<8x96xf32>
    %425 = arith.addf %423, %424 : vector<8x96xf32>
    %426 = vector.extract_strided_slice %419 {offsets = [0, 0], sizes = [8, 64], strides = [1, 1]} : vector<8x96xf32> to vector<8x64xf32>
    %427 = vector.extract_strided_slice %425 {offsets = [0, 0], sizes = [8, 64], strides = [1, 1]} : vector<8x96xf32> to vector<8x64xf32>
    %428 = arith.addf %426, %427 : vector<8x64xf32>
    %429 = arith.negf %428 : vector<8x64xf32>
    %430 = math.exp %429 : vector<8x64xf32>
    %cst_123 = arith.constant 1.000000e+00 : f32
    %431 = vector.broadcast %cst_123 : f32 to vector<8x64xf32>
    %432 = arith.addf %431, %430 : vector<8x64xf32>
    %433 = arith.divf %431, %432 : vector<8x64xf32>
    %434 = vector.extract_strided_slice %433 {offsets = [0, 0], sizes = [8, 32], strides = [1, 1]} : vector<8x64xf32> to vector<8x32xf32>
    %435 = vector.extract_strided_slice %433 {offsets = [0, 32], sizes = [8, 32], strides = [1, 1]} : vector<8x64xf32> to vector<8x32xf32>
    %436 = vector.extract_strided_slice %419 {offsets = [0, 64], sizes = [8, 32], strides = [1, 1]} : vector<8x96xf32> to vector<8x32xf32>
    %437 = vector.extract_strided_slice %425 {offsets = [0, 64], sizes = [8, 32], strides = [1, 1]} : vector<8x96xf32> to vector<8x32xf32>
    %438 = arith.mulf %434, %437 : vector<8x32xf32>
    %439 = arith.addf %436, %438 : vector<8x32xf32>
    %440 = math.tanh %439 : vector<8x32xf32>
    %cst_124 = arith.constant 1.000000e+00 : f32
    %441 = vector.broadcast %cst_124 : f32 to vector<8x32xf32>
    %442 = arith.subf %441, %435 : vector<8x32xf32>
    %443 = arith.mulf %442, %440 : vector<8x32xf32>
    %444 = arith.mulf %435, %370 : vector<8x32xf32>
    %445 = arith.addf %443, %444 : vector<8x32xf32>
    %446 = vector.shape_cast %415 : vector<8x1xi1> to vector<8x1xi1>
    %447 = vector.broadcast %446 : vector<8x1xi1> to vector<8x32xi1>
    %448 = arith.select %447, %445, %370 : vector<8x32xi1>, vector<8x32xf32>
    %cst_125 = arith.constant 0.000000e+00 : f32
    %449 = vector.shape_cast %415 : vector<8x1xi1> to vector<8x1xi1>
    %450 = vector.broadcast %449 : vector<8x1xi1> to vector<8x32xi1>
    %451 = vector.broadcast %cst_125 : f32 to vector<8x32xf32>
    %452 = arith.select %450, %445, %451 : vector<8x32xi1>, vector<8x32xf32>
    %453 = arith.truncf %401 : vector<8x32xf32> to vector<8x32xbf16>
    %cst_126 = arith.constant dense<0.000000e+00> : vector<8x96xf32>
    %454 = tpu.matmul %453, %18, %cst_126 {dimension_numbers = #tpu.dot_dimension_numbers<[1], [0], [0], [1], [0, 0, 1, 1], [], []>} : vector<8x32xbf16>, vector<32x96xbf16>, vector<8x96xf32> -> vector<8x96xf32>
    %455 = vector.broadcast %22 : vector<1x96xf32> to vector<8x96xf32>
    %456 = arith.addf %454, %455 : vector<8x96xf32>
    %457 = vector.extract_strided_slice %421 {offsets = [0, 0], sizes = [8, 64], strides = [1, 1]} : vector<8x96xf32> to vector<8x64xf32>
    %458 = vector.extract_strided_slice %456 {offsets = [0, 0], sizes = [8, 64], strides = [1, 1]} : vector<8x96xf32> to vector<8x64xf32>
    %459 = arith.addf %457, %458 : vector<8x64xf32>
    %460 = arith.negf %459 : vector<8x64xf32>
    %461 = math.exp %460 : vector<8x64xf32>
    %cst_127 = arith.constant 1.000000e+00 : f32
    %462 = vector.broadcast %cst_127 : f32 to vector<8x64xf32>
    %463 = arith.addf %462, %461 : vector<8x64xf32>
    %464 = arith.divf %462, %463 : vector<8x64xf32>
    %465 = vector.extract_strided_slice %464 {offsets = [0, 0], sizes = [8, 32], strides = [1, 1]} : vector<8x64xf32> to vector<8x32xf32>
    %466 = vector.extract_strided_slice %464 {offsets = [0, 32], sizes = [8, 32], strides = [1, 1]} : vector<8x64xf32> to vector<8x32xf32>
    %467 = vector.extract_strided_slice %421 {offsets = [0, 64], sizes = [8, 32], strides = [1, 1]} : vector<8x96xf32> to vector<8x32xf32>
    %468 = vector.extract_strided_slice %456 {offsets = [0, 64], sizes = [8, 32], strides = [1, 1]} : vector<8x96xf32> to vector<8x32xf32>
    %469 = arith.mulf %465, %468 : vector<8x32xf32>
    %470 = arith.addf %467, %469 : vector<8x32xf32>
    %471 = math.tanh %470 : vector<8x32xf32>
    %cst_128 = arith.constant 1.000000e+00 : f32
    %472 = vector.broadcast %cst_128 : f32 to vector<8x32xf32>
    %473 = arith.subf %472, %466 : vector<8x32xf32>
    %474 = arith.mulf %473, %471 : vector<8x32xf32>
    %475 = arith.mulf %466, %401 : vector<8x32xf32>
    %476 = arith.addf %474, %475 : vector<8x32xf32>
    %477 = vector.shape_cast %417 : vector<8x1xi1> to vector<8x1xi1>
    %478 = vector.broadcast %477 : vector<8x1xi1> to vector<8x32xi1>
    %479 = arith.select %478, %476, %401 : vector<8x32xi1>, vector<8x32xf32>
    %cst_129 = arith.constant 0.000000e+00 : f32
    %480 = vector.shape_cast %417 : vector<8x1xi1> to vector<8x1xi1>
    %481 = vector.broadcast %480 : vector<8x1xi1> to vector<8x32xi1>
    %482 = vector.broadcast %cst_129 : f32 to vector<8x32xf32>
    %483 = arith.select %481, %476, %482 : vector<8x32xi1>, vector<8x32xf32>
    %484 = arith.truncf %452 : vector<8x32xf32> to vector<8x32xbf16>
    %c5_130 = arith.constant 5 : index
    %c0_131 = arith.constant 0 : index
    %c0_132 = arith.constant 0 : index
    %485 = vector.load %arg6[%c5_130, %c0_131, %c0_132] : memref<8x8x64xbf16, #tpu.memory_space<vmem>>, vector<1x8x32xbf16>
    %486 = vector.shape_cast %485 : vector<1x8x32xbf16> to vector<8x32xbf16>
    %487 = vector.shape_cast %484 : vector<8x32xbf16> to vector<1x8x32xbf16>
    tpu.vector_store %arg6[%c5_130, %c0_131, %c0_132], %487 {strides = array<i32>} : memref<8x8x64xbf16, #tpu.memory_space<vmem>>, vector<1x8x32xbf16>,
    %488 = arith.truncf %483 : vector<8x32xf32> to vector<8x32xbf16>
    %c2_133 = arith.constant 2 : index
    %c0_134 = arith.constant 0 : index
    %c32_135 = arith.constant 32 : index
    %489 = vector.load %arg6[%c2_133, %c0_134, %c32_135] : memref<8x8x64xbf16, #tpu.memory_space<vmem>>, vector<1x8x32xbf16>
    %490 = vector.shape_cast %489 : vector<1x8x32xbf16> to vector<8x32xbf16>
    %491 = vector.shape_cast %488 : vector<8x32xbf16> to vector<1x8x32xbf16>
    tpu.vector_store %arg6[%c2_133, %c0_134, %c32_135], %491 {strides = array<i32>} : memref<8x8x64xbf16, #tpu.memory_space<vmem>>, vector<1x8x32xbf16>,
    %c6_i32_136 = arith.constant 6 : i32
    %492 = vector.broadcast %c6_i32_136 : i32 to vector<8x1xi32>
    %493 = arith.cmpi sgt, %1, %492 : vector<8x1xi32>
    %c1_i32_137 = arith.constant 1 : i32
    %494 = vector.broadcast %c1_i32_137 : i32 to vector<8x1xi32>
    %495 = arith.cmpi sgt, %1, %494 : vector<8x1xi32>
    %c0_138 = arith.constant 0 : index
    %c48_139 = arith.constant 48 : index
    %c0_140 = arith.constant 0 : index
    %496 = vector.load %arg7[%c0_138, %c48_139, %c0_140] : memref<2x64x96xf32, #tpu.memory_space<vmem>>, vector<1x8x96xf32>
    %497 = vector.shape_cast %496 : vector<1x8x96xf32> to vector<8x96xf32>
    %c1_141 = arith.constant 1 : index
    %c8_142 = arith.constant 8 : index
    %c0_143 = arith.constant 0 : index
    %498 = vector.load %arg7[%c1_141, %c8_142, %c0_143] : memref<2x64x96xf32, #tpu.memory_space<vmem>>, vector<1x8x96xf32>
    %499 = vector.shape_cast %498 : vector<1x8x96xf32> to vector<8x96xf32>
    %500 = arith.truncf %448 : vector<8x32xf32> to vector<8x32xbf16>
    %cst_144 = arith.constant dense<0.000000e+00> : vector<8x96xf32>
    %501 = tpu.matmul %500, %16, %cst_144 {dimension_numbers = #tpu.dot_dimension_numbers<[1], [0], [0], [1], [0, 0, 1, 1], [], []>} : vector<8x32xbf16>, vector<32x96xbf16>, vector<8x96xf32> -> vector<8x96xf32>
    %502 = vector.broadcast %20 : vector<1x96xf32> to vector<8x96xf32>
    %503 = arith.addf %501, %502 : vector<8x96xf32>
    %504 = vector.extract_strided_slice %497 {offsets = [0, 0], sizes = [8, 64], strides = [1, 1]} : vector<8x96xf32> to vector<8x64xf32>
    %505 = vector.extract_strided_slice %503 {offsets = [0, 0], sizes = [8, 64], strides = [1, 1]} : vector<8x96xf32> to vector<8x64xf32>
    %506 = arith.addf %504, %505 : vector<8x64xf32>
    %507 = arith.negf %506 : vector<8x64xf32>
    %508 = math.exp %507 : vector<8x64xf32>
    %cst_145 = arith.constant 1.000000e+00 : f32
    %509 = vector.broadcast %cst_145 : f32 to vector<8x64xf32>
    %510 = arith.addf %509, %508 : vector<8x64xf32>
    %511 = arith.divf %509, %510 : vector<8x64xf32>
    %512 = vector.extract_strided_slice %511 {offsets = [0, 0], sizes = [8, 32], strides = [1, 1]} : vector<8x64xf32> to vector<8x32xf32>
    %513 = vector.extract_strided_slice %511 {offsets = [0, 32], sizes = [8, 32], strides = [1, 1]} : vector<8x64xf32> to vector<8x32xf32>
    %514 = vector.extract_strided_slice %497 {offsets = [0, 64], sizes = [8, 32], strides = [1, 1]} : vector<8x96xf32> to vector<8x32xf32>
    %515 = vector.extract_strided_slice %503 {offsets = [0, 64], sizes = [8, 32], strides = [1, 1]} : vector<8x96xf32> to vector<8x32xf32>
    %516 = arith.mulf %512, %515 : vector<8x32xf32>
    %517 = arith.addf %514, %516 : vector<8x32xf32>
    %518 = math.tanh %517 : vector<8x32xf32>
    %cst_146 = arith.constant 1.000000e+00 : f32
    %519 = vector.broadcast %cst_146 : f32 to vector<8x32xf32>
    %520 = arith.subf %519, %513 : vector<8x32xf32>
    %521 = arith.mulf %520, %518 : vector<8x32xf32>
    %522 = arith.mulf %513, %448 : vector<8x32xf32>
    %523 = arith.addf %521, %522 : vector<8x32xf32>
    %524 = vector.shape_cast %493 : vector<8x1xi1> to vector<8x1xi1>
    %525 = vector.broadcast %524 : vector<8x1xi1> to vector<8x32xi1>
    %526 = arith.select %525, %523, %448 : vector<8x32xi1>, vector<8x32xf32>
    %cst_147 = arith.constant 0.000000e+00 : f32
    %527 = vector.shape_cast %493 : vector<8x1xi1> to vector<8x1xi1>
    %528 = vector.broadcast %527 : vector<8x1xi1> to vector<8x32xi1>
    %529 = vector.broadcast %cst_147 : f32 to vector<8x32xf32>
    %530 = arith.select %528, %523, %529 : vector<8x32xi1>, vector<8x32xf32>
    %531 = arith.truncf %479 : vector<8x32xf32> to vector<8x32xbf16>
    %cst_148 = arith.constant dense<0.000000e+00> : vector<8x96xf32>
    %532 = tpu.matmul %531, %18, %cst_148 {dimension_numbers = #tpu.dot_dimension_numbers<[1], [0], [0], [1], [0, 0, 1, 1], [], []>} : vector<8x32xbf16>, vector<32x96xbf16>, vector<8x96xf32> -> vector<8x96xf32>
    %533 = vector.broadcast %22 : vector<1x96xf32> to vector<8x96xf32>
    %534 = arith.addf %532, %533 : vector<8x96xf32>
    %535 = vector.extract_strided_slice %499 {offsets = [0, 0], sizes = [8, 64], strides = [1, 1]} : vector<8x96xf32> to vector<8x64xf32>
    %536 = vector.extract_strided_slice %534 {offsets = [0, 0], sizes = [8, 64], strides = [1, 1]} : vector<8x96xf32> to vector<8x64xf32>
    %537 = arith.addf %535, %536 : vector<8x64xf32>
    %538 = arith.negf %537 : vector<8x64xf32>
    %539 = math.exp %538 : vector<8x64xf32>
    %cst_149 = arith.constant 1.000000e+00 : f32
    %540 = vector.broadcast %cst_149 : f32 to vector<8x64xf32>
    %541 = arith.addf %540, %539 : vector<8x64xf32>
    %542 = arith.divf %540, %541 : vector<8x64xf32>
    %543 = vector.extract_strided_slice %542 {offsets = [0, 0], sizes = [8, 32], strides = [1, 1]} : vector<8x64xf32> to vector<8x32xf32>
    %544 = vector.extract_strided_slice %542 {offsets = [0, 32], sizes = [8, 32], strides = [1, 1]} : vector<8x64xf32> to vector<8x32xf32>
    %545 = vector.extract_strided_slice %499 {offsets = [0, 64], sizes = [8, 32], strides = [1, 1]} : vector<8x96xf32> to vector<8x32xf32>
    %546 = vector.extract_strided_slice %534 {offsets = [0, 64], sizes = [8, 32], strides = [1, 1]} : vector<8x96xf32> to vector<8x32xf32>
    %547 = arith.mulf %543, %546 : vector<8x32xf32>
    %548 = arith.addf %545, %547 : vector<8x32xf32>
    %549 = math.tanh %548 : vector<8x32xf32>
    %cst_150 = arith.constant 1.000000e+00 : f32
    %550 = vector.broadcast %cst_150 : f32 to vector<8x32xf32>
    %551 = arith.subf %550, %544 : vector<8x32xf32>
    %552 = arith.mulf %551, %549 : vector<8x32xf32>
    %553 = arith.mulf %544, %479 : vector<8x32xf32>
    %554 = arith.addf %552, %553 : vector<8x32xf32>
    %555 = vector.shape_cast %495 : vector<8x1xi1> to vector<8x1xi1>
    %556 = vector.broadcast %555 : vector<8x1xi1> to vector<8x32xi1>
    %557 = arith.select %556, %554, %479 : vector<8x32xi1>, vector<8x32xf32>
    %cst_151 = arith.constant 0.000000e+00 : f32
    %558 = vector.shape_cast %495 : vector<8x1xi1> to vector<8x1xi1>
    %559 = vector.broadcast %558 : vector<8x1xi1> to vector<8x32xi1>
    %560 = vector.broadcast %cst_151 : f32 to vector<8x32xf32>
    %561 = arith.select %559, %554, %560 : vector<8x32xi1>, vector<8x32xf32>
    %562 = arith.truncf %530 : vector<8x32xf32> to vector<8x32xbf16>
    %c6_152 = arith.constant 6 : index
    %c0_153 = arith.constant 0 : index
    %c0_154 = arith.constant 0 : index
    %563 = vector.load %arg6[%c6_152, %c0_153, %c0_154] : memref<8x8x64xbf16, #tpu.memory_space<vmem>>, vector<1x8x32xbf16>
    %564 = vector.shape_cast %563 : vector<1x8x32xbf16> to vector<8x32xbf16>
    %565 = vector.shape_cast %562 : vector<8x32xbf16> to vector<1x8x32xbf16>
    tpu.vector_store %arg6[%c6_152, %c0_153, %c0_154], %565 {strides = array<i32>} : memref<8x8x64xbf16, #tpu.memory_space<vmem>>, vector<1x8x32xbf16>,
    %566 = arith.truncf %561 : vector<8x32xf32> to vector<8x32xbf16>
    %c1_155 = arith.constant 1 : index
    %c0_156 = arith.constant 0 : index
    %c32_157 = arith.constant 32 : index
    %567 = vector.load %arg6[%c1_155, %c0_156, %c32_157] : memref<8x8x64xbf16, #tpu.memory_space<vmem>>, vector<1x8x32xbf16>
    %568 = vector.shape_cast %567 : vector<1x8x32xbf16> to vector<8x32xbf16>
    %569 = vector.shape_cast %566 : vector<8x32xbf16> to vector<1x8x32xbf16>
    tpu.vector_store %arg6[%c1_155, %c0_156, %c32_157], %569 {strides = array<i32>} : memref<8x8x64xbf16, #tpu.memory_space<vmem>>, vector<1x8x32xbf16>,
    %c7_i32_158 = arith.constant 7 : i32
    %570 = vector.broadcast %c7_i32_158 : i32 to vector<8x1xi32>
    %571 = arith.cmpi sgt, %1, %570 : vector<8x1xi32>
    %c0_i32_159 = arith.constant 0 : i32
    %572 = vector.broadcast %c0_i32_159 : i32 to vector<8x1xi32>
    %573 = arith.cmpi sgt, %1, %572 : vector<8x1xi32>
    %c0_160 = arith.constant 0 : index
    %c56_161 = arith.constant 56 : index
    %c0_162 = arith.constant 0 : index
    %574 = vector.load %arg7[%c0_160, %c56_161, %c0_162] : memref<2x64x96xf32, #tpu.memory_space<vmem>>, vector<1x8x96xf32>
    %575 = vector.shape_cast %574 : vector<1x8x96xf32> to vector<8x96xf32>
    %c1_163 = arith.constant 1 : index
    %c0_164 = arith.constant 0 : index
    %c0_165 = arith.constant 0 : index
    %576 = vector.load %arg7[%c1_163, %c0_164, %c0_165] : memref<2x64x96xf32, #tpu.memory_space<vmem>>, vector<1x8x96xf32>
    %577 = vector.shape_cast %576 : vector<1x8x96xf32> to vector<8x96xf32>
    %578 = arith.truncf %526 : vector<8x32xf32> to vector<8x32xbf16>
    %cst_166 = arith.constant dense<0.000000e+00> : vector<8x96xf32>
    %579 = tpu.matmul %578, %16, %cst_166 {dimension_numbers = #tpu.dot_dimension_numbers<[1], [0], [0], [1], [0, 0, 1, 1], [], []>} : vector<8x32xbf16>, vector<32x96xbf16>, vector<8x96xf32> -> vector<8x96xf32>
    %580 = vector.broadcast %20 : vector<1x96xf32> to vector<8x96xf32>
    %581 = arith.addf %579, %580 : vector<8x96xf32>
    %582 = vector.extract_strided_slice %575 {offsets = [0, 0], sizes = [8, 64], strides = [1, 1]} : vector<8x96xf32> to vector<8x64xf32>
    %583 = vector.extract_strided_slice %581 {offsets = [0, 0], sizes = [8, 64], strides = [1, 1]} : vector<8x96xf32> to vector<8x64xf32>
    %584 = arith.addf %582, %583 : vector<8x64xf32>
    %585 = arith.negf %584 : vector<8x64xf32>
    %586 = math.exp %585 : vector<8x64xf32>
    %cst_167 = arith.constant 1.000000e+00 : f32
    %587 = vector.broadcast %cst_167 : f32 to vector<8x64xf32>
    %588 = arith.addf %587, %586 : vector<8x64xf32>
    %589 = arith.divf %587, %588 : vector<8x64xf32>
    %590 = vector.extract_strided_slice %589 {offsets = [0, 0], sizes = [8, 32], strides = [1, 1]} : vector<8x64xf32> to vector<8x32xf32>
    %591 = vector.extract_strided_slice %589 {offsets = [0, 32], sizes = [8, 32], strides = [1, 1]} : vector<8x64xf32> to vector<8x32xf32>
    %592 = vector.extract_strided_slice %575 {offsets = [0, 64], sizes = [8, 32], strides = [1, 1]} : vector<8x96xf32> to vector<8x32xf32>
    %593 = vector.extract_strided_slice %581 {offsets = [0, 64], sizes = [8, 32], strides = [1, 1]} : vector<8x96xf32> to vector<8x32xf32>
    %594 = arith.mulf %590, %593 : vector<8x32xf32>
    %595 = arith.addf %592, %594 : vector<8x32xf32>
    %596 = math.tanh %595 : vector<8x32xf32>
    %cst_168 = arith.constant 1.000000e+00 : f32
    %597 = vector.broadcast %cst_168 : f32 to vector<8x32xf32>
    %598 = arith.subf %597, %591 : vector<8x32xf32>
    %599 = arith.mulf %598, %596 : vector<8x32xf32>
    %600 = arith.mulf %591, %526 : vector<8x32xf32>
    %601 = arith.addf %599, %600 : vector<8x32xf32>
    %cst_169 = arith.constant 0.000000e+00 : f32
    %602 = vector.shape_cast %571 : vector<8x1xi1> to vector<8x1xi1>
    %603 = vector.broadcast %602 : vector<8x1xi1> to vector<8x32xi1>
    %604 = vector.broadcast %cst_169 : f32 to vector<8x32xf32>
    %605 = arith.select %603, %601, %604 : vector<8x32xi1>, vector<8x32xf32>
    %606 = arith.truncf %557 : vector<8x32xf32> to vector<8x32xbf16>
    %cst_170 = arith.constant dense<0.000000e+00> : vector<8x96xf32>
    %607 = tpu.matmul %606, %18, %cst_170 {dimension_numbers = #tpu.dot_dimension_numbers<[1], [0], [0], [1], [0, 0, 1, 1], [], []>} : vector<8x32xbf16>, vector<32x96xbf16>, vector<8x96xf32> -> vector<8x96xf32>
    %608 = vector.broadcast %22 : vector<1x96xf32> to vector<8x96xf32>
    %609 = arith.addf %607, %608 : vector<8x96xf32>
    %610 = vector.extract_strided_slice %577 {offsets = [0, 0], sizes = [8, 64], strides = [1, 1]} : vector<8x96xf32> to vector<8x64xf32>
    %611 = vector.extract_strided_slice %609 {offsets = [0, 0], sizes = [8, 64], strides = [1, 1]} : vector<8x96xf32> to vector<8x64xf32>
    %612 = arith.addf %610, %611 : vector<8x64xf32>
    %613 = arith.negf %612 : vector<8x64xf32>
    %614 = math.exp %613 : vector<8x64xf32>
    %cst_171 = arith.constant 1.000000e+00 : f32
    %615 = vector.broadcast %cst_171 : f32 to vector<8x64xf32>
    %616 = arith.addf %615, %614 : vector<8x64xf32>
    %617 = arith.divf %615, %616 : vector<8x64xf32>
    %618 = vector.extract_strided_slice %617 {offsets = [0, 0], sizes = [8, 32], strides = [1, 1]} : vector<8x64xf32> to vector<8x32xf32>
    %619 = vector.extract_strided_slice %617 {offsets = [0, 32], sizes = [8, 32], strides = [1, 1]} : vector<8x64xf32> to vector<8x32xf32>
    %620 = vector.extract_strided_slice %577 {offsets = [0, 64], sizes = [8, 32], strides = [1, 1]} : vector<8x96xf32> to vector<8x32xf32>
    %621 = vector.extract_strided_slice %609 {offsets = [0, 64], sizes = [8, 32], strides = [1, 1]} : vector<8x96xf32> to vector<8x32xf32>
    %622 = arith.mulf %618, %621 : vector<8x32xf32>
    %623 = arith.addf %620, %622 : vector<8x32xf32>
    %624 = math.tanh %623 : vector<8x32xf32>
    %cst_172 = arith.constant 1.000000e+00 : f32
    %625 = vector.broadcast %cst_172 : f32 to vector<8x32xf32>
    %626 = arith.subf %625, %619 : vector<8x32xf32>
    %627 = arith.mulf %626, %624 : vector<8x32xf32>
    %628 = arith.mulf %619, %557 : vector<8x32xf32>
    %629 = arith.addf %627, %628 : vector<8x32xf32>
    %cst_173 = arith.constant 0.000000e+00 : f32
    %630 = vector.shape_cast %573 : vector<8x1xi1> to vector<8x1xi1>
    %631 = vector.broadcast %630 : vector<8x1xi1> to vector<8x32xi1>
    %632 = vector.broadcast %cst_173 : f32 to vector<8x32xf32>
    %633 = arith.select %631, %629, %632 : vector<8x32xi1>, vector<8x32xf32>
    %634 = arith.truncf %605 : vector<8x32xf32> to vector<8x32xbf16>
    %c7_174 = arith.constant 7 : index
    %c0_175 = arith.constant 0 : index
    %c0_176 = arith.constant 0 : index
    %635 = vector.load %arg6[%c7_174, %c0_175, %c0_176] : memref<8x8x64xbf16, #tpu.memory_space<vmem>>, vector<1x8x32xbf16>
    %636 = vector.shape_cast %635 : vector<1x8x32xbf16> to vector<8x32xbf16>
    %637 = vector.shape_cast %634 : vector<8x32xbf16> to vector<1x8x32xbf16>
    tpu.vector_store %arg6[%c7_174, %c0_175, %c0_176], %637 {strides = array<i32>} : memref<8x8x64xbf16, #tpu.memory_space<vmem>>, vector<1x8x32xbf16>,
    %638 = arith.truncf %633 : vector<8x32xf32> to vector<8x32xbf16>
    %c0_177 = arith.constant 0 : index
    %c0_178 = arith.constant 0 : index
    %c32_179 = arith.constant 32 : index
    %639 = vector.load %arg6[%c0_177, %c0_178, %c32_179] : memref<8x8x64xbf16, #tpu.memory_space<vmem>>, vector<1x8x32xbf16>
    %640 = vector.shape_cast %639 : vector<1x8x32xbf16> to vector<8x32xbf16>
    %641 = vector.shape_cast %638 : vector<8x32xbf16> to vector<1x8x32xbf16>
    tpu.vector_store %arg6[%c0_177, %c0_178, %c32_179], %641 {strides = array<i32>} : memref<8x8x64xbf16, #tpu.memory_space<vmem>>, vector<1x8x32xbf16>,
    return
  }
}

module attributes {stable_mosaic.version = 11 : i64} {
  func.func @kernel(%arg0: memref<64x64xbf16, #tpu.memory_space<vmem>>, %arg1: memref<8x1xi32, #tpu.memory_space<vmem>>, %arg2: memref<64x192xbf16, #tpu.memory_space<vmem>>, %arg3: memref<2x32x96xbf16, #tpu.memory_space<vmem>>, %arg4: memref<1x192xf32, #tpu.memory_space<vmem>>, %arg5: memref<2x1x96xf32, #tpu.memory_space<vmem>>, %arg6: memref<64x32xf32, #tpu.memory_space<vmem>>, %arg7: memref<1x32xf32, #tpu.memory_space<vmem>>, %arg8: memref<32x4xf32, #tpu.memory_space<vmem>>, %arg9: memref<1x4xf32, #tpu.memory_space<vmem>>, %arg10: memref<8x4xf32, #tpu.memory_space<vmem>>, %arg11: memref<2x64x96xf32, #tpu.memory_space<vmem>>) attributes {dimension_semantics = [], scalar_prefetch = 0 : i64, scratch_operands = 1 : i64, tpu.core_type = #tpu.core_type<tc>} {
    %c0 = arith.constant 0 : index
    %c0_0 = arith.constant 0 : index
    %0 = vector.load %arg4[%c0, %c0_0] : memref<1x192xf32, #tpu.memory_space<vmem>>, vector<1x192xf32>
    %c0_1 = arith.constant 0 : index
    %c0_2 = arith.constant 0 : index
    %1 = vector.load %arg1[%c0_1, %c0_2] : memref<8x1xi32, #tpu.memory_space<vmem>>, vector<8x1xi32>
    %c0_3 = arith.constant 0 : index
    %c0_4 = arith.constant 0 : index
    %2 = vector.load %arg0[%c0_3, %c0_4] : memref<64x64xbf16, #tpu.memory_space<vmem>>, vector<64x64xbf16>
    %c0_5 = arith.constant 0 : index
    %c0_6 = arith.constant 0 : index
    %3 = vector.load %arg2[%c0_5, %c0_6] : memref<64x192xbf16, #tpu.memory_space<vmem>>, vector<64x192xbf16>
    %cst = arith.constant dense<0.000000e+00> : vector<64x192xf32>
    %4 = tpu.matmul %2, %3, %cst {dimension_numbers = #tpu.dot_dimension_numbers<[1], [0], [0], [1], [0, 0, 1, 1], [], []>} : vector<64x64xbf16>, vector<64x192xbf16>, vector<64x192xf32> -> vector<64x192xf32>
    %5 = vector.broadcast %0 : vector<1x192xf32> to vector<64x192xf32>
    %6 = arith.addf %4, %5 : vector<64x192xf32>
    %7 = vector.extract_strided_slice %6 {offsets = [0, 0], sizes = [64, 96], strides = [1, 1]} : vector<64x192xf32> to vector<64x96xf32>
    %c0_7 = arith.constant 0 : index
    %c0_8 = arith.constant 0 : index
    %c0_9 = arith.constant 0 : index
    %8 = vector.load %arg11[%c0_7, %c0_8, %c0_9] : memref<2x64x96xf32, #tpu.memory_space<vmem>>, vector<1x64x96xf32>
    %9 = vector.shape_cast %8 : vector<1x64x96xf32> to vector<64x96xf32>
    %10 = vector.shape_cast %7 : vector<64x96xf32> to vector<1x64x96xf32>
    tpu.vector_store %arg11[%c0_7, %c0_8, %c0_9], %10 {strides = array<i32>} : memref<2x64x96xf32, #tpu.memory_space<vmem>>, vector<1x64x96xf32>,
    %11 = vector.extract_strided_slice %6 {offsets = [0, 96], sizes = [64, 96], strides = [1, 1]} : vector<64x192xf32> to vector<64x96xf32>
    %c1 = arith.constant 1 : index
    %c0_10 = arith.constant 0 : index
    %c0_11 = arith.constant 0 : index
    %12 = vector.load %arg11[%c1, %c0_10, %c0_11] : memref<2x64x96xf32, #tpu.memory_space<vmem>>, vector<1x64x96xf32>
    %13 = vector.shape_cast %12 : vector<1x64x96xf32> to vector<64x96xf32>
    %14 = vector.shape_cast %11 : vector<64x96xf32> to vector<1x64x96xf32>
    tpu.vector_store %arg11[%c1, %c0_10, %c0_11], %14 {strides = array<i32>} : memref<2x64x96xf32, #tpu.memory_space<vmem>>, vector<1x64x96xf32>,
    %c0_12 = arith.constant 0 : index
    %c0_13 = arith.constant 0 : index
    %c0_14 = arith.constant 0 : index
    %15 = vector.load %arg3[%c0_12, %c0_13, %c0_14] : memref<2x32x96xbf16, #tpu.memory_space<vmem>>, vector<1x32x96xbf16>
    %16 = vector.shape_cast %15 : vector<1x32x96xbf16> to vector<32x96xbf16>
    %c1_15 = arith.constant 1 : index
    %c0_16 = arith.constant 0 : index
    %c0_17 = arith.constant 0 : index
    %17 = vector.load %arg3[%c1_15, %c0_16, %c0_17] : memref<2x32x96xbf16, #tpu.memory_space<vmem>>, vector<1x32x96xbf16>
    %18 = vector.shape_cast %17 : vector<1x32x96xbf16> to vector<32x96xbf16>
    %c0_18 = arith.constant 0 : index
    %c0_19 = arith.constant 0 : index
    %c0_20 = arith.constant 0 : index
    %19 = vector.load %arg5[%c0_18, %c0_19, %c0_20] : memref<2x1x96xf32, #tpu.memory_space<vmem>>, vector<1x1x96xf32>
    %20 = vector.shape_cast %19 : vector<1x1x96xf32> to vector<1x96xf32>
    %c1_21 = arith.constant 1 : index
    %c0_22 = arith.constant 0 : index
    %c0_23 = arith.constant 0 : index
    %21 = vector.load %arg5[%c1_21, %c0_22, %c0_23] : memref<2x1x96xf32, #tpu.memory_space<vmem>>, vector<1x1x96xf32>
    %22 = vector.shape_cast %21 : vector<1x1x96xf32> to vector<1x96xf32>
    %cst_24 = arith.constant 0.000000e+00 : f32
    %23 = vector.broadcast %cst_24 : f32 to vector<8x32xf32>
    %c0_i32 = arith.constant 0 : i32
    %24 = vector.broadcast %c0_i32 : i32 to vector<8x1xi32>
    %25 = arith.cmpi sgt, %1, %24 : vector<8x1xi32>
    %c7_i32 = arith.constant 7 : i32
    %26 = vector.broadcast %c7_i32 : i32 to vector<8x1xi32>
    %27 = arith.cmpi sgt, %1, %26 : vector<8x1xi32>
    %c0_25 = arith.constant 0 : index
    %c0_26 = arith.constant 0 : index
    %c0_27 = arith.constant 0 : index
    %28 = vector.load %arg11[%c0_25, %c0_26, %c0_27] : memref<2x64x96xf32, #tpu.memory_space<vmem>>, vector<1x8x96xf32>
    %29 = vector.shape_cast %28 : vector<1x8x96xf32> to vector<8x96xf32>
    %c1_28 = arith.constant 1 : index
    %c56 = arith.constant 56 : index
    %c0_29 = arith.constant 0 : index
    %30 = vector.load %arg11[%c1_28, %c56, %c0_29] : memref<2x64x96xf32, #tpu.memory_space<vmem>>, vector<1x8x96xf32>
    %31 = vector.shape_cast %30 : vector<1x8x96xf32> to vector<8x96xf32>
    %32 = arith.truncf %23 : vector<8x32xf32> to vector<8x32xbf16>
    %cst_30 = arith.constant dense<0.000000e+00> : vector<8x96xf32>
    %33 = tpu.matmul %32, %16, %cst_30 {dimension_numbers = #tpu.dot_dimension_numbers<[1], [0], [0], [1], [0, 0, 1, 1], [], []>} : vector<8x32xbf16>, vector<32x96xbf16>, vector<8x96xf32> -> vector<8x96xf32>
    %34 = vector.broadcast %20 : vector<1x96xf32> to vector<8x96xf32>
    %35 = arith.addf %33, %34 : vector<8x96xf32>
    %36 = vector.extract_strided_slice %29 {offsets = [0, 0], sizes = [8, 64], strides = [1, 1]} : vector<8x96xf32> to vector<8x64xf32>
    %37 = vector.extract_strided_slice %35 {offsets = [0, 0], sizes = [8, 64], strides = [1, 1]} : vector<8x96xf32> to vector<8x64xf32>
    %38 = arith.addf %36, %37 : vector<8x64xf32>
    %39 = arith.negf %38 : vector<8x64xf32>
    %40 = math.exp %39 : vector<8x64xf32>
    %cst_31 = arith.constant 1.000000e+00 : f32
    %41 = vector.broadcast %cst_31 : f32 to vector<8x64xf32>
    %42 = arith.addf %41, %40 : vector<8x64xf32>
    %43 = arith.divf %41, %42 : vector<8x64xf32>
    %44 = vector.extract_strided_slice %43 {offsets = [0, 0], sizes = [8, 32], strides = [1, 1]} : vector<8x64xf32> to vector<8x32xf32>
    %45 = vector.extract_strided_slice %43 {offsets = [0, 32], sizes = [8, 32], strides = [1, 1]} : vector<8x64xf32> to vector<8x32xf32>
    %46 = vector.extract_strided_slice %29 {offsets = [0, 64], sizes = [8, 32], strides = [1, 1]} : vector<8x96xf32> to vector<8x32xf32>
    %47 = vector.extract_strided_slice %35 {offsets = [0, 64], sizes = [8, 32], strides = [1, 1]} : vector<8x96xf32> to vector<8x32xf32>
    %48 = arith.mulf %44, %47 : vector<8x32xf32>
    %49 = arith.addf %46, %48 : vector<8x32xf32>
    %50 = math.tanh %49 : vector<8x32xf32>
    %cst_32 = arith.constant 1.000000e+00 : f32
    %51 = vector.broadcast %cst_32 : f32 to vector<8x32xf32>
    %52 = arith.subf %51, %45 : vector<8x32xf32>
    %53 = arith.mulf %52, %50 : vector<8x32xf32>
    %54 = arith.mulf %45, %23 : vector<8x32xf32>
    %55 = arith.addf %53, %54 : vector<8x32xf32>
    %56 = vector.shape_cast %25 : vector<8x1xi1> to vector<8x1xi1>
    %57 = vector.broadcast %56 : vector<8x1xi1> to vector<8x32xi1>
    %58 = arith.select %57, %55, %23 : vector<8x32xi1>, vector<8x32xf32>
    %59 = arith.truncf %23 : vector<8x32xf32> to vector<8x32xbf16>
    %cst_33 = arith.constant dense<0.000000e+00> : vector<8x96xf32>
    %60 = tpu.matmul %59, %18, %cst_33 {dimension_numbers = #tpu.dot_dimension_numbers<[1], [0], [0], [1], [0, 0, 1, 1], [], []>} : vector<8x32xbf16>, vector<32x96xbf16>, vector<8x96xf32> -> vector<8x96xf32>
    %61 = vector.broadcast %22 : vector<1x96xf32> to vector<8x96xf32>
    %62 = arith.addf %60, %61 : vector<8x96xf32>
    %63 = vector.extract_strided_slice %31 {offsets = [0, 0], sizes = [8, 64], strides = [1, 1]} : vector<8x96xf32> to vector<8x64xf32>
    %64 = vector.extract_strided_slice %62 {offsets = [0, 0], sizes = [8, 64], strides = [1, 1]} : vector<8x96xf32> to vector<8x64xf32>
    %65 = arith.addf %63, %64 : vector<8x64xf32>
    %66 = arith.negf %65 : vector<8x64xf32>
    %67 = math.exp %66 : vector<8x64xf32>
    %cst_34 = arith.constant 1.000000e+00 : f32
    %68 = vector.broadcast %cst_34 : f32 to vector<8x64xf32>
    %69 = arith.addf %68, %67 : vector<8x64xf32>
    %70 = arith.divf %68, %69 : vector<8x64xf32>
    %71 = vector.extract_strided_slice %70 {offsets = [0, 0], sizes = [8, 32], strides = [1, 1]} : vector<8x64xf32> to vector<8x32xf32>
    %72 = vector.extract_strided_slice %70 {offsets = [0, 32], sizes = [8, 32], strides = [1, 1]} : vector<8x64xf32> to vector<8x32xf32>
    %73 = vector.extract_strided_slice %31 {offsets = [0, 64], sizes = [8, 32], strides = [1, 1]} : vector<8x96xf32> to vector<8x32xf32>
    %74 = vector.extract_strided_slice %62 {offsets = [0, 64], sizes = [8, 32], strides = [1, 1]} : vector<8x96xf32> to vector<8x32xf32>
    %75 = arith.mulf %71, %74 : vector<8x32xf32>
    %76 = arith.addf %73, %75 : vector<8x32xf32>
    %77 = math.tanh %76 : vector<8x32xf32>
    %cst_35 = arith.constant 1.000000e+00 : f32
    %78 = vector.broadcast %cst_35 : f32 to vector<8x32xf32>
    %79 = arith.subf %78, %72 : vector<8x32xf32>
    %80 = arith.mulf %79, %77 : vector<8x32xf32>
    %81 = arith.mulf %72, %23 : vector<8x32xf32>
    %82 = arith.addf %80, %81 : vector<8x32xf32>
    %83 = vector.shape_cast %27 : vector<8x1xi1> to vector<8x1xi1>
    %84 = vector.broadcast %83 : vector<8x1xi1> to vector<8x32xi1>
    %85 = arith.select %84, %82, %23 : vector<8x32xi1>, vector<8x32xf32>
    %c1_i32 = arith.constant 1 : i32
    %86 = vector.broadcast %c1_i32 : i32 to vector<8x1xi32>
    %87 = arith.cmpi sgt, %1, %86 : vector<8x1xi32>
    %c6_i32 = arith.constant 6 : i32
    %88 = vector.broadcast %c6_i32 : i32 to vector<8x1xi32>
    %89 = arith.cmpi sgt, %1, %88 : vector<8x1xi32>
    %c0_36 = arith.constant 0 : index
    %c8 = arith.constant 8 : index
    %c0_37 = arith.constant 0 : index
    %90 = vector.load %arg11[%c0_36, %c8, %c0_37] : memref<2x64x96xf32, #tpu.memory_space<vmem>>, vector<1x8x96xf32>
    %91 = vector.shape_cast %90 : vector<1x8x96xf32> to vector<8x96xf32>
    %c1_38 = arith.constant 1 : index
    %c48 = arith.constant 48 : index
    %c0_39 = arith.constant 0 : index
    %92 = vector.load %arg11[%c1_38, %c48, %c0_39] : memref<2x64x96xf32, #tpu.memory_space<vmem>>, vector<1x8x96xf32>
    %93 = vector.shape_cast %92 : vector<1x8x96xf32> to vector<8x96xf32>
    %94 = arith.truncf %58 : vector<8x32xf32> to vector<8x32xbf16>
    %cst_40 = arith.constant dense<0.000000e+00> : vector<8x96xf32>
    %95 = tpu.matmul %94, %16, %cst_40 {dimension_numbers = #tpu.dot_dimension_numbers<[1], [0], [0], [1], [0, 0, 1, 1], [], []>} : vector<8x32xbf16>, vector<32x96xbf16>, vector<8x96xf32> -> vector<8x96xf32>
    %96 = vector.broadcast %20 : vector<1x96xf32> to vector<8x96xf32>
    %97 = arith.addf %95, %96 : vector<8x96xf32>
    %98 = vector.extract_strided_slice %91 {offsets = [0, 0], sizes = [8, 64], strides = [1, 1]} : vector<8x96xf32> to vector<8x64xf32>
    %99 = vector.extract_strided_slice %97 {offsets = [0, 0], sizes = [8, 64], strides = [1, 1]} : vector<8x96xf32> to vector<8x64xf32>
    %100 = arith.addf %98, %99 : vector<8x64xf32>
    %101 = arith.negf %100 : vector<8x64xf32>
    %102 = math.exp %101 : vector<8x64xf32>
    %cst_41 = arith.constant 1.000000e+00 : f32
    %103 = vector.broadcast %cst_41 : f32 to vector<8x64xf32>
    %104 = arith.addf %103, %102 : vector<8x64xf32>
    %105 = arith.divf %103, %104 : vector<8x64xf32>
    %106 = vector.extract_strided_slice %105 {offsets = [0, 0], sizes = [8, 32], strides = [1, 1]} : vector<8x64xf32> to vector<8x32xf32>
    %107 = vector.extract_strided_slice %105 {offsets = [0, 32], sizes = [8, 32], strides = [1, 1]} : vector<8x64xf32> to vector<8x32xf32>
    %108 = vector.extract_strided_slice %91 {offsets = [0, 64], sizes = [8, 32], strides = [1, 1]} : vector<8x96xf32> to vector<8x32xf32>
    %109 = vector.extract_strided_slice %97 {offsets = [0, 64], sizes = [8, 32], strides = [1, 1]} : vector<8x96xf32> to vector<8x32xf32>
    %110 = arith.mulf %106, %109 : vector<8x32xf32>
    %111 = arith.addf %108, %110 : vector<8x32xf32>
    %112 = math.tanh %111 : vector<8x32xf32>
    %cst_42 = arith.constant 1.000000e+00 : f32
    %113 = vector.broadcast %cst_42 : f32 to vector<8x32xf32>
    %114 = arith.subf %113, %107 : vector<8x32xf32>
    %115 = arith.mulf %114, %112 : vector<8x32xf32>
    %116 = arith.mulf %107, %58 : vector<8x32xf32>
    %117 = arith.addf %115, %116 : vector<8x32xf32>
    %118 = vector.shape_cast %87 : vector<8x1xi1> to vector<8x1xi1>
    %119 = vector.broadcast %118 : vector<8x1xi1> to vector<8x32xi1>
    %120 = arith.select %119, %117, %58 : vector<8x32xi1>, vector<8x32xf32>
    %121 = arith.truncf %85 : vector<8x32xf32> to vector<8x32xbf16>
    %cst_43 = arith.constant dense<0.000000e+00> : vector<8x96xf32>
    %122 = tpu.matmul %121, %18, %cst_43 {dimension_numbers = #tpu.dot_dimension_numbers<[1], [0], [0], [1], [0, 0, 1, 1], [], []>} : vector<8x32xbf16>, vector<32x96xbf16>, vector<8x96xf32> -> vector<8x96xf32>
    %123 = vector.broadcast %22 : vector<1x96xf32> to vector<8x96xf32>
    %124 = arith.addf %122, %123 : vector<8x96xf32>
    %125 = vector.extract_strided_slice %93 {offsets = [0, 0], sizes = [8, 64], strides = [1, 1]} : vector<8x96xf32> to vector<8x64xf32>
    %126 = vector.extract_strided_slice %124 {offsets = [0, 0], sizes = [8, 64], strides = [1, 1]} : vector<8x96xf32> to vector<8x64xf32>
    %127 = arith.addf %125, %126 : vector<8x64xf32>
    %128 = arith.negf %127 : vector<8x64xf32>
    %129 = math.exp %128 : vector<8x64xf32>
    %cst_44 = arith.constant 1.000000e+00 : f32
    %130 = vector.broadcast %cst_44 : f32 to vector<8x64xf32>
    %131 = arith.addf %130, %129 : vector<8x64xf32>
    %132 = arith.divf %130, %131 : vector<8x64xf32>
    %133 = vector.extract_strided_slice %132 {offsets = [0, 0], sizes = [8, 32], strides = [1, 1]} : vector<8x64xf32> to vector<8x32xf32>
    %134 = vector.extract_strided_slice %132 {offsets = [0, 32], sizes = [8, 32], strides = [1, 1]} : vector<8x64xf32> to vector<8x32xf32>
    %135 = vector.extract_strided_slice %93 {offsets = [0, 64], sizes = [8, 32], strides = [1, 1]} : vector<8x96xf32> to vector<8x32xf32>
    %136 = vector.extract_strided_slice %124 {offsets = [0, 64], sizes = [8, 32], strides = [1, 1]} : vector<8x96xf32> to vector<8x32xf32>
    %137 = arith.mulf %133, %136 : vector<8x32xf32>
    %138 = arith.addf %135, %137 : vector<8x32xf32>
    %139 = math.tanh %138 : vector<8x32xf32>
    %cst_45 = arith.constant 1.000000e+00 : f32
    %140 = vector.broadcast %cst_45 : f32 to vector<8x32xf32>
    %141 = arith.subf %140, %134 : vector<8x32xf32>
    %142 = arith.mulf %141, %139 : vector<8x32xf32>
    %143 = arith.mulf %134, %85 : vector<8x32xf32>
    %144 = arith.addf %142, %143 : vector<8x32xf32>
    %145 = vector.shape_cast %89 : vector<8x1xi1> to vector<8x1xi1>
    %146 = vector.broadcast %145 : vector<8x1xi1> to vector<8x32xi1>
    %147 = arith.select %146, %144, %85 : vector<8x32xi1>, vector<8x32xf32>
    %c2_i32 = arith.constant 2 : i32
    %148 = vector.broadcast %c2_i32 : i32 to vector<8x1xi32>
    %149 = arith.cmpi sgt, %1, %148 : vector<8x1xi32>
    %c5_i32 = arith.constant 5 : i32
    %150 = vector.broadcast %c5_i32 : i32 to vector<8x1xi32>
    %151 = arith.cmpi sgt, %1, %150 : vector<8x1xi32>
    %c0_46 = arith.constant 0 : index
    %c16 = arith.constant 16 : index
    %c0_47 = arith.constant 0 : index
    %152 = vector.load %arg11[%c0_46, %c16, %c0_47] : memref<2x64x96xf32, #tpu.memory_space<vmem>>, vector<1x8x96xf32>
    %153 = vector.shape_cast %152 : vector<1x8x96xf32> to vector<8x96xf32>
    %c1_48 = arith.constant 1 : index
    %c40 = arith.constant 40 : index
    %c0_49 = arith.constant 0 : index
    %154 = vector.load %arg11[%c1_48, %c40, %c0_49] : memref<2x64x96xf32, #tpu.memory_space<vmem>>, vector<1x8x96xf32>
    %155 = vector.shape_cast %154 : vector<1x8x96xf32> to vector<8x96xf32>
    %156 = arith.truncf %120 : vector<8x32xf32> to vector<8x32xbf16>
    %cst_50 = arith.constant dense<0.000000e+00> : vector<8x96xf32>
    %157 = tpu.matmul %156, %16, %cst_50 {dimension_numbers = #tpu.dot_dimension_numbers<[1], [0], [0], [1], [0, 0, 1, 1], [], []>} : vector<8x32xbf16>, vector<32x96xbf16>, vector<8x96xf32> -> vector<8x96xf32>
    %158 = vector.broadcast %20 : vector<1x96xf32> to vector<8x96xf32>
    %159 = arith.addf %157, %158 : vector<8x96xf32>
    %160 = vector.extract_strided_slice %153 {offsets = [0, 0], sizes = [8, 64], strides = [1, 1]} : vector<8x96xf32> to vector<8x64xf32>
    %161 = vector.extract_strided_slice %159 {offsets = [0, 0], sizes = [8, 64], strides = [1, 1]} : vector<8x96xf32> to vector<8x64xf32>
    %162 = arith.addf %160, %161 : vector<8x64xf32>
    %163 = arith.negf %162 : vector<8x64xf32>
    %164 = math.exp %163 : vector<8x64xf32>
    %cst_51 = arith.constant 1.000000e+00 : f32
    %165 = vector.broadcast %cst_51 : f32 to vector<8x64xf32>
    %166 = arith.addf %165, %164 : vector<8x64xf32>
    %167 = arith.divf %165, %166 : vector<8x64xf32>
    %168 = vector.extract_strided_slice %167 {offsets = [0, 0], sizes = [8, 32], strides = [1, 1]} : vector<8x64xf32> to vector<8x32xf32>
    %169 = vector.extract_strided_slice %167 {offsets = [0, 32], sizes = [8, 32], strides = [1, 1]} : vector<8x64xf32> to vector<8x32xf32>
    %170 = vector.extract_strided_slice %153 {offsets = [0, 64], sizes = [8, 32], strides = [1, 1]} : vector<8x96xf32> to vector<8x32xf32>
    %171 = vector.extract_strided_slice %159 {offsets = [0, 64], sizes = [8, 32], strides = [1, 1]} : vector<8x96xf32> to vector<8x32xf32>
    %172 = arith.mulf %168, %171 : vector<8x32xf32>
    %173 = arith.addf %170, %172 : vector<8x32xf32>
    %174 = math.tanh %173 : vector<8x32xf32>
    %cst_52 = arith.constant 1.000000e+00 : f32
    %175 = vector.broadcast %cst_52 : f32 to vector<8x32xf32>
    %176 = arith.subf %175, %169 : vector<8x32xf32>
    %177 = arith.mulf %176, %174 : vector<8x32xf32>
    %178 = arith.mulf %169, %120 : vector<8x32xf32>
    %179 = arith.addf %177, %178 : vector<8x32xf32>
    %180 = vector.shape_cast %149 : vector<8x1xi1> to vector<8x1xi1>
    %181 = vector.broadcast %180 : vector<8x1xi1> to vector<8x32xi1>
    %182 = arith.select %181, %179, %120 : vector<8x32xi1>, vector<8x32xf32>
    %183 = arith.truncf %147 : vector<8x32xf32> to vector<8x32xbf16>
    %cst_53 = arith.constant dense<0.000000e+00> : vector<8x96xf32>
    %184 = tpu.matmul %183, %18, %cst_53 {dimension_numbers = #tpu.dot_dimension_numbers<[1], [0], [0], [1], [0, 0, 1, 1], [], []>} : vector<8x32xbf16>, vector<32x96xbf16>, vector<8x96xf32> -> vector<8x96xf32>
    %185 = vector.broadcast %22 : vector<1x96xf32> to vector<8x96xf32>
    %186 = arith.addf %184, %185 : vector<8x96xf32>
    %187 = vector.extract_strided_slice %155 {offsets = [0, 0], sizes = [8, 64], strides = [1, 1]} : vector<8x96xf32> to vector<8x64xf32>
    %188 = vector.extract_strided_slice %186 {offsets = [0, 0], sizes = [8, 64], strides = [1, 1]} : vector<8x96xf32> to vector<8x64xf32>
    %189 = arith.addf %187, %188 : vector<8x64xf32>
    %190 = arith.negf %189 : vector<8x64xf32>
    %191 = math.exp %190 : vector<8x64xf32>
    %cst_54 = arith.constant 1.000000e+00 : f32
    %192 = vector.broadcast %cst_54 : f32 to vector<8x64xf32>
    %193 = arith.addf %192, %191 : vector<8x64xf32>
    %194 = arith.divf %192, %193 : vector<8x64xf32>
    %195 = vector.extract_strided_slice %194 {offsets = [0, 0], sizes = [8, 32], strides = [1, 1]} : vector<8x64xf32> to vector<8x32xf32>
    %196 = vector.extract_strided_slice %194 {offsets = [0, 32], sizes = [8, 32], strides = [1, 1]} : vector<8x64xf32> to vector<8x32xf32>
    %197 = vector.extract_strided_slice %155 {offsets = [0, 64], sizes = [8, 32], strides = [1, 1]} : vector<8x96xf32> to vector<8x32xf32>
    %198 = vector.extract_strided_slice %186 {offsets = [0, 64], sizes = [8, 32], strides = [1, 1]} : vector<8x96xf32> to vector<8x32xf32>
    %199 = arith.mulf %195, %198 : vector<8x32xf32>
    %200 = arith.addf %197, %199 : vector<8x32xf32>
    %201 = math.tanh %200 : vector<8x32xf32>
    %cst_55 = arith.constant 1.000000e+00 : f32
    %202 = vector.broadcast %cst_55 : f32 to vector<8x32xf32>
    %203 = arith.subf %202, %196 : vector<8x32xf32>
    %204 = arith.mulf %203, %201 : vector<8x32xf32>
    %205 = arith.mulf %196, %147 : vector<8x32xf32>
    %206 = arith.addf %204, %205 : vector<8x32xf32>
    %207 = vector.shape_cast %151 : vector<8x1xi1> to vector<8x1xi1>
    %208 = vector.broadcast %207 : vector<8x1xi1> to vector<8x32xi1>
    %209 = arith.select %208, %206, %147 : vector<8x32xi1>, vector<8x32xf32>
    %c3_i32 = arith.constant 3 : i32
    %210 = vector.broadcast %c3_i32 : i32 to vector<8x1xi32>
    %211 = arith.cmpi sgt, %1, %210 : vector<8x1xi32>
    %c4_i32 = arith.constant 4 : i32
    %212 = vector.broadcast %c4_i32 : i32 to vector<8x1xi32>
    %213 = arith.cmpi sgt, %1, %212 : vector<8x1xi32>
    %c0_56 = arith.constant 0 : index
    %c24 = arith.constant 24 : index
    %c0_57 = arith.constant 0 : index
    %214 = vector.load %arg11[%c0_56, %c24, %c0_57] : memref<2x64x96xf32, #tpu.memory_space<vmem>>, vector<1x8x96xf32>
    %215 = vector.shape_cast %214 : vector<1x8x96xf32> to vector<8x96xf32>
    %c1_58 = arith.constant 1 : index
    %c32 = arith.constant 32 : index
    %c0_59 = arith.constant 0 : index
    %216 = vector.load %arg11[%c1_58, %c32, %c0_59] : memref<2x64x96xf32, #tpu.memory_space<vmem>>, vector<1x8x96xf32>
    %217 = vector.shape_cast %216 : vector<1x8x96xf32> to vector<8x96xf32>
    %218 = arith.truncf %182 : vector<8x32xf32> to vector<8x32xbf16>
    %cst_60 = arith.constant dense<0.000000e+00> : vector<8x96xf32>
    %219 = tpu.matmul %218, %16, %cst_60 {dimension_numbers = #tpu.dot_dimension_numbers<[1], [0], [0], [1], [0, 0, 1, 1], [], []>} : vector<8x32xbf16>, vector<32x96xbf16>, vector<8x96xf32> -> vector<8x96xf32>
    %220 = vector.broadcast %20 : vector<1x96xf32> to vector<8x96xf32>
    %221 = arith.addf %219, %220 : vector<8x96xf32>
    %222 = vector.extract_strided_slice %215 {offsets = [0, 0], sizes = [8, 64], strides = [1, 1]} : vector<8x96xf32> to vector<8x64xf32>
    %223 = vector.extract_strided_slice %221 {offsets = [0, 0], sizes = [8, 64], strides = [1, 1]} : vector<8x96xf32> to vector<8x64xf32>
    %224 = arith.addf %222, %223 : vector<8x64xf32>
    %225 = arith.negf %224 : vector<8x64xf32>
    %226 = math.exp %225 : vector<8x64xf32>
    %cst_61 = arith.constant 1.000000e+00 : f32
    %227 = vector.broadcast %cst_61 : f32 to vector<8x64xf32>
    %228 = arith.addf %227, %226 : vector<8x64xf32>
    %229 = arith.divf %227, %228 : vector<8x64xf32>
    %230 = vector.extract_strided_slice %229 {offsets = [0, 0], sizes = [8, 32], strides = [1, 1]} : vector<8x64xf32> to vector<8x32xf32>
    %231 = vector.extract_strided_slice %229 {offsets = [0, 32], sizes = [8, 32], strides = [1, 1]} : vector<8x64xf32> to vector<8x32xf32>
    %232 = vector.extract_strided_slice %215 {offsets = [0, 64], sizes = [8, 32], strides = [1, 1]} : vector<8x96xf32> to vector<8x32xf32>
    %233 = vector.extract_strided_slice %221 {offsets = [0, 64], sizes = [8, 32], strides = [1, 1]} : vector<8x96xf32> to vector<8x32xf32>
    %234 = arith.mulf %230, %233 : vector<8x32xf32>
    %235 = arith.addf %232, %234 : vector<8x32xf32>
    %236 = math.tanh %235 : vector<8x32xf32>
    %cst_62 = arith.constant 1.000000e+00 : f32
    %237 = vector.broadcast %cst_62 : f32 to vector<8x32xf32>
    %238 = arith.subf %237, %231 : vector<8x32xf32>
    %239 = arith.mulf %238, %236 : vector<8x32xf32>
    %240 = arith.mulf %231, %182 : vector<8x32xf32>
    %241 = arith.addf %239, %240 : vector<8x32xf32>
    %242 = vector.shape_cast %211 : vector<8x1xi1> to vector<8x1xi1>
    %243 = vector.broadcast %242 : vector<8x1xi1> to vector<8x32xi1>
    %244 = arith.select %243, %241, %182 : vector<8x32xi1>, vector<8x32xf32>
    %245 = arith.truncf %209 : vector<8x32xf32> to vector<8x32xbf16>
    %cst_63 = arith.constant dense<0.000000e+00> : vector<8x96xf32>
    %246 = tpu.matmul %245, %18, %cst_63 {dimension_numbers = #tpu.dot_dimension_numbers<[1], [0], [0], [1], [0, 0, 1, 1], [], []>} : vector<8x32xbf16>, vector<32x96xbf16>, vector<8x96xf32> -> vector<8x96xf32>
    %247 = vector.broadcast %22 : vector<1x96xf32> to vector<8x96xf32>
    %248 = arith.addf %246, %247 : vector<8x96xf32>
    %249 = vector.extract_strided_slice %217 {offsets = [0, 0], sizes = [8, 64], strides = [1, 1]} : vector<8x96xf32> to vector<8x64xf32>
    %250 = vector.extract_strided_slice %248 {offsets = [0, 0], sizes = [8, 64], strides = [1, 1]} : vector<8x96xf32> to vector<8x64xf32>
    %251 = arith.addf %249, %250 : vector<8x64xf32>
    %252 = arith.negf %251 : vector<8x64xf32>
    %253 = math.exp %252 : vector<8x64xf32>
    %cst_64 = arith.constant 1.000000e+00 : f32
    %254 = vector.broadcast %cst_64 : f32 to vector<8x64xf32>
    %255 = arith.addf %254, %253 : vector<8x64xf32>
    %256 = arith.divf %254, %255 : vector<8x64xf32>
    %257 = vector.extract_strided_slice %256 {offsets = [0, 0], sizes = [8, 32], strides = [1, 1]} : vector<8x64xf32> to vector<8x32xf32>
    %258 = vector.extract_strided_slice %256 {offsets = [0, 32], sizes = [8, 32], strides = [1, 1]} : vector<8x64xf32> to vector<8x32xf32>
    %259 = vector.extract_strided_slice %217 {offsets = [0, 64], sizes = [8, 32], strides = [1, 1]} : vector<8x96xf32> to vector<8x32xf32>
    %260 = vector.extract_strided_slice %248 {offsets = [0, 64], sizes = [8, 32], strides = [1, 1]} : vector<8x96xf32> to vector<8x32xf32>
    %261 = arith.mulf %257, %260 : vector<8x32xf32>
    %262 = arith.addf %259, %261 : vector<8x32xf32>
    %263 = math.tanh %262 : vector<8x32xf32>
    %cst_65 = arith.constant 1.000000e+00 : f32
    %264 = vector.broadcast %cst_65 : f32 to vector<8x32xf32>
    %265 = arith.subf %264, %258 : vector<8x32xf32>
    %266 = arith.mulf %265, %263 : vector<8x32xf32>
    %267 = arith.mulf %258, %209 : vector<8x32xf32>
    %268 = arith.addf %266, %267 : vector<8x32xf32>
    %269 = vector.shape_cast %213 : vector<8x1xi1> to vector<8x1xi1>
    %270 = vector.broadcast %269 : vector<8x1xi1> to vector<8x32xi1>
    %271 = arith.select %270, %268, %209 : vector<8x32xi1>, vector<8x32xf32>
    %c4_i32_66 = arith.constant 4 : i32
    %272 = vector.broadcast %c4_i32_66 : i32 to vector<8x1xi32>
    %273 = arith.cmpi sgt, %1, %272 : vector<8x1xi32>
    %c3_i32_67 = arith.constant 3 : i32
    %274 = vector.broadcast %c3_i32_67 : i32 to vector<8x1xi32>
    %275 = arith.cmpi sgt, %1, %274 : vector<8x1xi32>
    %c0_68 = arith.constant 0 : index
    %c32_69 = arith.constant 32 : index
    %c0_70 = arith.constant 0 : index
    %276 = vector.load %arg11[%c0_68, %c32_69, %c0_70] : memref<2x64x96xf32, #tpu.memory_space<vmem>>, vector<1x8x96xf32>
    %277 = vector.shape_cast %276 : vector<1x8x96xf32> to vector<8x96xf32>
    %c1_71 = arith.constant 1 : index
    %c24_72 = arith.constant 24 : index
    %c0_73 = arith.constant 0 : index
    %278 = vector.load %arg11[%c1_71, %c24_72, %c0_73] : memref<2x64x96xf32, #tpu.memory_space<vmem>>, vector<1x8x96xf32>
    %279 = vector.shape_cast %278 : vector<1x8x96xf32> to vector<8x96xf32>
    %280 = arith.truncf %244 : vector<8x32xf32> to vector<8x32xbf16>
    %cst_74 = arith.constant dense<0.000000e+00> : vector<8x96xf32>
    %281 = tpu.matmul %280, %16, %cst_74 {dimension_numbers = #tpu.dot_dimension_numbers<[1], [0], [0], [1], [0, 0, 1, 1], [], []>} : vector<8x32xbf16>, vector<32x96xbf16>, vector<8x96xf32> -> vector<8x96xf32>
    %282 = vector.broadcast %20 : vector<1x96xf32> to vector<8x96xf32>
    %283 = arith.addf %281, %282 : vector<8x96xf32>
    %284 = vector.extract_strided_slice %277 {offsets = [0, 0], sizes = [8, 64], strides = [1, 1]} : vector<8x96xf32> to vector<8x64xf32>
    %285 = vector.extract_strided_slice %283 {offsets = [0, 0], sizes = [8, 64], strides = [1, 1]} : vector<8x96xf32> to vector<8x64xf32>
    %286 = arith.addf %284, %285 : vector<8x64xf32>
    %287 = arith.negf %286 : vector<8x64xf32>
    %288 = math.exp %287 : vector<8x64xf32>
    %cst_75 = arith.constant 1.000000e+00 : f32
    %289 = vector.broadcast %cst_75 : f32 to vector<8x64xf32>
    %290 = arith.addf %289, %288 : vector<8x64xf32>
    %291 = arith.divf %289, %290 : vector<8x64xf32>
    %292 = vector.extract_strided_slice %291 {offsets = [0, 0], sizes = [8, 32], strides = [1, 1]} : vector<8x64xf32> to vector<8x32xf32>
    %293 = vector.extract_strided_slice %291 {offsets = [0, 32], sizes = [8, 32], strides = [1, 1]} : vector<8x64xf32> to vector<8x32xf32>
    %294 = vector.extract_strided_slice %277 {offsets = [0, 64], sizes = [8, 32], strides = [1, 1]} : vector<8x96xf32> to vector<8x32xf32>
    %295 = vector.extract_strided_slice %283 {offsets = [0, 64], sizes = [8, 32], strides = [1, 1]} : vector<8x96xf32> to vector<8x32xf32>
    %296 = arith.mulf %292, %295 : vector<8x32xf32>
    %297 = arith.addf %294, %296 : vector<8x32xf32>
    %298 = math.tanh %297 : vector<8x32xf32>
    %cst_76 = arith.constant 1.000000e+00 : f32
    %299 = vector.broadcast %cst_76 : f32 to vector<8x32xf32>
    %300 = arith.subf %299, %293 : vector<8x32xf32>
    %301 = arith.mulf %300, %298 : vector<8x32xf32>
    %302 = arith.mulf %293, %244 : vector<8x32xf32>
    %303 = arith.addf %301, %302 : vector<8x32xf32>
    %304 = vector.shape_cast %273 : vector<8x1xi1> to vector<8x1xi1>
    %305 = vector.broadcast %304 : vector<8x1xi1> to vector<8x32xi1>
    %306 = arith.select %305, %303, %244 : vector<8x32xi1>, vector<8x32xf32>
    %307 = arith.truncf %271 : vector<8x32xf32> to vector<8x32xbf16>
    %cst_77 = arith.constant dense<0.000000e+00> : vector<8x96xf32>
    %308 = tpu.matmul %307, %18, %cst_77 {dimension_numbers = #tpu.dot_dimension_numbers<[1], [0], [0], [1], [0, 0, 1, 1], [], []>} : vector<8x32xbf16>, vector<32x96xbf16>, vector<8x96xf32> -> vector<8x96xf32>
    %309 = vector.broadcast %22 : vector<1x96xf32> to vector<8x96xf32>
    %310 = arith.addf %308, %309 : vector<8x96xf32>
    %311 = vector.extract_strided_slice %279 {offsets = [0, 0], sizes = [8, 64], strides = [1, 1]} : vector<8x96xf32> to vector<8x64xf32>
    %312 = vector.extract_strided_slice %310 {offsets = [0, 0], sizes = [8, 64], strides = [1, 1]} : vector<8x96xf32> to vector<8x64xf32>
    %313 = arith.addf %311, %312 : vector<8x64xf32>
    %314 = arith.negf %313 : vector<8x64xf32>
    %315 = math.exp %314 : vector<8x64xf32>
    %cst_78 = arith.constant 1.000000e+00 : f32
    %316 = vector.broadcast %cst_78 : f32 to vector<8x64xf32>
    %317 = arith.addf %316, %315 : vector<8x64xf32>
    %318 = arith.divf %316, %317 : vector<8x64xf32>
    %319 = vector.extract_strided_slice %318 {offsets = [0, 0], sizes = [8, 32], strides = [1, 1]} : vector<8x64xf32> to vector<8x32xf32>
    %320 = vector.extract_strided_slice %318 {offsets = [0, 32], sizes = [8, 32], strides = [1, 1]} : vector<8x64xf32> to vector<8x32xf32>
    %321 = vector.extract_strided_slice %279 {offsets = [0, 64], sizes = [8, 32], strides = [1, 1]} : vector<8x96xf32> to vector<8x32xf32>
    %322 = vector.extract_strided_slice %310 {offsets = [0, 64], sizes = [8, 32], strides = [1, 1]} : vector<8x96xf32> to vector<8x32xf32>
    %323 = arith.mulf %319, %322 : vector<8x32xf32>
    %324 = arith.addf %321, %323 : vector<8x32xf32>
    %325 = math.tanh %324 : vector<8x32xf32>
    %cst_79 = arith.constant 1.000000e+00 : f32
    %326 = vector.broadcast %cst_79 : f32 to vector<8x32xf32>
    %327 = arith.subf %326, %320 : vector<8x32xf32>
    %328 = arith.mulf %327, %325 : vector<8x32xf32>
    %329 = arith.mulf %320, %271 : vector<8x32xf32>
    %330 = arith.addf %328, %329 : vector<8x32xf32>
    %331 = vector.shape_cast %275 : vector<8x1xi1> to vector<8x1xi1>
    %332 = vector.broadcast %331 : vector<8x1xi1> to vector<8x32xi1>
    %333 = arith.select %332, %330, %271 : vector<8x32xi1>, vector<8x32xf32>
    %c5_i32_80 = arith.constant 5 : i32
    %334 = vector.broadcast %c5_i32_80 : i32 to vector<8x1xi32>
    %335 = arith.cmpi sgt, %1, %334 : vector<8x1xi32>
    %c2_i32_81 = arith.constant 2 : i32
    %336 = vector.broadcast %c2_i32_81 : i32 to vector<8x1xi32>
    %337 = arith.cmpi sgt, %1, %336 : vector<8x1xi32>
    %c0_82 = arith.constant 0 : index
    %c40_83 = arith.constant 40 : index
    %c0_84 = arith.constant 0 : index
    %338 = vector.load %arg11[%c0_82, %c40_83, %c0_84] : memref<2x64x96xf32, #tpu.memory_space<vmem>>, vector<1x8x96xf32>
    %339 = vector.shape_cast %338 : vector<1x8x96xf32> to vector<8x96xf32>
    %c1_85 = arith.constant 1 : index
    %c16_86 = arith.constant 16 : index
    %c0_87 = arith.constant 0 : index
    %340 = vector.load %arg11[%c1_85, %c16_86, %c0_87] : memref<2x64x96xf32, #tpu.memory_space<vmem>>, vector<1x8x96xf32>
    %341 = vector.shape_cast %340 : vector<1x8x96xf32> to vector<8x96xf32>
    %342 = arith.truncf %306 : vector<8x32xf32> to vector<8x32xbf16>
    %cst_88 = arith.constant dense<0.000000e+00> : vector<8x96xf32>
    %343 = tpu.matmul %342, %16, %cst_88 {dimension_numbers = #tpu.dot_dimension_numbers<[1], [0], [0], [1], [0, 0, 1, 1], [], []>} : vector<8x32xbf16>, vector<32x96xbf16>, vector<8x96xf32> -> vector<8x96xf32>
    %344 = vector.broadcast %20 : vector<1x96xf32> to vector<8x96xf32>
    %345 = arith.addf %343, %344 : vector<8x96xf32>
    %346 = vector.extract_strided_slice %339 {offsets = [0, 0], sizes = [8, 64], strides = [1, 1]} : vector<8x96xf32> to vector<8x64xf32>
    %347 = vector.extract_strided_slice %345 {offsets = [0, 0], sizes = [8, 64], strides = [1, 1]} : vector<8x96xf32> to vector<8x64xf32>
    %348 = arith.addf %346, %347 : vector<8x64xf32>
    %349 = arith.negf %348 : vector<8x64xf32>
    %350 = math.exp %349 : vector<8x64xf32>
    %cst_89 = arith.constant 1.000000e+00 : f32
    %351 = vector.broadcast %cst_89 : f32 to vector<8x64xf32>
    %352 = arith.addf %351, %350 : vector<8x64xf32>
    %353 = arith.divf %351, %352 : vector<8x64xf32>
    %354 = vector.extract_strided_slice %353 {offsets = [0, 0], sizes = [8, 32], strides = [1, 1]} : vector<8x64xf32> to vector<8x32xf32>
    %355 = vector.extract_strided_slice %353 {offsets = [0, 32], sizes = [8, 32], strides = [1, 1]} : vector<8x64xf32> to vector<8x32xf32>
    %356 = vector.extract_strided_slice %339 {offsets = [0, 64], sizes = [8, 32], strides = [1, 1]} : vector<8x96xf32> to vector<8x32xf32>
    %357 = vector.extract_strided_slice %345 {offsets = [0, 64], sizes = [8, 32], strides = [1, 1]} : vector<8x96xf32> to vector<8x32xf32>
    %358 = arith.mulf %354, %357 : vector<8x32xf32>
    %359 = arith.addf %356, %358 : vector<8x32xf32>
    %360 = math.tanh %359 : vector<8x32xf32>
    %cst_90 = arith.constant 1.000000e+00 : f32
    %361 = vector.broadcast %cst_90 : f32 to vector<8x32xf32>
    %362 = arith.subf %361, %355 : vector<8x32xf32>
    %363 = arith.mulf %362, %360 : vector<8x32xf32>
    %364 = arith.mulf %355, %306 : vector<8x32xf32>
    %365 = arith.addf %363, %364 : vector<8x32xf32>
    %366 = vector.shape_cast %335 : vector<8x1xi1> to vector<8x1xi1>
    %367 = vector.broadcast %366 : vector<8x1xi1> to vector<8x32xi1>
    %368 = arith.select %367, %365, %306 : vector<8x32xi1>, vector<8x32xf32>
    %369 = arith.truncf %333 : vector<8x32xf32> to vector<8x32xbf16>
    %cst_91 = arith.constant dense<0.000000e+00> : vector<8x96xf32>
    %370 = tpu.matmul %369, %18, %cst_91 {dimension_numbers = #tpu.dot_dimension_numbers<[1], [0], [0], [1], [0, 0, 1, 1], [], []>} : vector<8x32xbf16>, vector<32x96xbf16>, vector<8x96xf32> -> vector<8x96xf32>
    %371 = vector.broadcast %22 : vector<1x96xf32> to vector<8x96xf32>
    %372 = arith.addf %370, %371 : vector<8x96xf32>
    %373 = vector.extract_strided_slice %341 {offsets = [0, 0], sizes = [8, 64], strides = [1, 1]} : vector<8x96xf32> to vector<8x64xf32>
    %374 = vector.extract_strided_slice %372 {offsets = [0, 0], sizes = [8, 64], strides = [1, 1]} : vector<8x96xf32> to vector<8x64xf32>
    %375 = arith.addf %373, %374 : vector<8x64xf32>
    %376 = arith.negf %375 : vector<8x64xf32>
    %377 = math.exp %376 : vector<8x64xf32>
    %cst_92 = arith.constant 1.000000e+00 : f32
    %378 = vector.broadcast %cst_92 : f32 to vector<8x64xf32>
    %379 = arith.addf %378, %377 : vector<8x64xf32>
    %380 = arith.divf %378, %379 : vector<8x64xf32>
    %381 = vector.extract_strided_slice %380 {offsets = [0, 0], sizes = [8, 32], strides = [1, 1]} : vector<8x64xf32> to vector<8x32xf32>
    %382 = vector.extract_strided_slice %380 {offsets = [0, 32], sizes = [8, 32], strides = [1, 1]} : vector<8x64xf32> to vector<8x32xf32>
    %383 = vector.extract_strided_slice %341 {offsets = [0, 64], sizes = [8, 32], strides = [1, 1]} : vector<8x96xf32> to vector<8x32xf32>
    %384 = vector.extract_strided_slice %372 {offsets = [0, 64], sizes = [8, 32], strides = [1, 1]} : vector<8x96xf32> to vector<8x32xf32>
    %385 = arith.mulf %381, %384 : vector<8x32xf32>
    %386 = arith.addf %383, %385 : vector<8x32xf32>
    %387 = math.tanh %386 : vector<8x32xf32>
    %cst_93 = arith.constant 1.000000e+00 : f32
    %388 = vector.broadcast %cst_93 : f32 to vector<8x32xf32>
    %389 = arith.subf %388, %382 : vector<8x32xf32>
    %390 = arith.mulf %389, %387 : vector<8x32xf32>
    %391 = arith.mulf %382, %333 : vector<8x32xf32>
    %392 = arith.addf %390, %391 : vector<8x32xf32>
    %393 = vector.shape_cast %337 : vector<8x1xi1> to vector<8x1xi1>
    %394 = vector.broadcast %393 : vector<8x1xi1> to vector<8x32xi1>
    %395 = arith.select %394, %392, %333 : vector<8x32xi1>, vector<8x32xf32>
    %c6_i32_94 = arith.constant 6 : i32
    %396 = vector.broadcast %c6_i32_94 : i32 to vector<8x1xi32>
    %397 = arith.cmpi sgt, %1, %396 : vector<8x1xi32>
    %c1_i32_95 = arith.constant 1 : i32
    %398 = vector.broadcast %c1_i32_95 : i32 to vector<8x1xi32>
    %399 = arith.cmpi sgt, %1, %398 : vector<8x1xi32>
    %c0_96 = arith.constant 0 : index
    %c48_97 = arith.constant 48 : index
    %c0_98 = arith.constant 0 : index
    %400 = vector.load %arg11[%c0_96, %c48_97, %c0_98] : memref<2x64x96xf32, #tpu.memory_space<vmem>>, vector<1x8x96xf32>
    %401 = vector.shape_cast %400 : vector<1x8x96xf32> to vector<8x96xf32>
    %c1_99 = arith.constant 1 : index
    %c8_100 = arith.constant 8 : index
    %c0_101 = arith.constant 0 : index
    %402 = vector.load %arg11[%c1_99, %c8_100, %c0_101] : memref<2x64x96xf32, #tpu.memory_space<vmem>>, vector<1x8x96xf32>
    %403 = vector.shape_cast %402 : vector<1x8x96xf32> to vector<8x96xf32>
    %404 = arith.truncf %368 : vector<8x32xf32> to vector<8x32xbf16>
    %cst_102 = arith.constant dense<0.000000e+00> : vector<8x96xf32>
    %405 = tpu.matmul %404, %16, %cst_102 {dimension_numbers = #tpu.dot_dimension_numbers<[1], [0], [0], [1], [0, 0, 1, 1], [], []>} : vector<8x32xbf16>, vector<32x96xbf16>, vector<8x96xf32> -> vector<8x96xf32>
    %406 = vector.broadcast %20 : vector<1x96xf32> to vector<8x96xf32>
    %407 = arith.addf %405, %406 : vector<8x96xf32>
    %408 = vector.extract_strided_slice %401 {offsets = [0, 0], sizes = [8, 64], strides = [1, 1]} : vector<8x96xf32> to vector<8x64xf32>
    %409 = vector.extract_strided_slice %407 {offsets = [0, 0], sizes = [8, 64], strides = [1, 1]} : vector<8x96xf32> to vector<8x64xf32>
    %410 = arith.addf %408, %409 : vector<8x64xf32>
    %411 = arith.negf %410 : vector<8x64xf32>
    %412 = math.exp %411 : vector<8x64xf32>
    %cst_103 = arith.constant 1.000000e+00 : f32
    %413 = vector.broadcast %cst_103 : f32 to vector<8x64xf32>
    %414 = arith.addf %413, %412 : vector<8x64xf32>
    %415 = arith.divf %413, %414 : vector<8x64xf32>
    %416 = vector.extract_strided_slice %415 {offsets = [0, 0], sizes = [8, 32], strides = [1, 1]} : vector<8x64xf32> to vector<8x32xf32>
    %417 = vector.extract_strided_slice %415 {offsets = [0, 32], sizes = [8, 32], strides = [1, 1]} : vector<8x64xf32> to vector<8x32xf32>
    %418 = vector.extract_strided_slice %401 {offsets = [0, 64], sizes = [8, 32], strides = [1, 1]} : vector<8x96xf32> to vector<8x32xf32>
    %419 = vector.extract_strided_slice %407 {offsets = [0, 64], sizes = [8, 32], strides = [1, 1]} : vector<8x96xf32> to vector<8x32xf32>
    %420 = arith.mulf %416, %419 : vector<8x32xf32>
    %421 = arith.addf %418, %420 : vector<8x32xf32>
    %422 = math.tanh %421 : vector<8x32xf32>
    %cst_104 = arith.constant 1.000000e+00 : f32
    %423 = vector.broadcast %cst_104 : f32 to vector<8x32xf32>
    %424 = arith.subf %423, %417 : vector<8x32xf32>
    %425 = arith.mulf %424, %422 : vector<8x32xf32>
    %426 = arith.mulf %417, %368 : vector<8x32xf32>
    %427 = arith.addf %425, %426 : vector<8x32xf32>
    %428 = vector.shape_cast %397 : vector<8x1xi1> to vector<8x1xi1>
    %429 = vector.broadcast %428 : vector<8x1xi1> to vector<8x32xi1>
    %430 = arith.select %429, %427, %368 : vector<8x32xi1>, vector<8x32xf32>
    %431 = arith.truncf %395 : vector<8x32xf32> to vector<8x32xbf16>
    %cst_105 = arith.constant dense<0.000000e+00> : vector<8x96xf32>
    %432 = tpu.matmul %431, %18, %cst_105 {dimension_numbers = #tpu.dot_dimension_numbers<[1], [0], [0], [1], [0, 0, 1, 1], [], []>} : vector<8x32xbf16>, vector<32x96xbf16>, vector<8x96xf32> -> vector<8x96xf32>
    %433 = vector.broadcast %22 : vector<1x96xf32> to vector<8x96xf32>
    %434 = arith.addf %432, %433 : vector<8x96xf32>
    %435 = vector.extract_strided_slice %403 {offsets = [0, 0], sizes = [8, 64], strides = [1, 1]} : vector<8x96xf32> to vector<8x64xf32>
    %436 = vector.extract_strided_slice %434 {offsets = [0, 0], sizes = [8, 64], strides = [1, 1]} : vector<8x96xf32> to vector<8x64xf32>
    %437 = arith.addf %435, %436 : vector<8x64xf32>
    %438 = arith.negf %437 : vector<8x64xf32>
    %439 = math.exp %438 : vector<8x64xf32>
    %cst_106 = arith.constant 1.000000e+00 : f32
    %440 = vector.broadcast %cst_106 : f32 to vector<8x64xf32>
    %441 = arith.addf %440, %439 : vector<8x64xf32>
    %442 = arith.divf %440, %441 : vector<8x64xf32>
    %443 = vector.extract_strided_slice %442 {offsets = [0, 0], sizes = [8, 32], strides = [1, 1]} : vector<8x64xf32> to vector<8x32xf32>
    %444 = vector.extract_strided_slice %442 {offsets = [0, 32], sizes = [8, 32], strides = [1, 1]} : vector<8x64xf32> to vector<8x32xf32>
    %445 = vector.extract_strided_slice %403 {offsets = [0, 64], sizes = [8, 32], strides = [1, 1]} : vector<8x96xf32> to vector<8x32xf32>
    %446 = vector.extract_strided_slice %434 {offsets = [0, 64], sizes = [8, 32], strides = [1, 1]} : vector<8x96xf32> to vector<8x32xf32>
    %447 = arith.mulf %443, %446 : vector<8x32xf32>
    %448 = arith.addf %445, %447 : vector<8x32xf32>
    %449 = math.tanh %448 : vector<8x32xf32>
    %cst_107 = arith.constant 1.000000e+00 : f32
    %450 = vector.broadcast %cst_107 : f32 to vector<8x32xf32>
    %451 = arith.subf %450, %444 : vector<8x32xf32>
    %452 = arith.mulf %451, %449 : vector<8x32xf32>
    %453 = arith.mulf %444, %395 : vector<8x32xf32>
    %454 = arith.addf %452, %453 : vector<8x32xf32>
    %455 = vector.shape_cast %399 : vector<8x1xi1> to vector<8x1xi1>
    %456 = vector.broadcast %455 : vector<8x1xi1> to vector<8x32xi1>
    %457 = arith.select %456, %454, %395 : vector<8x32xi1>, vector<8x32xf32>
    %c7_i32_108 = arith.constant 7 : i32
    %458 = vector.broadcast %c7_i32_108 : i32 to vector<8x1xi32>
    %459 = arith.cmpi sgt, %1, %458 : vector<8x1xi32>
    %c0_i32_109 = arith.constant 0 : i32
    %460 = vector.broadcast %c0_i32_109 : i32 to vector<8x1xi32>
    %461 = arith.cmpi sgt, %1, %460 : vector<8x1xi32>
    %c0_110 = arith.constant 0 : index
    %c56_111 = arith.constant 56 : index
    %c0_112 = arith.constant 0 : index
    %462 = vector.load %arg11[%c0_110, %c56_111, %c0_112] : memref<2x64x96xf32, #tpu.memory_space<vmem>>, vector<1x8x96xf32>
    %463 = vector.shape_cast %462 : vector<1x8x96xf32> to vector<8x96xf32>
    %c1_113 = arith.constant 1 : index
    %c0_114 = arith.constant 0 : index
    %c0_115 = arith.constant 0 : index
    %464 = vector.load %arg11[%c1_113, %c0_114, %c0_115] : memref<2x64x96xf32, #tpu.memory_space<vmem>>, vector<1x8x96xf32>
    %465 = vector.shape_cast %464 : vector<1x8x96xf32> to vector<8x96xf32>
    %466 = arith.truncf %430 : vector<8x32xf32> to vector<8x32xbf16>
    %cst_116 = arith.constant dense<0.000000e+00> : vector<8x96xf32>
    %467 = tpu.matmul %466, %16, %cst_116 {dimension_numbers = #tpu.dot_dimension_numbers<[1], [0], [0], [1], [0, 0, 1, 1], [], []>} : vector<8x32xbf16>, vector<32x96xbf16>, vector<8x96xf32> -> vector<8x96xf32>
    %468 = vector.broadcast %20 : vector<1x96xf32> to vector<8x96xf32>
    %469 = arith.addf %467, %468 : vector<8x96xf32>
    %470 = vector.extract_strided_slice %463 {offsets = [0, 0], sizes = [8, 64], strides = [1, 1]} : vector<8x96xf32> to vector<8x64xf32>
    %471 = vector.extract_strided_slice %469 {offsets = [0, 0], sizes = [8, 64], strides = [1, 1]} : vector<8x96xf32> to vector<8x64xf32>
    %472 = arith.addf %470, %471 : vector<8x64xf32>
    %473 = arith.negf %472 : vector<8x64xf32>
    %474 = math.exp %473 : vector<8x64xf32>
    %cst_117 = arith.constant 1.000000e+00 : f32
    %475 = vector.broadcast %cst_117 : f32 to vector<8x64xf32>
    %476 = arith.addf %475, %474 : vector<8x64xf32>
    %477 = arith.divf %475, %476 : vector<8x64xf32>
    %478 = vector.extract_strided_slice %477 {offsets = [0, 0], sizes = [8, 32], strides = [1, 1]} : vector<8x64xf32> to vector<8x32xf32>
    %479 = vector.extract_strided_slice %477 {offsets = [0, 32], sizes = [8, 32], strides = [1, 1]} : vector<8x64xf32> to vector<8x32xf32>
    %480 = vector.extract_strided_slice %463 {offsets = [0, 64], sizes = [8, 32], strides = [1, 1]} : vector<8x96xf32> to vector<8x32xf32>
    %481 = vector.extract_strided_slice %469 {offsets = [0, 64], sizes = [8, 32], strides = [1, 1]} : vector<8x96xf32> to vector<8x32xf32>
    %482 = arith.mulf %478, %481 : vector<8x32xf32>
    %483 = arith.addf %480, %482 : vector<8x32xf32>
    %484 = math.tanh %483 : vector<8x32xf32>
    %cst_118 = arith.constant 1.000000e+00 : f32
    %485 = vector.broadcast %cst_118 : f32 to vector<8x32xf32>
    %486 = arith.subf %485, %479 : vector<8x32xf32>
    %487 = arith.mulf %486, %484 : vector<8x32xf32>
    %488 = arith.mulf %479, %430 : vector<8x32xf32>
    %489 = arith.addf %487, %488 : vector<8x32xf32>
    %490 = vector.shape_cast %459 : vector<8x1xi1> to vector<8x1xi1>
    %491 = vector.broadcast %490 : vector<8x1xi1> to vector<8x32xi1>
    %492 = arith.select %491, %489, %430 : vector<8x32xi1>, vector<8x32xf32>
    %493 = arith.truncf %457 : vector<8x32xf32> to vector<8x32xbf16>
    %cst_119 = arith.constant dense<0.000000e+00> : vector<8x96xf32>
    %494 = tpu.matmul %493, %18, %cst_119 {dimension_numbers = #tpu.dot_dimension_numbers<[1], [0], [0], [1], [0, 0, 1, 1], [], []>} : vector<8x32xbf16>, vector<32x96xbf16>, vector<8x96xf32> -> vector<8x96xf32>
    %495 = vector.broadcast %22 : vector<1x96xf32> to vector<8x96xf32>
    %496 = arith.addf %494, %495 : vector<8x96xf32>
    %497 = vector.extract_strided_slice %465 {offsets = [0, 0], sizes = [8, 64], strides = [1, 1]} : vector<8x96xf32> to vector<8x64xf32>
    %498 = vector.extract_strided_slice %496 {offsets = [0, 0], sizes = [8, 64], strides = [1, 1]} : vector<8x96xf32> to vector<8x64xf32>
    %499 = arith.addf %497, %498 : vector<8x64xf32>
    %500 = arith.negf %499 : vector<8x64xf32>
    %501 = math.exp %500 : vector<8x64xf32>
    %cst_120 = arith.constant 1.000000e+00 : f32
    %502 = vector.broadcast %cst_120 : f32 to vector<8x64xf32>
    %503 = arith.addf %502, %501 : vector<8x64xf32>
    %504 = arith.divf %502, %503 : vector<8x64xf32>
    %505 = vector.extract_strided_slice %504 {offsets = [0, 0], sizes = [8, 32], strides = [1, 1]} : vector<8x64xf32> to vector<8x32xf32>
    %506 = vector.extract_strided_slice %504 {offsets = [0, 32], sizes = [8, 32], strides = [1, 1]} : vector<8x64xf32> to vector<8x32xf32>
    %507 = vector.extract_strided_slice %465 {offsets = [0, 64], sizes = [8, 32], strides = [1, 1]} : vector<8x96xf32> to vector<8x32xf32>
    %508 = vector.extract_strided_slice %496 {offsets = [0, 64], sizes = [8, 32], strides = [1, 1]} : vector<8x96xf32> to vector<8x32xf32>
    %509 = arith.mulf %505, %508 : vector<8x32xf32>
    %510 = arith.addf %507, %509 : vector<8x32xf32>
    %511 = math.tanh %510 : vector<8x32xf32>
    %cst_121 = arith.constant 1.000000e+00 : f32
    %512 = vector.broadcast %cst_121 : f32 to vector<8x32xf32>
    %513 = arith.subf %512, %506 : vector<8x32xf32>
    %514 = arith.mulf %513, %511 : vector<8x32xf32>
    %515 = arith.mulf %506, %457 : vector<8x32xf32>
    %516 = arith.addf %514, %515 : vector<8x32xf32>
    %517 = vector.shape_cast %461 : vector<8x1xi1> to vector<8x1xi1>
    %518 = vector.broadcast %517 : vector<8x1xi1> to vector<8x32xi1>
    %519 = arith.select %518, %516, %457 : vector<8x32xi1>, vector<8x32xf32>
    %c0_122 = arith.constant 0 : index
    %c0_123 = arith.constant 0 : index
    %520 = vector.load %arg6[%c0_122, %c0_123] : memref<64x32xf32, #tpu.memory_space<vmem>>, vector<32x32xf32>
    %cst_124 = arith.constant dense<0.000000e+00> : vector<8x32xf32>
    %521 = tpu.matmul %492, %520, %cst_124 {dimension_numbers = #tpu.dot_dimension_numbers<[1], [0], [0], [1], [0, 0, 1, 1], [], []>} : vector<8x32xf32>, vector<32x32xf32>, vector<8x32xf32> -> vector<8x32xf32>
    %c32_125 = arith.constant 32 : index
    %c0_126 = arith.constant 0 : index
    %522 = vector.load %arg6[%c32_125, %c0_126] : memref<64x32xf32, #tpu.memory_space<vmem>>, vector<32x32xf32>
    %cst_127 = arith.constant dense<0.000000e+00> : vector<8x32xf32>
    %523 = tpu.matmul %519, %522, %cst_127 {dimension_numbers = #tpu.dot_dimension_numbers<[1], [0], [0], [1], [0, 0, 1, 1], [], []>} : vector<8x32xf32>, vector<32x32xf32>, vector<8x32xf32> -> vector<8x32xf32>
    %524 = arith.addf %521, %523 : vector<8x32xf32>
    %c0_128 = arith.constant 0 : index
    %c0_129 = arith.constant 0 : index
    %525 = vector.load %arg7[%c0_128, %c0_129] : memref<1x32xf32, #tpu.memory_space<vmem>>, vector<1x32xf32>
    %526 = vector.broadcast %525 : vector<1x32xf32> to vector<8x32xf32>
    %527 = arith.addf %524, %526 : vector<8x32xf32>
    %cst_130 = arith.constant 0.000000e+00 : f32
    %528 = vector.broadcast %cst_130 : f32 to vector<8x32xf32>
    %529 = arith.maximumf %527, %528 : vector<8x32xf32>
    %c0_131 = arith.constant 0 : index
    %c0_132 = arith.constant 0 : index
    %530 = vector.load %arg8[%c0_131, %c0_132] : memref<32x4xf32, #tpu.memory_space<vmem>>, vector<32x4xf32>
    %cst_133 = arith.constant dense<0.000000e+00> : vector<8x4xf32>
    %531 = tpu.matmul %529, %530, %cst_133 {dimension_numbers = #tpu.dot_dimension_numbers<[1], [0], [0], [1], [0, 0, 1, 1], [], []>} : vector<8x32xf32>, vector<32x4xf32>, vector<8x4xf32> -> vector<8x4xf32>
    %c0_134 = arith.constant 0 : index
    %c0_135 = arith.constant 0 : index
    %532 = vector.load %arg9[%c0_134, %c0_135] : memref<1x4xf32, #tpu.memory_space<vmem>>, vector<1x4xf32>
    %533 = vector.broadcast %532 : vector<1x4xf32> to vector<8x4xf32>
    %534 = arith.addf %531, %533 : vector<8x4xf32>
    %c0_136 = arith.constant 0 : index
    %c0_137 = arith.constant 0 : index
    %535 = vector.load %arg10[%c0_136, %c0_137] : memref<8x4xf32, #tpu.memory_space<vmem>>, vector<8x4xf32>
    tpu.vector_store %arg10[%c0_136, %c0_137], %534 {strides = array<i32>} : memref<8x4xf32, #tpu.memory_space<vmem>>, vector<8x4xf32>,
    return
  }
}

</mosaic_0001>

<bundles_post_ra>
// kernel: model_forward.3
= control target key start
LH: loop header
LB: loop body
LE: loop exit
PB: predicated region body
PF: predicated region fallthrough
CT: control target
= control target key end

     0   :  { %v2271_v0 = vmov 0.0   ;;  %vm2272_vm0 = vmmov 0   ;;  %v2273_v3 = vmov 0   ;;  %vm125_vm1 = vcmask 523264   ;;  %s2942_s2 = inlined_call_operand.vmem [shape: bf16[64,192], index: 2, kind: input, shape index: {}]   ;;  %s2943_s3 = inlined_call_operand.vmem [shape: bf16[2,32,96], index: 3, kind: input, shape index: {}]   ;;  %s2944_s0 = inlined_call_operand.vmem [shape: bf16[64,64], index: 0, kind: input, shape index: {}]   ;;  %s2945_s5 = inlined_call_operand.vmem [shape: f32[2,1,96], index: 5, kind: input, shape index: {}]   ;;  %s2946_s4 = inlined_call_operand.vmem [shape: f32[1,192], index: 4, kind: input, shape index: {}]   ;;  %s2947_s1 = inlined_call_operand.vmem [shape: s32[8,1], index: 1, kind: input, shape index: {}]   ;;  %s2948_s6 = inlined_call_operand.vmem [shape: f32[64,32], index: 6, kind: input, shape index: {}]   ;;  %s2949_s8 = inlined_call_operand.vmem [shape: f32[32,4], index: 8, kind: input, shape index: {}]   ;;  %s2950_s7 = inlined_call_operand.vmem [shape: f32[1,32], index: 7, kind: input, shape index: {}]   ;;  %s2951_s9 = inlined_call_operand.vmem [shape: f32[1,4], index: 9, kind: input, shape index: {}]   ;;  %s2952_s10 = inlined_call_operand.vmem [shape: f32[8,4], index: 10, kind: output, shape index: {}]  }
   0x1   :  { %1961 = vmatprep.subr.bf16.mxu1 %v2271_v0  ;;  %v2149_v1 = vld [vmem:[%s2942_s2 + $0x4] ss:$8 sps:$4 sm:$0xff]   ;;  %1965 = vmatprep.mubr.msk.bf16.mxu1 %vm2272_vm0, %v2271_v0  ;;  %v2152_v4 = vld [vmem:[%s2942_s2] ss:$8 sps:$4 sm:$0xff]   ;;  %v2153_v5 = vld [vmem:[%s2942_s2 + $0x14] ss:$8 sps:$4 sm:$0xff]   ;;  %v55_v18 = vlaneseq }
   0x2   :  { %v2342_v2 = vld [vmem:[%s2943_s3] sm:$0xff]   ;;  %170 = vmatprep.mubr.bf16.mxu0 %v2273_v3  ;;  %2147 = vset.pattern.permute.xlu0 %v2273_v3  ;;  %v2358_v6 = vld [vmem:[%s2943_s3 + $0x8] sm:$0xff]   ;;  %v2156_v7 = vld [vmem:[%s2942_s2 + $0x10] ss:$8 sps:$4 sm:$0xff]   ;;  %vm211_vm2 = vcmask 785408   ;;  %vm268_vm4 = vcmask 261120  }
   0x3   :  { %138 = vmatprep.subr.bf16.mxu0 %v2149_v1  ;;  %2148 = vset.pattern.permute.xlu1 %v2273_v3  ;;  %v2157_v8 = vld [vmem:[%s2942_s2 + $0x24] ss:$8 sps:$4 sm:$0xff]   ;;  %v2159_v9 = vld [vmem:[%s2942_s2 + $0x20] ss:$8 sps:$4 sm:$0xff]   ;;  %v2160_v10 = vld [vmem:[%s2942_s2 + $0x34] ss:$8 sps:$4 sm:$0xff]  }
   0x4   :  { %1962 = vmatpush3.bf16.msra.mxu1 %v2342_v2  ;;  %139 = vmatpush1.bf16.msra.mxu0 %v2152_v4  ;;  %v2162_v11 = vld [vmem:[%s2942_s2 + $0x30] ss:$8 sps:$4 sm:$0xff]   ;;  %v2163_v14 = vld [vmem:[%s2944_s0] sm:$0xff]   ;;  %v2164_v15 = vld [vmem:[%s2944_s0 + $0x8] sm:$0xff]   ;;  %v56_v20 = vshrl.u32 %v55_v18, 7 }
   0x5   :  { %1963 = vmatprep.subr.bf16.mxu1 %v2271_v0  ;;  %140 = vmatprep.subr.bf16.mxu0 %v2153_v5  ;;  %v2383_v12 = vld [vmem:[%s2943_s3 + $0x10] sm:$0xff]   ;;  %v2389_v13 = vld [vmem:[%s2943_s3 + $0x18] sm:$0xff]   ;;  %v2430_v19 = vld [vmem:[%s2945_s5] ss:$0 sm:$0xff] }
   0x6   :  { %v2165_v16 = vld [vmem:[%s2944_s0 + $0x10] sm:$0xff]   ;;  %v2166_v17 = vld [vmem:[%s2944_s0 + $0x18] sm:$0xff]   ;;  %v57_v24 = vsub.s32 0, %v56_v20  ;;  %s2274_s0 = smov 64   ;;  %v36_v26 = vld [vmem:[%s2946_s4] sm:$0x3] }
   0x7   :  { %v61_v27 = vsub.s32 1, %v56_v20  ;;  %v2443_v32 = vld [vmem:[%s2945_s5 + $0x1] ss:$0 sm:$0xff]  ;;  %s2275_s4 = smov 32  }
   0x8   :  { %1964 = vmatpush3.bf16.msra.mxu1 %v2358_v6  ;;  %141 = vmatpush1.bf16.msra.mxu0 %v2156_v7  ;;  %v58_v29 = vrot.slane %v36_v26, %v57_v24 }
   0x9   :  { %1969 = vmatprep.subr.bf16.mxu1 %v2271_v0  ;;  %142 = vmatprep.subr.bf16.mxu0 %v2157_v8  ;;  %v62_v30 = vrot.slane %v36_v26, %v61_v27 }
   0xb   :  { %1966 = vmatmul.mubr.bf16.vlgmr.msra.gmra.mrb[0].mxu1 %v2273_v3 }
   0xc   :  { %1973 = vmatprep.mubr.msk.bf16.mxu1 %vm2272_vm0, %v2271_v0  ;;  %143 = vmatpush1.bf16.msra.mxu0 %v2159_v9 }
   0xd   :  { %144 = vmatprep.subr.bf16.mxu0 %v2160_v10  ;;  %1970 = vmatpush3.bf16.msra.mxu1 %v2383_v12 }
   0xe   :  { %1971 = vmatprep.subr.bf16.mxu1 %v2271_v0 }
  0x10   :  { %145 = vmatpush1.bf16.msra.mxu0 %v2162_v11 }
  0x11   :  { %2001 = vmatprep.subr.bf16.mxu0 %v2271_v0  ;;  %1972 = vmatpush3.bf16.msra.mxu1 %v2389_v13 }
  0x12   :  { %1977 = vmatprep.subr.bf16.mxu1 %v2271_v0 }
  0x13   :  { %1848 = vmatmul.mubr.msk.bf16.vlgmr.msra.gmra.mrb[0].mxu0 %vm125_vm1, %v2163_v14 }
  0x14   :  { %180 = vmatprep.mubr.bf16.mxu0 %v2273_v3  ;;  %2002 = vmatpush3.bf16.msra.mxu0 %v2383_v12 }
  0x15   :  { %1974 = vmatmul.mubr.bf16.vlgmr.msra.gmra.mrb[4].mxu1 %v2273_v3  ;;  %2003 = vmatprep.subr.bf16.mxu0 %v2271_v0 }
  0x16   :  { %1978 = vmatpush3.bf16.msra.mxu1 %v2342_v2  ;;  %1981 = vmatprep.mubr.msk.bf16.mxu1 %vm2272_vm0, %v2271_v0 }
  0x17   :  { %1979 = vmatprep.subr.bf16.mxu1 %v2271_v0 }
  0x18   :  { %2004 = vmatpush3.bf16.msra.mxu0 %v2389_v13 }
  0x19   :  { %2017 = vmatprep.subr.bf16.mxu0 %v2271_v0 }
  0x1a   :  { %1980 = vmatpush3.bf16.msra.mxu1 %v2358_v6 }
  0x1b   :  { %1849 = vmatmul.mubr.msk.bf16.gmra.mrb[4].mxu0 %vm125_vm1, %v2164_v15  ;;  %1985 = vmatprep.subr.bf16.mxu1 %v2271_v0 }
  0x1c   :  { %190 = vmatprep.mubr.bf16.mxu0 %v2273_v3 }
  0x23   :  { %1850 = vmatmul.mubr.msk.bf16.gmra.mrb[8].mxu0 %vm125_vm1, %v2165_v16  ;;  %v2496_v16 = vld [vmem:[%s2947_s1] sm:$0xff]  ;;  %s2276_s1 = smov 96  }
  0x24   :  { %200 = vmatprep.mubr.bf16.mxu0 %v2273_v3  ;;  %vm306_vm3 = vcmp.gt.s32.totalorder %v2496_v16, 0  ;;  %vm307_vm5 = vcmp.gt.s32.totalorder %v2496_v16, 7  ;;  %vm493_vm8 = vcmp.gt.s32.totalorder %v2496_v16, 1  ;;  %vm494_vm9 = vcmp.gt.s32.totalorder %v2496_v16, 6 }
  0x25   :  { %vm655_vm12 = vcmp.gt.s32.totalorder %v2496_v16, 2  ;;  %vm656_vm13 = vcmp.gt.s32.totalorder %v2496_v16, 5 }
  0x2b   :  { %1851 = vmatmul.mubr.msk.bf16.gmra.mrb[12].mxu0 %vm125_vm1, %v2166_v17  ;;  %vm817_vm1 = vcmp.gt.s32.totalorder %v2496_v16, 3 }
  0x2c   :  { %2005 = vmatprep.mubr.msk.bf16.mxu0 %vm2272_vm0, %v2271_v0 }
  0xde   :  { %v365_v21 = vpop.f32.mrb[0].mxu1 }
  0xdf   :  { %v2433_v22 = vadd.f32 %v2430_v19, %v365_v21  ;;  %v1967_v23 = vpop.f32.mrb[1].mxu1  ;;  %v397_v21 = vsel %vm306_vm3, 1, %v2273_v3  ;;  %vm818_vm3 = vcmp.gt.s32.totalorder %v2496_v16, 4 }
  0xe0   :  { %v368_v25 = vpop.f32.mrb[2].mxu1 }
  0xe1   :  { %379 = vrot.lane.b32.xlu1 %v2433_v22, %s2274_s0  ;;  %v1968_v28 = vpop.f32.mrb[3].mxu1 }
  0xe6   :  { %v172_v31 = vpop.f32.mrb[0].mxu0 }
  0xe7   :  { %v2445_v33 = vadd.f32 %v172_v31, %v58_v29  ;;  %v174_v34 = vpop.f32.mrb[1].mxu0 }
  0xe8   :  { %v2447_v35 = vadd.f32 %v174_v34, %v62_v30  ;;  %v176_v36 = vpop.f32.mrb[2].mxu0  ;;  %v455_v37 = vpop.f32.mrb[4].mxu1 }
  0xe9   :  { %212 = vst.msk [vmem:[#allocation2] sm:$0xff] %vm211_vm2, %v2445_v33  ;;  %v2451_v38 = vadd.f32 %v176_v36, %v58_v29  ;;  %v178_v39 = vpop.f32.mrb[3].mxu0  ;;  %v456_v40 = vadd.f32 %v2443_v32, %v455_v37  ;;  %v1975_v41 = vpop.f32.mrb[5].mxu1 }
  0xea   :  { %v2454_v42 = vadd.f32 %v178_v39, %v62_v30  ;;  %v458_v43 = vpop.f32.mrb[6].mxu1 }
  0xeb   :  { %213 = vst.msk [vmem:[#allocation2 + $0x8] sm:$0xff] %vm211_vm2, %v2451_v38  ;;  %v1976_v44 = vpop.f32.mrb[7].mxu1  ;;  %469 = vrot.lane.b32.xlu1 %v456_v40, %s2274_s0 }
  0xee   :  { %v182_v45 = vpop.f32.mrb[4].mxu0 }
  0xef   :  { %v2459_v46 = vadd.f32 %v182_v45, %v58_v29  ;;  %v184_v47 = vpop.f32.mrb[5].mxu0 }
  0xf0   :  { %v2461_v48 = vadd.f32 %v184_v47, %v62_v30  ;;  %v186_v49 = vpop.f32.mrb[6].mxu0  ;;  %v308_v9 = vld [vmem:[#allocation2] sm:$0xff] }
  0xf1   :  { %214 = vst.msk [vmem:[#allocation2 + $0x10] sm:$0xff] %vm211_vm2, %v2459_v46  ;;  %v2465_v50 = vadd.f32 %v186_v49, %v58_v29  ;;  %v188_v51 = vpop.f32.mrb[7].mxu0  ;;  %v371_v10 = vadd.f32 %v2433_v22, %v308_v9 }
  0xf2   :  { %v2467_v52 = vadd.f32 %v188_v51, %v62_v30 }
  0xf3   :  { %215 = vst.msk [vmem:[#allocation2 + $0x18] sm:$0xff] %vm211_vm2, %v2465_v50  ;;  %v1860_v11 = vmul.f32 -1.442695, %v371_v10 }
  0xf5   :  { %2169 = vpow2.f32 %v1860_v11 }
  0xf6   :  { %v192_v53 = vpop.f32.mrb[8].mxu0 }
  0xf7   :  { %v2471_v54 = vadd.f32 %v192_v53, %v58_v29  ;;  %v194_v55 = vpop.f32.mrb[9].mxu0 }
  0xf8   :  { %v2473_v56 = vadd.f32 %v194_v55, %v62_v30  ;;  %v196_v57 = vpop.f32.mrb[10].mxu0 }
  0xf9   :  { %216 = vst.msk [vmem:[#allocation2 + $0x20] sm:$0xff] %vm211_vm2, %v2471_v54  ;;  %v2477_v58 = vadd.f32 %v196_v57, %v58_v29  ;;  %v198_v59 = vpop.f32.mrb[11].mxu0 }
  0xfa   :  { %v2479_v60 = vadd.f32 %v198_v59, %v62_v30 }
  0xfb   :  { %217 = vst.msk [vmem:[#allocation2 + $0x28] sm:$0xff] %vm211_vm2, %v2477_v58 }
  0xfe   :  { %v202_v61 = vpop.f32.mrb[12].mxu0 }
  0xff   :  { %v2483_v62 = vadd.f32 %v202_v61, %v58_v29  ;;  %v204_v63 = vpop.f32.mrb[13].mxu0  ;;  %v2170_v14 = vpop.eup %2169 }
 0x100   :  { %v2485_v1 = vadd.f32 %v204_v63, %v62_v30  ;;  %v206_v4 = vpop.f32.mrb[14].mxu0  ;;  %v375_v15 = vadd.f32 1.0, %v2170_v14 }
 0x101   :  { %218 = vst.msk [vmem:[#allocation2 + $0x30] sm:$0xff] %vm211_vm2, %v2483_v62  ;;  %v207_v5 = vadd.f32 %v206_v4, %v58_v29  ;;  %v208_v7 = vpop.f32.mrb[15].mxu0 }
 0x102   :  { %v209_v8 = vadd.f32 %v208_v7, %v62_v30  ;;  %2171 = vrcp.f32 %v375_v15 }
 0x103   :  { %219 = vst.msk [vmem:[#allocation2 + $0x38] sm:$0xff] %vm211_vm2, %v207_v5  ;;  %264 = vrot.lane.b32.xlu0 %v207_v5, %s2275_s4 }
 0x107   :  { %266 = vrot.lane.b32.xlu0 %v209_v8, %s2275_s4 }
 0x10c   :  { %v2172_v17 = vpop.eup %2171 }
 0x10d   :  { %v389_v45 = vsub.f32 1.0, %v2172_v17  ;;  %v395_v51 = vmul.f32 0.0, %v2172_v17 }
 0x153   :  { %v380_v18 = vpop.permute.xlu1 %379 }
 0x154   :  { %v382_v20 = vmul.f32 %v2172_v17, %v380_v18 }
 0x156   :  { %384 = vrot.lane.b32.xlu0 %v382_v20, %s2274_s0 }
 0x15a   :  { %399 = vperm.xlu0 %2147, %v397_v21  }
 0x15d   :  { %v470_v30 = vpop.permute.xlu1 %469 }
 0x175   :  { %v265_v22 = vpop.permute.xlu0 %264 }
 0x179   :  { %v267_v23 = vpop.permute.xlu0 %266 }
 0x17a   :  { %v276_v24 = vsel %vm268_vm4, %v265_v22, %v267_v23 }
 0x17b   :  { %293 = vst.msk [vmem:[#allocation2 + $0x78] sm:$0xff] %vm211_vm2, %v276_v24 }
 0x182   :  { %v309_v25 = vld [vmem:[#allocation2 + $0x78] sm:$0xff] }
 0x183   :  { %v461_v26 = vadd.f32 %v456_v40, %v309_v25  ;;  %v487_v40 = vsel %vm307_vm5, 1, %v2273_v3 }
 0x185   :  { %v1864_v27 = vmul.f32 -1.442695, %v461_v26 }
 0x187   :  { %2173 = vpow2.f32 %v1864_v27 }
 0x191   :  { %v2174_v28 = vpop.eup %2173 }
 0x192   :  { %v465_v29 = vadd.f32 1.0, %v2174_v28  ;;  %v495_v28 = vld [vmem:[#allocation2 + $0x8] sm:$0xff] }
 0x194   :  { %2175 = vrcp.f32 %v465_v29 }
 0x19e   :  { %v2176_v31 = vpop.eup %2175 }
 0x19f   :  { %v472_v34 = vmul.f32 %v2176_v31, %v470_v30  ;;  %v479_v61 = vsub.f32 1.0, %v2176_v31  ;;  %v485_v5 = vmul.f32 0.0, %v2176_v31 }
 0x1a1   :  { %474 = vrot.lane.b32.xlu1 %v472_v34, %s2274_s0 }
 0x1c8   :  { %v385_v36 = vpop.permute.xlu0 %384 }
 0x1c9   :  { %v387_v37 = vadd.f32 %v385_v36, %v308_v9 }
 0x1cb   :  { %2177 = vtanh.f32 %v387_v37 }
 0x1d5   :  { %v2178_v39 = vpop.eup %2177 }
 0x1d6   :  { %391 = vrot.lane.b32.xlu1 %v2178_v39, %s2276_s1 }
 0x1d9   :  { %v2508_v47 = vpop.permute.xlu0 %399 }
 0x1da   :  { %489 = vperm.xlu1 %2148, %v487_v40   ;;  %vm401_vm6 = vcmp.eq.s32.totalorder %v2508_v47, 1  ;;  %v570_v40 = vsel %vm493_vm8, 1, %v2273_v3  ;;  %v1747_v47 = vld [vmem:[%s2949_s8 + $0x8] sm:$0xff] }
 0x213   :  { %v475_v41 = vpop.permute.xlu1 %474 }
 0x214   :  { %v477_v43 = vadd.f32 %v475_v41, %v309_v25 }
 0x216   :  { %2179 = vtanh.f32 %v477_v43 }
 0x220   :  { %v2180_v44 = vpop.eup %2179 }
 0x221   :  { %481 = vrot.lane.b32.xlu0 %v2180_v44, %s2276_s1 }
 0x248   :  { %v392_v49 = vpop.permute.xlu1 %391 }
 0x249   :  { %v394_v53 = vmul.f32 %v392_v49, %v389_v45 }
 0x24b   :  { %v396_v55 = vadd.f32 %v395_v51, %v394_v53 }
 0x24d   :  { %v2513_v57 = vsel %vm401_vm6, %v396_v55, 0.0 }
 0x24e   :  { %v497_v59 = vpack.c.bf16 %v2513_v57, %v2513_v57 }
 0x250   :  { %499 = vrot.lane.b32.xlu1 %v497_v59, %s2276_s1  ;;  %v649_v59 = vsel %vm494_vm9, 1, %v2273_v3 }
 0x254   :  { %260 = vrot.lane.b32.xlu1 %v2483_v62, %s2275_s4 }
 0x259   :  { %v2520_v63 = vpop.permute.xlu1 %489 }
 0x25a   :  { %vm491_vm7 = vcmp.eq.s32.totalorder %v2520_v63, 1  ;;  %v1746_v63 = vld [vmem:[%s2949_s8] sm:$0xff] }
 0x293   :  { %v482_v4 = vpop.permute.xlu0 %481 }
 0x294   :  { %v484_v7 = vmul.f32 %v482_v4, %v479_v61 }
 0x296   :  { %v486_v8 = vadd.f32 %v485_v5, %v484_v7 }
 0x298   :  { %v2525_v9 = vsel %vm491_vm7, %v486_v8, 0.0 }
 0x299   :  { %v576_v10 = vpack.c.bf16 %v2525_v9, %v2525_v9 }
 0x29b   :  { %578 = vrot.lane.b32.xlu0 %v576_v10, %s2276_s1 }
 0x29f   :  { %262 = vrot.lane.b32.xlu0 %v2485_v1, %s2275_s4 }
 0x2c2   :  { %v500_v62 = vpop.permute.xlu1 %499 }
 0x2c3   :  { %1982 = vmatmul.mubr.msk.bf16.vlgmr.msra.gmra.mrb[8].mxu1 %vm268_vm4, %v500_v62 }
 0x2c4   :  { %1986 = vmatpush3.bf16.msra.mxu1 %v2383_v12  ;;  %1989 = vmatprep.mubr.msk.bf16.mxu1 %vm2272_vm0, %v2271_v0 }
 0x2c5   :  { %1987 = vmatprep.subr.bf16.mxu1 %v2271_v0 }
 0x2c6   :  { %v261_v1 = vpop.permute.xlu1 %260 }
 0x2c8   :  { %1988 = vmatpush3.bf16.msra.mxu1 %v2389_v13 }
 0x2c9   :  { %1993 = vmatprep.subr.bf16.mxu1 %v2271_v0 }
 0x30d   :  { %v579_v11 = vpop.permute.xlu0 %578 }
 0x30e   :  { %1990 = vmatmul.mubr.msk.bf16.vlgmr.msra.gmra.mrb[12].mxu1 %vm268_vm4, %v579_v11 }
 0x30f   :  { %1994 = vmatpush3.bf16.msra.mxu1 %v2342_v2  ;;  %1997 = vmatprep.mubr.msk.bf16.mxu1 %vm2272_vm0, %v2271_v0 }
 0x310   :  { %1995 = vmatprep.subr.bf16.mxu1 %v2271_v0 }
 0x311   :  { %v263_v14 = vpop.permute.xlu0 %262 }
 0x312   :  { %v275_v15 = vsel %vm268_vm4, %v261_v1, %v263_v14 }
 0x313   :  { %292 = vst.msk [vmem:[#allocation2 + $0x70] sm:$0xff] %vm211_vm2, %v275_v15  ;;  %1996 = vmatpush3.bf16.msra.mxu1 %v2358_v6 }
 0x314   :  { %2009 = vmatprep.subr.bf16.mxu1 %v2271_v0 }
 0x31a   :  { %v496_v41 = vld [vmem:[#allocation2 + $0x70] sm:$0xff] }
 0x396   :  { %v538_v17 = vpop.f32.mrb[8].mxu1 }
 0x397   :  { %v539_v18 = vadd.f32 %v2430_v19, %v538_v17  ;;  %v1983_v20 = vpop.f32.mrb[9].mxu1 }
 0x398   :  { %v541_v21 = vpop.f32.mrb[10].mxu1 }
 0x399   :  { %552 = vrot.lane.b32.xlu1 %v539_v18, %s2274_s0  ;;  %v1984_v22 = vpop.f32.mrb[11].mxu1  ;;  %v544_v29 = vadd.f32 %v539_v18, %v495_v28 }
 0x39b   :  { %v1866_v30 = vmul.f32 -1.442695, %v544_v29 }
 0x39d   :  { %2181 = vpow2.f32 %v1866_v30 }
 0x3a7   :  { %v2182_v31 = vpop.eup %2181 }
 0x3a8   :  { %v548_v34 = vadd.f32 1.0, %v2182_v31 }
 0x3aa   :  { %2183 = vrcp.f32 %v548_v34 }
 0x3b4   :  { %v2184_v36 = vpop.eup %2183 }
 0x3b5   :  { %v562_v11 = vsub.f32 1.0, %v2184_v36  ;;  %v568_v14 = vmul.f32 %v2184_v36, %v2513_v57 }
 0x3e1   :  { %v617_v23 = vpop.f32.mrb[12].mxu1 }
 0x3e2   :  { %v618_v24 = vadd.f32 %v2443_v32, %v617_v23  ;;  %v1991_v25 = vpop.f32.mrb[13].mxu1 }
 0x3e3   :  { %v620_v26 = vpop.f32.mrb[14].mxu1 }
 0x3e4   :  { %631 = vrot.lane.b32.xlu0 %v618_v24, %s2274_s0  ;;  %v1992_v27 = vpop.f32.mrb[15].mxu1  ;;  %v623_v43 = vadd.f32 %v618_v24, %v496_v41 }
 0x3e6   :  { %v1868_v44 = vmul.f32 -1.442695, %v623_v43 }
 0x3e8   :  { %2185 = vpow2.f32 %v1868_v44 }
 0x3f2   :  { %v2186_v45 = vpop.eup %2185 }
 0x3f3   :  { %v627_v49 = vadd.f32 1.0, %v2186_v45  ;;  %v657_v45 = vld [vmem:[#allocation2 + $0x10] sm:$0xff] }
 0x3f5   :  { %2187 = vrcp.f32 %v627_v49 }
 0x3ff   :  { %v2188_v51 = vpop.eup %2187 }
 0x400   :  { %v641_v22 = vsub.f32 1.0, %v2188_v51  ;;  %v647_v24 = vmul.f32 %v2188_v51, %v2525_v9 }
 0x40b   :  { %v553_v37 = vpop.permute.xlu1 %552 }
 0x40c   :  { %v555_v39 = vmul.f32 %v2184_v36, %v553_v37 }
 0x40e   :  { %557 = vrot.lane.b32.xlu1 %v555_v39, %s2274_s0 }
 0x412   :  { %572 = vperm.xlu1 %2148, %v570_v40  }
 0x456   :  { %v632_v53 = vpop.permute.xlu0 %631 }
 0x457   :  { %v634_v55 = vmul.f32 %v2188_v51, %v632_v53 }
 0x459   :  { %636 = vrot.lane.b32.xlu0 %v634_v55, %s2274_s0 }
 0x45d   :  { %651 = vperm.xlu0 %2147, %v649_v59  }
 0x480   :  { %v558_v61 = vpop.permute.xlu1 %557 }
 0x481   :  { %v560_v4 = vadd.f32 %v558_v61, %v495_v28 }
 0x483   :  { %2189 = vtanh.f32 %v560_v4 }
 0x48d   :  { %v2190_v5 = vpop.eup %2189 }
 0x48e   :  { %564 = vrot.lane.b32.xlu1 %v2190_v5, %s2276_s1  ;;  %v732_v5 = vsel %vm655_vm12, 1, %v2273_v3 }
 0x491   :  { %v2560_v62 = vpop.permute.xlu1 %572 }
 0x492   :  { %vm574_vm10 = vcmp.eq.s32.totalorder %v2560_v62, 1 }
 0x4cb   :  { %v637_v7 = vpop.permute.xlu0 %636 }
 0x4cc   :  { %v639_v8 = vadd.f32 %v637_v7, %v496_v41 }
 0x4ce   :  { %2191 = vtanh.f32 %v639_v8 }
 0x4d8   :  { %v2192_v10 = vpop.eup %2191 }
 0x4d9   :  { %643 = vrot.lane.b32.xlu0 %v2192_v10, %s2276_s1 }
 0x4dc   :  { %v2574_v21 = vpop.permute.xlu0 %651 }
 0x4dd   :  { %vm653_vm11 = vcmp.eq.s32.totalorder %v2574_v21, 1 }
 0x500   :  { %v565_v1 = vpop.permute.xlu1 %564 }
 0x501   :  { %v567_v15 = vmul.f32 %v565_v1, %v562_v11 }
 0x503   :  { %v569_v17 = vadd.f32 %v568_v14, %v567_v15 }
 0x505   :  { %v2567_v18 = vsel %vm574_vm10, %v569_v17, %v2513_v57 }
 0x506   :  { %v659_v20 = vpack.c.bf16 %v2567_v18, %v2567_v18 }
 0x508   :  { %661 = vrot.lane.b32.xlu1 %v659_v20, %s2276_s1  ;;  %v811_v20 = vsel %vm656_vm13, 1, %v2273_v3 }
 0x50c   :  { %256 = vrot.lane.b32.xlu1 %v2477_v58, %s2275_s4 }
 0x54b   :  { %v644_v23 = vpop.permute.xlu0 %643 }
 0x54c   :  { %v646_v25 = vmul.f32 %v644_v23, %v641_v22 }
 0x54e   :  { %v648_v26 = vadd.f32 %v647_v24, %v646_v25 }
 0x550   :  { %v2581_v57 = vsel %vm653_vm11, %v648_v26, %v2525_v9 }
 0x551   :  { %v738_v27 = vpack.c.bf16 %v2581_v57, %v2581_v57 }
 0x553   :  { %740 = vrot.lane.b32.xlu0 %v738_v27, %s2276_s1 }
 0x557   :  { %258 = vrot.lane.b32.xlu0 %v2479_v60, %s2275_s4 }
 0x57a   :  { %v662_v58 = vpop.permute.xlu1 %661 }
 0x57b   :  { %1998 = vmatmul.mubr.msk.bf16.vlgmr.msra.gmra.mrb[16].mxu1 %vm268_vm4, %v662_v58 }
 0x57c   :  { %2010 = vmatpush3.bf16.msra.mxu1 %v2342_v2  ;;  %2013 = vmatprep.mubr.msk.bf16.mxu1 %vm2272_vm0, %v2271_v0 }
 0x57d   :  { %2011 = vmatprep.subr.bf16.mxu1 %v2271_v0 }
 0x57e   :  { %v257_v60 = vpop.permute.xlu1 %256 }
 0x580   :  { %2012 = vmatpush3.bf16.msra.mxu1 %v2358_v6 }
 0x581   :  { %2025 = vmatprep.subr.bf16.mxu1 %v2271_v0 }
 0x5c5   :  { %v741_v9 = vpop.permute.xlu0 %740 }
 0x5c6   :  { %2006 = vmatmul.mubr.msk.bf16.vlgmr.msra.gmra.mrb[16].mxu0 %vm268_vm4, %v741_v9 }
 0x5c7   :  { %2018 = vmatpush3.bf16.msra.mxu0 %v2383_v12  ;;  %2021 = vmatprep.mubr.msk.bf16.mxu0 %vm2272_vm0, %v2271_v0 }
 0x5c8   :  { %2019 = vmatprep.subr.bf16.mxu0 %v2271_v0 }
 0x5c9   :  { %v259_v28 = vpop.permute.xlu0 %258 }
 0x5ca   :  { %v274_v29 = vsel %vm268_vm4, %v257_v60, %v259_v28 }
 0x5cb   :  { %291 = vst.msk [vmem:[#allocation2 + $0x68] sm:$0xff] %vm211_vm2, %v274_v29  ;;  %2020 = vmatpush3.bf16.msra.mxu0 %v2389_v13 }
 0x5cc   :  { %2033 = vmatprep.subr.bf16.mxu0 %v2271_v0 }
 0x5d2   :  { %v658_v7 = vld [vmem:[#allocation2 + $0x68] sm:$0xff] }
 0x64e   :  { %v700_v30 = vpop.f32.mrb[16].mxu1 }
 0x64f   :  { %v701_v31 = vadd.f32 %v2430_v19, %v700_v30  ;;  %v1999_v34 = vpop.f32.mrb[17].mxu1 }
 0x650   :  { %v703_v36 = vpop.f32.mrb[18].mxu1 }
 0x651   :  { %714 = vrot.lane.b32.xlu1 %v701_v31, %s2274_s0  ;;  %v2000_v37 = vpop.f32.mrb[19].mxu1  ;;  %v706_v49 = vadd.f32 %v701_v31, %v657_v45 }
 0x653   :  { %v1870_v51 = vmul.f32 -1.442695, %v706_v49 }
 0x655   :  { %2193 = vpow2.f32 %v1870_v51 }
 0x65f   :  { %v2194_v53 = vpop.eup %2193 }
 0x660   :  { %v710_v55 = vadd.f32 1.0, %v2194_v53 }
 0x662   :  { %2195 = vrcp.f32 %v710_v55 }
 0x66c   :  { %v2196_v59 = vpop.eup %2195 }
 0x66d   :  { %v724_v9 = vsub.f32 1.0, %v2196_v59  ;;  %v730_v28 = vmul.f32 %v2196_v59, %v2567_v18 }
 0x699   :  { %v779_v39 = vpop.f32.mrb[16].mxu0 }
 0x69a   :  { %v780_v40 = vadd.f32 %v2443_v32, %v779_v39  ;;  %v2007_v41 = vpop.f32.mrb[17].mxu0 }
 0x69b   :  { %v782_v43 = vpop.f32.mrb[18].mxu0 }
 0x69c   :  { %793 = vrot.lane.b32.xlu0 %v780_v40, %s2274_s0  ;;  %v2008_v44 = vpop.f32.mrb[19].mxu0  ;;  %v785_v8 = vadd.f32 %v780_v40, %v658_v7 }
 0x69e   :  { %v1872_v10 = vmul.f32 -1.442695, %v785_v8 }
 0x6a0   :  { %2197 = vpow2.f32 %v1872_v10 }
 0x6aa   :  { %v2198_v11 = vpop.eup %2197 }
 0x6ab   :  { %v789_v1 = vadd.f32 1.0, %v2198_v11  ;;  %v819_v11 = vld [vmem:[#allocation2 + $0x18] sm:$0xff] }
 0x6ad   :  { %2199 = vrcp.f32 %v789_v1 }
 0x6b7   :  { %v2200_v14 = vpop.eup %2199 }
 0x6b8   :  { %v803_v37 = vsub.f32 1.0, %v2200_v14  ;;  %v809_v40 = vmul.f32 %v2200_v14, %v2581_v57 }
 0x6c3   :  { %v715_v61 = vpop.permute.xlu1 %714 }
 0x6c4   :  { %v717_v4 = vmul.f32 %v2196_v59, %v715_v61 }
 0x6c6   :  { %719 = vrot.lane.b32.xlu1 %v717_v4, %s2274_s0 }
 0x6ca   :  { %734 = vperm.xlu1 %2148, %v732_v5  }
 0x70e   :  { %v794_v15 = vpop.permute.xlu0 %793 }
 0x70f   :  { %v796_v17 = vmul.f32 %v2200_v14, %v794_v15 }
 0x711   :  { %798 = vrot.lane.b32.xlu0 %v796_v17, %s2274_s0 }
 0x715   :  { %813 = vperm.xlu0 %2147, %v811_v20  }
 0x738   :  { %v720_v22 = vpop.permute.xlu1 %719 }
 0x739   :  { %v722_v23 = vadd.f32 %v720_v22, %v657_v45 }
 0x73b   :  { %2201 = vtanh.f32 %v722_v23 }
 0x745   :  { %v2202_v24 = vpop.eup %2201 }
 0x746   :  { %726 = vrot.lane.b32.xlu1 %v2202_v24, %s2276_s1  ;;  %v894_v24 = vsel %vm817_vm1, 1, %v2273_v3 }
 0x749   :  { %v2616_v58 = vpop.permute.xlu1 %734 }
 0x74a   :  { %vm736_vm14 = vcmp.eq.s32.totalorder %v2616_v58, 1 }
 0x783   :  { %v799_v25 = vpop.permute.xlu0 %798 }
 0x784   :  { %v801_v26 = vadd.f32 %v799_v25, %v658_v7 }
 0x786   :  { %2203 = vtanh.f32 %v801_v26 }
 0x790   :  { %v2204_v27 = vpop.eup %2203 }
 0x791   :  { %805 = vrot.lane.b32.xlu0 %v2204_v27, %s2276_s1 }
 0x794   :  { %v2630_v36 = vpop.permute.xlu0 %813 }
 0x795   :  { %vm815_vm15 = vcmp.eq.s32.totalorder %v2630_v36, 1 }
 0x7b8   :  { %v727_v60 = vpop.permute.xlu1 %726 }
 0x7b9   :  { %v729_v29 = vmul.f32 %v727_v60, %v724_v9 }
 0x7bb   :  { %v731_v30 = vadd.f32 %v730_v28, %v729_v29 }
 0x7bd   :  { %v2623_v31 = vsel %vm736_vm14, %v731_v30, %v2567_v18 }
 0x7be   :  { %v821_v34 = vpack.c.bf16 %v2623_v31, %v2623_v31 }
 0x7c0   :  { %823 = vrot.lane.b32.xlu1 %v821_v34, %s2276_s1  ;;  %v973_v34 = vsel %vm818_vm3, 1, %v2273_v3 }
 0x7c4   :  { %252 = vrot.lane.b32.xlu1 %v2471_v54, %s2275_s4 }
 0x803   :  { %v806_v39 = vpop.permute.xlu0 %805 }
 0x804   :  { %v808_v41 = vmul.f32 %v806_v39, %v803_v37 }
 0x806   :  { %v810_v43 = vadd.f32 %v809_v40, %v808_v41 }
 0x808   :  { %v2637_v18 = vsel %vm815_vm15, %v810_v43, %v2581_v57 }
 0x809   :  { %v900_v44 = vpack.c.bf16 %v2637_v18, %v2637_v18 }
 0x80b   :  { %902 = vrot.lane.b32.xlu0 %v900_v44, %s2276_s1 }
 0x80f   :  { %254 = vrot.lane.b32.xlu0 %v2473_v56, %s2275_s4 }
 0x832   :  { %v824_v54 = vpop.permute.xlu1 %823 }
 0x833   :  { %2014 = vmatmul.mubr.msk.bf16.vlgmr.msra.gmra.mrb[20].mxu1 %vm268_vm4, %v824_v54 }
 0x834   :  { %2026 = vmatpush3.bf16.msra.mxu1 %v2342_v2  ;;  %2029 = vmatprep.mubr.msk.bf16.mxu1 %vm2272_vm0, %v2271_v0 }
 0x835   :  { %2027 = vmatprep.subr.bf16.mxu1 %v2271_v0 }
 0x836   :  { %v253_v56 = vpop.permute.xlu1 %252 }
 0x838   :  { %2028 = vmatpush3.bf16.msra.mxu1 %v2358_v6 }
 0x839   :  { %2041 = vmatprep.subr.bf16.mxu1 %v2271_v0 }
 0x87d   :  { %v903_v57 = vpop.permute.xlu0 %902 }
 0x87e   :  { %2022 = vmatmul.mubr.msk.bf16.vlgmr.msra.gmra.mrb[20].mxu0 %vm268_vm4, %v903_v57 }
 0x87f   :  { %2034 = vmatpush3.bf16.msra.mxu0 %v2383_v12  ;;  %2037 = vmatprep.mubr.msk.bf16.mxu0 %vm2272_vm0, %v2271_v0 }
 0x880   :  { %2035 = vmatprep.subr.bf16.mxu0 %v2271_v0 }
 0x881   :  { %v255_v45 = vpop.permute.xlu0 %254 }
 0x882   :  { %v273_v49 = vsel %vm268_vm4, %v253_v56, %v255_v45 }
 0x883   :  { %290 = vst.msk [vmem:[#allocation2 + $0x60] sm:$0xff] %vm211_vm2, %v273_v49  ;;  %2036 = vmatpush3.bf16.msra.mxu0 %v2389_v13 }
 0x884   :  { %2049 = vmatprep.subr.bf16.mxu0 %v2271_v0 }
 0x88a   :  { %v820_v25 = vld [vmem:[#allocation2 + $0x60] sm:$0xff] }
 0x906   :  { %v862_v51 = vpop.f32.mrb[20].mxu1 }
 0x907   :  { %v863_v53 = vadd.f32 %v2430_v19, %v862_v51  ;;  %v2015_v55 = vpop.f32.mrb[21].mxu1 }
 0x908   :  { %v865_v59 = vpop.f32.mrb[22].mxu1 }
 0x909   :  { %876 = vrot.lane.b32.xlu1 %v863_v53, %s2274_s0  ;;  %v2016_v61 = vpop.f32.mrb[23].mxu1  ;;  %v868_v1 = vadd.f32 %v863_v53, %v819_v11 }
 0x90b   :  { %v1874_v14 = vmul.f32 -1.442695, %v868_v1 }
 0x90d   :  { %2205 = vpow2.f32 %v1874_v14 }
 0x917   :  { %v2206_v15 = vpop.eup %2205 }
 0x918   :  { %v872_v17 = vadd.f32 1.0, %v2206_v15 }
 0x91a   :  { %2207 = vrcp.f32 %v872_v17 }
 0x924   :  { %v2208_v20 = vpop.eup %2207 }
 0x925   :  { %v886_v16 = vsub.f32 1.0, %v2208_v20  ;;  %v892_v56 = vmul.f32 %v2208_v20, %v2623_v31 }
 0x951   :  { %v941_v4 = vpop.f32.mrb[20].mxu0 }
 0x952   :  { %v942_v5 = vadd.f32 %v2443_v32, %v941_v4  ;;  %v2023_v7 = vpop.f32.mrb[21].mxu0 }
 0x953   :  { %v944_v8 = vpop.f32.mrb[22].mxu0 }
 0x954   :  { %955 = vrot.lane.b32.xlu0 %v942_v5, %s2274_s0  ;;  %v2024_v10 = vpop.f32.mrb[23].mxu0  ;;  %v947_v26 = vadd.f32 %v942_v5, %v820_v25 }
 0x956   :  { %v1876_v27 = vmul.f32 -1.442695, %v947_v26 }
 0x958   :  { %2209 = vpow2.f32 %v1876_v27 }
 0x962   :  { %v2210_v9 = vpop.eup %2209 }
 0x963   :  { %v951_v60 = vadd.f32 1.0, %v2210_v9 }
 0x965   :  { %2211 = vrcp.f32 %v951_v60 }
 0x96f   :  { %v2212_v28 = vpop.eup %2211 }
 0x970   :  { %v965_v55 = vsub.f32 1.0, %v2212_v28  ;;  %v971_v61 = vmul.f32 %v2212_v28, %v2637_v18 }
 0x97b   :  { %v877_v22 = vpop.permute.xlu1 %876 }
 0x97c   :  { %v879_v23 = vmul.f32 %v2208_v20, %v877_v22 }
 0x97e   :  { %881 = vrot.lane.b32.xlu1 %v879_v23, %s2274_s0  ;;  %v979_v23 = vld [vmem:[#allocation2 + $0x20] sm:$0xff] }
 0x982   :  { %896 = vperm.xlu1 %2148, %v894_v24  }
 0x9c6   :  { %v956_v29 = vpop.permute.xlu0 %955 }
 0x9c7   :  { %v958_v30 = vmul.f32 %v2212_v28, %v956_v29 }
 0x9c9   :  { %960 = vrot.lane.b32.xlu0 %v958_v30, %s2274_s0 }
 0x9cd   :  { %975 = vperm.xlu0 %2147, %v973_v34  }
 0x9f0   :  { %v882_v37 = vpop.permute.xlu1 %881 }
 0x9f1   :  { %v884_v39 = vadd.f32 %v882_v37, %v819_v11 }
 0x9f3   :  { %2213 = vtanh.f32 %v884_v39 }
 0x9fd   :  { %v2214_v40 = vpop.eup %2213 }
 0x9fe   :  { %888 = vrot.lane.b32.xlu1 %v2214_v40, %s2276_s1 }
 0xa01   :  { %v2672_v54 = vpop.permute.xlu1 %896 }
 0xa02   :  { %vm898_vm5 = vcmp.eq.s32.totalorder %v2672_v54, 1  ;;  %v2759_v54 = vld [vmem:[%s2943_s3 + $0x8] sm:$0xff]  }
 0xa3b   :  { %v961_v41 = vpop.permute.xlu0 %960 }
 0xa3c   :  { %v963_v43 = vadd.f32 %v961_v41, %v820_v25 }
 0xa3e   :  { %2215 = vtanh.f32 %v963_v43 }
 0xa48   :  { %v2216_v44 = vpop.eup %2215 }
 0xa49   :  { %967 = vrot.lane.b32.xlu0 %v2216_v44, %s2276_s1 }
 0xa4c   :  { %v2686_v53 = vpop.permute.xlu0 %975 }
 0xa4d   :  { %vm977_vm8 = vcmp.eq.s32.totalorder %v2686_v53, 1 }
 0xa70   :  { %v889_v57 = vpop.permute.xlu1 %888 }
 0xa71   :  { %v891_v3 = vmul.f32 %v889_v57, %v886_v16 }
 0xa73   :  { %v893_v45 = vadd.f32 %v892_v56, %v891_v3 }
 0xa75   :  { %v2679_v49 = vsel %vm898_vm5, %v893_v45, %v2623_v31 }
 0xa76   :  { %v981_v51 = vpack.c.bf16 %v2679_v49, %v2679_v49 }
 0xa78   :  { %983 = vrot.lane.b32.xlu1 %v981_v51, %s2276_s1 }
 0xa7c   :  { %248 = vrot.lane.b32.xlu1 %v2465_v50, %s2275_s4 }
 0xabb   :  { %v968_v59 = vpop.permute.xlu0 %967 }
 0xabc   :  { %v970_v4 = vmul.f32 %v968_v59, %v965_v55 }
 0xabe   :  { %v972_v5 = vadd.f32 %v971_v61, %v970_v4 }
 0xac0   :  { %v2693_v31 = vsel %vm977_vm8, %v972_v5, %v2637_v18 }
 0xac1   :  { %v1055_v7 = vpack.c.bf16 %v2693_v31, %v2693_v31 }
 0xac3   :  { %1057 = vrot.lane.b32.xlu0 %v1055_v7, %s2276_s1 }
 0xac7   :  { %250 = vrot.lane.b32.xlu0 %v2467_v52, %s2275_s4 }
 0xaea   :  { %v984_v50 = vpop.permute.xlu1 %983 }
 0xaeb   :  { %2030 = vmatmul.mubr.msk.bf16.vlgmr.msra.gmra.mrb[24].mxu1 %vm268_vm4, %v984_v50 }
 0xaec   :  { %2042 = vmatpush3.bf16.msra.mxu1 %v2342_v2  ;;  %2045 = vmatprep.mubr.msk.bf16.mxu1 %vm2272_vm0, %v2271_v0 }
 0xaed   :  { %2043 = vmatprep.subr.bf16.mxu1 %v2271_v0 }
 0xaee   :  { %v249_v2 = vpop.permute.xlu1 %248 }
 0xaf0   :  { %2044 = vmatpush3.bf16.msra.mxu1 %v2358_v6 }
 0xaf1   :  { %2057 = vmatprep.subr.bf16.mxu1 %v2271_v0 }
 0xb35   :  { %v1058_v18 = vpop.permute.xlu0 %1057 }
 0xb36   :  { %2038 = vmatmul.mubr.msk.bf16.vlgmr.msra.gmra.mrb[24].mxu0 %vm268_vm4, %v1058_v18 }
 0xb37   :  { %2050 = vmatpush3.bf16.msra.mxu0 %v2383_v12  ;;  %2053 = vmatprep.mubr.msk.bf16.mxu0 %vm2272_vm0, %v2271_v0 }
 0xb38   :  { %2051 = vmatprep.subr.bf16.mxu0 %v2271_v0 }
 0xb39   :  { %v251_v52 = vpop.permute.xlu0 %250 }
 0xb3a   :  { %v272_v8 = vsel %vm268_vm4, %v249_v2, %v251_v52 }
 0xb3b   :  { %289 = vst.msk [vmem:[#allocation2 + $0x58] sm:$0xff] %vm211_vm2, %v272_v8  ;;  %2052 = vmatpush3.bf16.msra.mxu0 %v2389_v13  ;;  %v2750_v8 = vld [vmem:[%s2943_s3] sm:$0xff]  }
 0xb3c   :  { %2065 = vmatprep.subr.bf16.mxu0 %v2271_v0 }
 0xb42   :  { %v980_v28 = vld [vmem:[#allocation2 + $0x58] sm:$0xff] }
 0xbbe   :  { %v1022_v6 = vpop.f32.mrb[24].mxu1 }
 0xbbf   :  { %v1023_v10 = vadd.f32 %v2430_v19, %v1022_v6  ;;  %v2031_v11 = vpop.f32.mrb[25].mxu1 }
 0xbc0   :  { %v1025_v12 = vpop.f32.mrb[26].mxu1 }
 0xbc1   :  { %1036 = vrot.lane.b32.xlu1 %v1023_v10, %s2274_s0  ;;  %v2032_v1 = vpop.f32.mrb[27].mxu1  ;;  %v1028_v13 = vadd.f32 %v1023_v10, %v979_v23  ;;  %v2778_v12 = vld [vmem:[%s2943_s3 + $0x18] sm:$0xff]  }
 0xbc3   :  { %v1878_v24 = vmul.f32 -1.442695, %v1028_v13 }
 0xbc5   :  { %2217 = vpow2.f32 %v1878_v24 }
 0xbcf   :  { %v2218_v25 = vpop.eup %2217 }
 0xbd0   :  { %v1032_v26 = vadd.f32 1.0, %v2218_v25 }
 0xbd2   :  { %2219 = vrcp.f32 %v1032_v26  ;;  %v1129_v26 = vld [vmem:[#allocation2 + $0x28] sm:$0xff] }
 0xbdc   :  { %v2220_v27 = vpop.eup %2219 }
 0xbdd   :  { %v1046_v45 = vsub.f32 1.0, %v2220_v27  ;;  %v1052_v55 = vmul.f32 %v2220_v27, %v2679_v49 }
 0xc09   :  { %v1096_v14 = vpop.f32.mrb[24].mxu0 }
 0xc0a   :  { %v1097_v15 = vadd.f32 %v2443_v32, %v1096_v14  ;;  %v2039_v17 = vpop.f32.mrb[25].mxu0 }
 0xc0b   :  { %v1099_v20 = vpop.f32.mrb[26].mxu0 }
 0xc0c   :  { %1110 = vrot.lane.b32.xlu0 %v1097_v15, %s2274_s0  ;;  %v2040_v22 = vpop.f32.mrb[27].mxu0  ;;  %v1102_v29 = vadd.f32 %v1097_v15, %v980_v28 }
 0xc0e   :  { %v1880_v30 = vmul.f32 -1.442695, %v1102_v29 }
 0xc10   :  { %2221 = vpow2.f32 %v1880_v30 }
 0xc1a   :  { %v2222_v34 = vpop.eup %2221 }
 0xc1b   :  { %v1106_v37 = vadd.f32 1.0, %v2222_v34 }
 0xc1d   :  { %2223 = vrcp.f32 %v1106_v37 }
 0xc27   :  { %v2224_v39 = vpop.eup %2223 }
 0xc28   :  { %v1120_v7 = vsub.f32 1.0, %v2224_v39  ;;  %v1126_v18 = vmul.f32 %v2224_v39, %v2693_v31 }
 0xc33   :  { %v1037_v9 = vpop.permute.xlu1 %1036 }
 0xc34   :  { %v1039_v60 = vmul.f32 %v2220_v27, %v1037_v9 }
 0xc36   :  { %1041 = vrot.lane.b32.xlu1 %v1039_v60, %s2274_s0 }
 0xc7e   :  { %v1111_v40 = vpop.permute.xlu0 %1110 }
 0xc7f   :  { %v1113_v41 = vmul.f32 %v2224_v39, %v1111_v40 }
 0xc81   :  { %1115 = vrot.lane.b32.xlu0 %v1113_v41, %s2274_s0 }
 0xca8   :  { %v1042_v43 = vpop.permute.xlu1 %1041 }
 0xca9   :  { %v1044_v44 = vadd.f32 %v1042_v43, %v979_v23 }
 0xcab   :  { %2225 = vtanh.f32 %v1044_v44 }
 0xcb5   :  { %v2226_v16 = vpop.eup %2225 }
 0xcb6   :  { %1048 = vrot.lane.b32.xlu1 %v2226_v16, %s2276_s1 }
 0xcf3   :  { %v1116_v57 = vpop.permute.xlu0 %1115 }
 0xcf4   :  { %v1118_v56 = vadd.f32 %v1116_v57, %v980_v28 }
 0xcf6   :  { %2227 = vtanh.f32 %v1118_v56 }
 0xd00   :  { %v2228_v3 = vpop.eup %2227 }
 0xd01   :  { %1122 = vrot.lane.b32.xlu0 %v2228_v3, %s2276_s1 }
 0xd28   :  { %v1049_v51 = vpop.permute.xlu1 %1048 }
 0xd29   :  { %v1051_v59 = vmul.f32 %v1049_v51, %v1046_v45 }
 0xd2b   :  { %v1053_v61 = vadd.f32 %v1052_v55, %v1051_v59 }
 0xd2d   :  { %v2728_v4 = vsel %vm977_vm8, %v1053_v61, %v2679_v49 }
 0xd2e   :  { %v1131_v5 = vpack.c.bf16 %v2728_v4, %v2728_v4 }
 0xd30   :  { %1133 = vrot.lane.b32.xlu1 %v1131_v5, %s2276_s1 }
 0xd34   :  { %244 = vrot.lane.b32.xlu1 %v2459_v46, %s2275_s4 }
 0xd73   :  { %v1123_v50 = vpop.permute.xlu0 %1122 }
 0xd74   :  { %v1125_v2 = vmul.f32 %v1123_v50, %v1120_v7 }
 0xd76   :  { %v1127_v52 = vadd.f32 %v1126_v18, %v1125_v2 }
 0xd78   :  { %v2739_v53 = vsel %vm898_vm5, %v1127_v52, %v2693_v31  ;;  %v2767_v31 = vld [vmem:[%s2943_s3 + $0x10] sm:$0xff]  }
 0xd79   :  { %v1205_v49 = vpack.c.bf16 %v2739_v53, %v2739_v53 }
 0xd7b   :  { %1207 = vrot.lane.b32.xlu0 %v1205_v49, %s2276_s1 }
 0xd7f   :  { %246 = vrot.lane.b32.xlu0 %v2461_v48, %s2275_s4 }
 0xda2   :  { %v1134_v46 = vpop.permute.xlu1 %1133 }
 0xda3   :  { %2046 = vmatmul.mubr.msk.bf16.vlgmr.msra.gmra.mrb[28].mxu1 %vm268_vm4, %v1134_v46 }
 0xda4   :  { %2058 = vmatpush3.bf16.msra.mxu1 %v2750_v8  ;;  %2061 = vmatprep.mubr.msk.bf16.mxu1 %vm2272_vm0, %v2271_v0 }
 0xda5   :  { %2059 = vmatprep.subr.bf16.mxu1 %v2271_v0 }
 0xda6   :  { %v245_v6 = vpop.permute.xlu1 %244 }
 0xda8   :  { %2060 = vmatpush3.bf16.msra.mxu1 %v2759_v54 }
 0xda9   :  { %2073 = vmatprep.subr.bf16.mxu1 %v2271_v0 }
 0xded   :  { %v1208_v48 = vpop.permute.xlu0 %1207 }
 0xdee   :  { %2054 = vmatmul.mubr.msk.bf16.vlgmr.msra.gmra.mrb[28].mxu0 %vm268_vm4, %v1208_v48 }
 0xdef   :  { %2066 = vmatpush3.bf16.msra.mxu0 %v2767_v31  ;;  %2069 = vmatprep.mubr.msk.bf16.mxu0 %vm2272_vm0, %v2271_v0 }
 0xdf0   :  { %2067 = vmatprep.subr.bf16.mxu0 %v2271_v0 }
 0xdf1   :  { %v247_v10 = vpop.permute.xlu0 %246 }
 0xdf2   :  { %v271_v11 = vsel %vm268_vm4, %v245_v6, %v247_v10 }
 0xdf3   :  { %288 = vst.msk [vmem:[#allocation2 + $0x50] sm:$0xff] %vm211_vm2, %v271_v11  ;;  %2068 = vmatpush3.bf16.msra.mxu0 %v2778_v12 }
 0xdf4   :  { %2081 = vmatprep.subr.bf16.mxu0 %v2271_v0 }
 0xdfa   :  { %v1130_v34 = vld [vmem:[#allocation2 + $0x50] sm:$0xff] }
 0xe76   :  { %v1172_v1 = vpop.f32.mrb[28].mxu1 }
 0xe77   :  { %v1173_v14 = vadd.f32 %v2430_v19, %v1172_v1  ;;  %v2047_v15 = vpop.f32.mrb[29].mxu1 }
 0xe78   :  { %v1175_v17 = vpop.f32.mrb[30].mxu1  ;;  %v2836_v15 = vld [vmem:[%s2945_s5 + $0x1] ss:$0 sm:$0xff] }
 0xe79   :  { %1186 = vrot.lane.b32.xlu1 %v1173_v14, %s2274_s0  ;;  %v2048_v20 = vpop.f32.mrb[31].mxu1  ;;  %v1178_v27 = vadd.f32 %v1173_v14, %v1129_v26 }
 0xe7b   :  { %v1882_v9 = vmul.f32 -1.442695, %v1178_v27 }
 0xe7d   :  { %2229 = vpow2.f32 %v1882_v9 }
 0xe87   :  { %v2230_v60 = vpop.eup %2229 }
 0xe88   :  { %v1182_v28 = vadd.f32 1.0, %v2230_v60 }
 0xe8a   :  { %2231 = vrcp.f32 %v1182_v28 }
 0xe94   :  { %v2232_v19 = vpop.eup %2231 }
 0xe95   :  { %v1196_v55 = vsub.f32 1.0, %v2232_v19  ;;  %v1202_v61 = vmul.f32 %v2232_v19, %v2728_v4 }
 0xec1   :  { %v1246_v22 = vpop.f32.mrb[28].mxu0 }
 0xec2   :  { %v1247_v23 = vadd.f32 %v2443_v32, %v1246_v22  ;;  %v2055_v13 = vpop.f32.mrb[29].mxu0 }
 0xec3   :  { %v1249_v24 = vpop.f32.mrb[30].mxu0 }
 0xec4   :  { %1260 = vrot.lane.b32.xlu0 %v1247_v23, %s2274_s0  ;;  %v2056_v25 = vpop.f32.mrb[31].mxu0  ;;  %v1252_v37 = vadd.f32 %v1247_v23, %v1130_v34  ;;  %v1279_v23 = vld [vmem:[#allocation2 + $0x30] sm:$0xff] }
 0xec6   :  { %v1884_v32 = vmul.f32 -1.442695, %v1252_v37 }
 0xec8   :  { %2233 = vpow2.f32 %v1884_v32 }
 0xed2   :  { %v2234_v39 = vpop.eup %2233 }
 0xed3   :  { %v1256_v40 = vadd.f32 1.0, %v2234_v39 }
 0xed5   :  { %2235 = vrcp.f32 %v1256_v40 }
 0xedf   :  { %v2236_v41 = vpop.eup %2235 }
 0xee0   :  { %v1270_v2 = vsub.f32 1.0, %v2236_v41  ;;  %v1276_v49 = vmul.f32 %v2236_v41, %v2739_v53 }
 0xeeb   :  { %v1187_v29 = vpop.permute.xlu1 %1186 }
 0xeec   :  { %v1189_v30 = vmul.f32 %v2232_v19, %v1187_v29 }
 0xeee   :  { %1191 = vrot.lane.b32.xlu1 %v1189_v30, %s2274_s0 }
 0xf36   :  { %v1261_v43 = vpop.permute.xlu0 %1260 }
 0xf37   :  { %v1263_v44 = vmul.f32 %v2236_v41, %v1261_v43 }
 0xf39   :  { %1265 = vrot.lane.b32.xlu0 %v1263_v44, %s2274_s0 }
 0xf60   :  { %v1192_v16 = vpop.permute.xlu1 %1191 }
 0xf61   :  { %v1194_v57 = vadd.f32 %v1192_v16, %v1129_v26 }
 0xf63   :  { %2237 = vtanh.f32 %v1194_v57 }
 0xf6d   :  { %v2238_v56 = vpop.eup %2237 }
 0xf6e   :  { %1198 = vrot.lane.b32.xlu1 %v2238_v56, %s2276_s1 }
 0xfab   :  { %v1266_v3 = vpop.permute.xlu0 %1265 }
 0xfac   :  { %v1268_v45 = vadd.f32 %v1266_v3, %v1130_v34 }
 0xfae   :  { %2239 = vtanh.f32 %v1268_v45 }
 0xfb8   :  { %v2240_v51 = vpop.eup %2239 }
 0xfb9   :  { %1272 = vrot.lane.b32.xlu0 %v2240_v51, %s2276_s1 }
 0xfe0   :  { %v1199_v59 = vpop.permute.xlu1 %1198 }
 0xfe1   :  { %v1201_v5 = vmul.f32 %v1199_v59, %v1196_v55 }
 0xfe3   :  { %v1203_v7 = vadd.f32 %v1202_v61, %v1201_v5 }
 0xfe5   :  { %v2794_v50 = vsel %vm815_vm15, %v1203_v7, %v2728_v4 }
 0xfe6   :  { %v1281_v18 = vpack.c.bf16 %v2794_v50, %v2794_v50 }
 0xfe8   :  { %1283 = vrot.lane.b32.xlu1 %v1281_v18, %s2276_s1 }
 0xfec   :  { %240 = vrot.lane.b32.xlu1 %v2451_v38, %s2275_s4 }
0x102b   :  { %v1273_v52 = vpop.permute.xlu0 %1272 }
0x102c   :  { %v1275_v46 = vmul.f32 %v1273_v52, %v1270_v2 }
0x102e   :  { %v1277_v48 = vadd.f32 %v1276_v49, %v1275_v46 }
0x1030   :  { %v2805_v36 = vsel %vm736_vm14, %v1277_v48, %v2739_v53 }
0x1031   :  { %v1355_v4 = vpack.c.bf16 %v2805_v36, %v2805_v36 }
0x1033   :  { %1357 = vrot.lane.b32.xlu0 %v1355_v4, %s2276_s1 }
0x1037   :  { %242 = vrot.lane.b32.xlu0 %v2454_v42, %s2275_s4 }
0x105a   :  { %v1284_v38 = vpop.permute.xlu1 %1283 }
0x105b   :  { %2062 = vmatmul.mubr.msk.bf16.vlgmr.msra.gmra.mrb[32].mxu1 %vm268_vm4, %v1284_v38 }
0x105c   :  { %2074 = vmatpush3.bf16.msra.mxu1 %v2750_v8  ;;  %2077 = vmatprep.mubr.msk.bf16.mxu1 %vm2272_vm0, %v2271_v0 }
0x105d   :  { %2075 = vmatprep.subr.bf16.mxu1 %v2271_v0 }
0x105e   :  { %v241_v42 = vpop.permute.xlu1 %240 }
0x1060   :  { %2076 = vmatpush3.bf16.msra.mxu1 %v2759_v54  ;;  %v2829_v54 = vld [vmem:[%s2945_s5] ss:$0 sm:$0xff] }
0x10a5   :  { %v1358_v58 = vpop.permute.xlu0 %1357 }
0x10a6   :  { %2070 = vmatmul.mubr.msk.bf16.vlgmr.msra.gmra.mrb[32].mxu0 %vm268_vm4, %v1358_v58 }
0x10a7   :  { %2082 = vmatpush3.bf16.msra.mxu0 %v2767_v31  ;;  %2085 = vmatprep.mubr.msk.bf16.mxu0 %vm2272_vm0, %v2271_v0 }
0x10a8   :  { %2083 = vmatprep.subr.bf16.mxu0 %v2271_v0 }
0x10a9   :  { %v243_v53 = vpop.permute.xlu0 %242 }
0x10aa   :  { %v270_v8 = vsel %vm268_vm4, %v241_v42, %v243_v53 }
0x10ab   :  { %287 = vst.msk [vmem:[#allocation2 + $0x48] sm:$0xff] %vm211_vm2, %v270_v8  ;;  %2084 = vmatpush3.bf16.msra.mxu0 %v2778_v12 }
0x10b2   :  { %v1280_v28 = vld [vmem:[#allocation2 + $0x48] sm:$0xff] }
0x112e   :  { %v1322_v6 = vpop.f32.mrb[32].mxu1 }
0x112f   :  { %v1323_v31 = vadd.f32 %v2829_v54, %v1322_v6  ;;  %v2063_v10 = vpop.f32.mrb[33].mxu1 }
0x1130   :  { %v1325_v11 = vpop.f32.mrb[34].mxu1  ;;  %v1429_v10 = vld [vmem:[#allocation2 + $0x38] sm:$0xff] }
0x1131   :  { %1336 = vrot.lane.b32.xlu1 %v1323_v31, %s2274_s0  ;;  %v2064_v1 = vpop.f32.mrb[35].mxu1  ;;  %v1328_v13 = vadd.f32 %v1323_v31, %v1279_v23 }
0x1133   :  { %v1886_v24 = vmul.f32 -1.442695, %v1328_v13 }
0x1135   :  { %2241 = vpow2.f32 %v1886_v24 }
0x113f   :  { %v2242_v25 = vpop.eup %2241 }
0x1140   :  { %v1332_v26 = vadd.f32 1.0, %v2242_v25 }
0x1142   :  { %2243 = vrcp.f32 %v1332_v26 }
0x114c   :  { %v2244_v27 = vpop.eup %2243 }
0x114d   :  { %v1346_v56 = vsub.f32 1.0, %v2244_v27  ;;  %v1352_v45 = vmul.f32 %v2244_v27, %v2794_v50 }
0x1179   :  { %v1396_v14 = vpop.f32.mrb[32].mxu0 }
0x117a   :  { %v1397_v12 = vadd.f32 %v2836_v15, %v1396_v14  ;;  %v2071_v17 = vpop.f32.mrb[33].mxu0 }
0x117b   :  { %v1399_v20 = vpop.f32.mrb[34].mxu0 }
0x117c   :  { %1410 = vrot.lane.b32.xlu0 %v1397_v12, %s2274_s0  ;;  %v2072_v22 = vpop.f32.mrb[35].mxu0  ;;  %v1402_v19 = vadd.f32 %v1397_v12, %v1280_v28 }
0x117e   :  { %v1888_v29 = vmul.f32 -1.442695, %v1402_v19 }
0x1180   :  { %2245 = vpow2.f32 %v1888_v29 }
0x118a   :  { %v2246_v30 = vpop.eup %2245 }
0x118b   :  { %v1406_v34 = vadd.f32 1.0, %v2246_v30  ;;  %v2277_v30 = vmov 0.0|0.0  }
0x118c   :  { %2128 = vmatprep.subr.bf16.mxu0 %v2277_v30  ;;  %2122 = vmatprep.subr.bf16.mxu1 %v2277_v30 }
0x118d   :  { %2247 = vrcp.f32 %v1406_v34  ;;  %v1579_v34 = vld [vmem:[%s2948_s6] sm:$0xff] }
0x1197   :  { %v2248_v37 = vpop.eup %2247 }
0x1198   :  { %v1420_v5 = vsub.f32 1.0, %v2248_v37  ;;  %v1426_v18 = vmul.f32 %v2248_v37, %v2805_v36 }
0x11a3   :  { %v1337_v9 = vpop.permute.xlu1 %1336 }
0x11a4   :  { %v1339_v60 = vmul.f32 %v2244_v27, %v1337_v9 }
0x11a6   :  { %1341 = vrot.lane.b32.xlu1 %v1339_v60, %s2274_s0 }
0x11ee   :  { %v1411_v32 = vpop.permute.xlu0 %1410 }
0x11ef   :  { %v1413_v39 = vmul.f32 %v2248_v37, %v1411_v32  ;;  %v1580_v37 = vld [vmem:[%s2948_s6 + $0x8] sm:$0xff]  ;;  %v1581_v32 = vld [vmem:[%s2948_s6 + $0x10] sm:$0xff] }
0x11f1   :  { %1415 = vrot.lane.b32.xlu0 %v1413_v39, %s2274_s0  ;;  %v2129_v39 = vpack.c.bf16 %v1580_v37, %v1579_v34 }
0x1218   :  { %v1342_v40 = vpop.permute.xlu1 %1341 }
0x1219   :  { %v1344_v41 = vadd.f32 %v1342_v40, %v1279_v23  ;;  %v1582_v40 = vld [vmem:[%s2948_s6 + $0x18] sm:$0xff] }
0x121b   :  { %2249 = vtanh.f32 %v1344_v41  ;;  %v2132_v41 = vpack.c.bf16 %v1582_v40, %v1581_v32 }
0x1225   :  { %v2250_v43 = vpop.eup %2249 }
0x1226   :  { %1348 = vrot.lane.b32.xlu1 %v2250_v43, %s2276_s1 }
0x1263   :  { %v1416_v44 = vpop.permute.xlu0 %1415 }
0x1264   :  { %v1418_v16 = vadd.f32 %v1416_v44, %v1280_v28  ;;  %v1583_v44 = vld [vmem:[%s2948_s6 + $0x20] sm:$0xff] }
0x1266   :  { %2251 = vtanh.f32 %v1418_v16  ;;  %v1584_v16 = vld [vmem:[%s2948_s6 + $0x28] sm:$0xff] }
0x1270   :  { %v2252_v57 = vpop.eup %2251 }
0x1271   :  { %1422 = vrot.lane.b32.xlu0 %v2252_v57, %s2276_s1  ;;  %v1585_v57 = vld [vmem:[%s2948_s6 + $0x30] sm:$0xff] }
0x1298   :  { %v1349_v3 = vpop.permute.xlu1 %1348 }
0x1299   :  { %v1351_v51 = vmul.f32 %v1349_v3, %v1346_v56  ;;  %v2123_v56 = vpack.c.bf16 %v1584_v16, %v1583_v44  ;;  %v1586_v3 = vld [vmem:[%s2948_s6 + $0x38] sm:$0xff] }
0x129b   :  { %v1353_v55 = vadd.f32 %v1352_v45, %v1351_v51  ;;  %v2126_v45 = vpack.c.bf16 %v1586_v3, %v1585_v57 }
0x129d   :  { %v2848_v59 = vsel %vm653_vm11, %v1353_v55, %v2794_v50 }
0x129e   :  { %v1431_v61 = vpack.c.bf16 %v2848_v59, %v2848_v59 }
0x12a0   :  { %1433 = vrot.lane.b32.xlu1 %v1431_v61, %s2276_s1 }
0x12a4   :  { %236 = vrot.lane.b32.xlu1 %v2445_v33, %s2275_s4 }
0x12e3   :  { %v1423_v7 = vpop.permute.xlu0 %1422 }
0x12e4   :  { %v1425_v2 = vmul.f32 %v1423_v7, %v1420_v5 }
0x12e6   :  { %v1427_v52 = vadd.f32 %v1426_v18, %v1425_v2 }
0x12e8   :  { %v2859_v21 = vsel %vm574_vm10, %v1427_v52, %v2805_v36 }
0x12e9   :  { %v1505_v50 = vpack.c.bf16 %v2859_v21, %v2859_v21 }
0x12eb   :  { %1507 = vrot.lane.b32.xlu0 %v1505_v50, %s2276_s1 }
0x12ef   :  { %238 = vrot.lane.b32.xlu0 %v2447_v35, %s2275_s4 }
0x1312   :  { %v1434_v33 = vpop.permute.xlu1 %1433 }
0x1313   :  { %2078 = vmatmul.mubr.msk.bf16.vlgmr.msra.gmra.mrb[36].mxu1 %vm268_vm4, %v1434_v33 }
0x1314   :  { %2097 = vmatprep.mubr.msk.f32.mxu1 %vm2272_vm0, %v2271_v0  ;;  %2124 = vmatpush3.bf16.msra.mxu1 %v2123_v56 }
0x1315   :  { %2125 = vmatprep.subr.bf16.mxu1 %v2277_v30 }
0x1316   :  { %v237_v62 = vpop.permute.xlu1 %236 }
0x1318   :  { %2127 = vmatpush3.bf16.msra.mxu1 %v2126_v45 }
0x1319   :  { %2134 = vmatprep.subr.bf16.mxu1 %v2277_v30 }
0x135d   :  { %v1508_v49 = vpop.permute.xlu0 %1507 }
0x135e   :  { %2086 = vmatmul.mubr.msk.bf16.vlgmr.msra.gmra.mrb[36].mxu0 %vm268_vm4, %v1508_v49 }
0x135f   :  { %2108 = vmatprep.mubr.msk.f32.mxu0 %vm2272_vm0, %v2271_v0  ;;  %2130 = vmatpush3.bf16.msra.mxu0 %v2129_v39 }
0x1360   :  { %2131 = vmatprep.subr.bf16.mxu0 %v2277_v30 }
0x1361   :  { %v239_v46 = vpop.permute.xlu0 %238 }
0x1362   :  { %v269_v48 = vsel %vm268_vm4, %v237_v62, %v239_v46 }
0x1363   :  { %286 = vst.msk [vmem:[#allocation2 + $0x40] sm:$0xff] %vm211_vm2, %v269_v48  ;;  %2133 = vmatpush3.bf16.msra.mxu0 %v2132_v41 }
0x136a   :  { %v1430_v22 = vld [vmem:[#allocation2 + $0x40] sm:$0xff] }
0x13e6   :  { %v1472_v36 = vpop.f32.mrb[36].mxu1 }
0x13e7   :  { %v1473_v35 = vadd.f32 %v2829_v54, %v1472_v36  ;;  %v2079_v4 = vpop.f32.mrb[37].mxu1  ;;  %v1749_v36 = vld [vmem:[%s2949_s8 + $0x18] sm:$0xff] }
0x13e8   :  { %v1475_v38 = vpop.f32.mrb[38].mxu1 }
0x13e9   :  { %1486 = vrot.lane.b32.xlu1 %v1473_v35, %s2274_s0  ;;  %v2080_v58 = vpop.f32.mrb[39].mxu1  ;;  %v1478_v11 = vadd.f32 %v1473_v35, %v1429_v10 }
0x13ea   :  { %v1895_v58 = vld [vmem:[%s2950_s7] ss:$0 sm:$0xff] }
0x13eb   :  { %v1890_v1 = vmul.f32 -1.442695, %v1478_v11 }
0x13ed   :  { %2253 = vpow2.f32 %v1890_v1 }
0x13f7   :  { %v2254_v14 = vpop.eup %2253 }
0x13f8   :  { %v1482_v12 = vadd.f32 1.0, %v2254_v14 }
0x13fa   :  { %2255 = vrcp.f32 %v1482_v12 }
0x1404   :  { %v2256_v54 = vpop.eup %2255 }
0x1405   :  { %v1496_v51 = vsub.f32 1.0, %v2256_v54  ;;  %v1502_v61 = vmul.f32 %v2256_v54, %v2848_v59 }
0x1431   :  { %v1546_v42 = vpop.f32.mrb[36].mxu0 }
0x1432   :  { %v1547_v53 = vadd.f32 %v2836_v15, %v1546_v42  ;;  %v2087_v8 = vpop.f32.mrb[37].mxu0 }
0x1433   :  { %v1549_v6 = vpop.f32.mrb[38].mxu0 }
0x1434   :  { %1560 = vrot.lane.b32.xlu0 %v1547_v53, %s2274_s0  ;;  %v2088_v31 = vpop.f32.mrb[39].mxu0  ;;  %v1552_v23 = vadd.f32 %v1547_v53, %v1430_v22 }
0x1435   :  { %v1896_v31 = vld [vmem:[%s2951_s9] ss:$0 sm:$0xff] }
0x1436   :  { %v1892_v15 = vmul.f32 -1.442695, %v1552_v23 }
0x1438   :  { %2257 = vpow2.f32 %v1892_v15 }
0x1442   :  { %v2258_v13 = vpop.eup %2257 }
0x1443   :  { %v1556_v24 = vadd.f32 1.0, %v2258_v13 }
0x1445   :  { %2259 = vrcp.f32 %v1556_v24 }
0x144f   :  { %v2260_v25 = vpop.eup %2259 }
0x1450   :  { %v1570_v2 = vsub.f32 1.0, %v2260_v25  ;;  %v1576_v50 = vmul.f32 %v2260_v25, %v2859_v21 }
0x145b   :  { %v1487_v17 = vpop.permute.xlu1 %1486 }
0x145c   :  { %v1489_v20 = vmul.f32 %v2256_v54, %v1487_v17 }
0x145e   :  { %1491 = vrot.lane.b32.xlu1 %v1489_v20, %s2274_s0 }
0x14a6   :  { %v1561_v26 = vpop.permute.xlu0 %1560 }
0x14a7   :  { %v1563_v27 = vmul.f32 %v2260_v25, %v1561_v26 }
0x14a9   :  { %1565 = vrot.lane.b32.xlu0 %v1563_v27, %s2274_s0 }
0x14d0   :  { %v1492_v9 = vpop.permute.xlu1 %1491 }
0x14d1   :  { %v1494_v60 = vadd.f32 %v1492_v9, %v1429_v10 }
0x14d3   :  { %2261 = vtanh.f32 %v1494_v60 }
0x14dd   :  { %v2262_v28 = vpop.eup %2261 }
0x14de   :  { %1498 = vrot.lane.b32.xlu1 %v2262_v28, %s2276_s1 }
0x151b   :  { %v1566_v19 = vpop.permute.xlu0 %1565 }
0x151c   :  { %v1568_v29 = vadd.f32 %v1566_v19, %v1430_v22 }
0x151e   :  { %2263 = vtanh.f32 %v1568_v29 }
0x1528   :  { %v2264_v43 = vpop.eup %2263 }
0x1529   :  { %1572 = vrot.lane.b32.xlu0 %v2264_v43, %s2276_s1 }
0x1550   :  { %v1499_v55 = vpop.permute.xlu1 %1498 }
0x1551   :  { %v1501_v5 = vmul.f32 %v1499_v55, %v1496_v51 }
0x1553   :  { %v1503_v7 = vadd.f32 %v1502_v61, %v1501_v5 }
0x1555   :  { %v1504_v18 = vsel %vm491_vm7, %v1503_v7, %v2848_v59  ;;  %v2135_v59 = vpack.c.bf16 %v1747_v47, %v1746_v63 }
0x1556   :  { %1663 = vrot.lane.b32.xlu0 %v1504_v18, %s2276_s1 }
0x159b   :  { %v1573_v52 = vpop.permute.xlu0 %1572 }
0x159c   :  { %v1575_v33 = vmul.f32 %v1573_v52, %v1570_v2 }
0x159e   :  { %v1577_v49 = vadd.f32 %v1576_v50, %v1575_v33 }
0x15a0   :  { %v1578_v62 = vsel %vm401_vm6, %v1577_v49, %v2859_v21  ;;  %v1748_v21 = vld [vmem:[%s2949_s8 + $0x10] sm:$0xff] }
0x15a1   :  { %1588 = vrot.lane.b32.xlu1 %v1578_v62, %s2276_s1 }
0x15c8   :  { %v1664_v46 = vpop.permute.xlu0 %1663 }
0x15c9   :  { %2109 = vmatmul.mubr.msk.f32.vlgmr.msra.gmra.mrb[40].mxu0 %vm268_vm4, %v1664_v46 }
0x1613   :  { %v1589_v48 = vpop.permute.xlu1 %1588 }
0x1614   :  { %2098 = vmatmul.mubr.msk.f32.vlgmr.msra.gmra.mrb[40].mxu1 %vm268_vm4, %v1589_v48 }
0x1615   :  { %2119 = vmatprep.mubr.msk.f32.mxu1 %vm2272_vm0, %v2271_v0  ;;  %2136 = vmatpush3.bf16.msra.mxu1 %v2135_v59  ;;  %v2138_v0 = vpack.c.bf16 %v1749_v36, %v1748_v21  ;;  %vm1830_vm0 = vcmask 31744  }
0x1616   :  { %2137 = vmatprep.subr.bf16.mxu1 %v2277_v30 }
0x1619   :  { %2139 = vmatpush3.bf16.msra.mxu1 %v2138_v0 }
0x169c   :  { %v1733_v35 = vpop.f32.mrb[40].mxu0 }
0x169d   :  { %v2110_v4 = vpop.f32.mrb[41].mxu0 }
0x16e7   :  { %v1658_v38 = vpop.f32.mrb[40].mxu1 }
0x16e8   :  { %v1734_v42 = vadd.f32 %v1733_v35, %v1658_v38  ;;  %v2099_v53 = vpop.f32.mrb[41].mxu1 }
0x16ea   :  { %v1744_v8 = vadd.f32 %v1895_v58, %v1734_v42 }
0x16ec   :  { %v1745_v6 = vmax.f32 %v1744_v8, 0.0 }
0x16ee   :  { %2120 = vmatmul.mubr.msk.f32.vlgmr.msra.gmra.mrb[42].mxu1 %vm268_vm4, %v1745_v6 }
0x17c1   :  { %v1826_v10 = vpop.f32.mrb[42].mxu1 }
0x17c2   :  { %v1827_v11 = vadd.f32 %v1896_v31, %v1826_v10  ;;  %v2121_v1 = vpop.f32.mrb[43].mxu1 }
0x17c4   :  { %1831 = vst.msk [vmem:[%s2952_s10] sm:$0xff] %vm1830_vm0, %v1827_v11 }

// kernel: model_forward.2
= control target key start
LH: loop header
LB: loop body
LE: loop exit
PB: predicated region body
PF: predicated region fallthrough
CT: control target
= control target key end

     0   :  { %v2027_v0 = vmov 0.0   ;;  %vm2028_vm0 = vmmov 0   ;;  %v2029_v3 = vmov 0   ;;  %vm89_vm1 = vcmask 261120   ;;  %s2031_s25 = smov 32   ;;  %s2749_s2 = inlined_call_operand.vmem [shape: bf16[32,192], index: 2, kind: input, shape index: {}]   ;;  %s2750_s3 = inlined_call_operand.vmem [shape: bf16[2,32,96], index: 3, kind: input, shape index: {}]   ;;  %s2751_s0 = inlined_call_operand.vmem [shape: bf16[64,32], index: 0, kind: input, shape index: {}]   ;;  %s2752_s4 = inlined_call_operand.vmem [shape: f32[1,192], index: 4, kind: input, shape index: {}]   ;;  %s2753_s5 = inlined_call_operand.vmem [shape: f32[2,1,96], index: 5, kind: input, shape index: {}]   ;;  %s2754_s1 = inlined_call_operand.vmem [shape: s32[8,1], index: 1, kind: input, shape index: {}]   ;;  %s2755_s6 = inlined_call_operand.vmem [shape: bf16[8,8,64], index: 6, kind: output, shape index: {}]  }
   0x1   :  { %1775 = vmatprep.subr.bf16.mxu1 %v2027_v0  ;;  %v1911_v1 = vld [vmem:[%s2749_s2 + $0x4] ss:$8 sps:$4 sm:$0xff]   ;;  %1779 = vmatprep.mubr.msk.bf16.mxu1 %vm2028_vm0, %v2027_v0  ;;  %v1914_v4 = vld [vmem:[%s2749_s2] ss:$8 sps:$4 sm:$0xff]   ;;  %v1915_v5 = vld [vmem:[%s2749_s2 + $0x14] ss:$8 sps:$4 sm:$0xff]   ;;  %v39_v14 = vlaneseq }
   0x2   :  { %v2077_v2 = vld [vmem:[%s2750_s3] sm:$0xff]   ;;  %134 = vmatprep.mubr.bf16.mxu0 %v2029_v3  ;;  %1909 = vset.pattern.permute.xlu0 %v2029_v3  ;;  %v2093_v6 = vld [vmem:[%s2750_s3 + $0x8] sm:$0xff]   ;;  %v1918_v7 = vld [vmem:[%s2749_s2 + $0x10] ss:$8 sps:$4 sm:$0xff]   ;;  %vm175_vm2 = vcmask 785408   ;;  %vm467_vm7 = vcmask 519424  }
   0x3   :  { %102 = vmatprep.subr.bf16.mxu0 %v1911_v1  ;;  %1910 = vset.pattern.permute.xlu1 %v2029_v3  ;;  %v1919_v8 = vld [vmem:[%s2751_s0] sm:$0xff]   ;;  %v2106_v9 = vld [vmem:[%s2750_s3 + $0x10] sm:$0xff]   ;;  %v2115_v10 = vld [vmem:[%s2750_s3 + $0x18] sm:$0xff]   ;;  %v40_v15 = vshrl.u32 %v39_v14, 7 }
   0x4   :  { %1776 = vmatpush3.bf16.msra.mxu1 %v2077_v2  ;;  %103 = vmatpush1.bf16.msra.mxu0 %v1914_v4  ;;  %v1920_v11 = vld [vmem:[%s2751_s0 + $0x8] sm:$0xff]   ;;  %v1921_v12 = vld [vmem:[%s2751_s0 + $0x10] sm:$0xff]   ;;  %v1922_v13 = vld [vmem:[%s2751_s0 + $0x18] sm:$0xff]   ;;  %s2030_s0 = smov 64  }
   0x5   :  { %1777 = vmatprep.subr.bf16.mxu1 %v2027_v0  ;;  %104 = vmatprep.subr.bf16.mxu0 %v1915_v5  ;;  %v41_v16 = vsub.s32 0, %v40_v15  ;;  %v24_v17 = vld [vmem:[%s2752_s4] sm:$0x3]  ;;  %v45_v18 = vsub.s32 1, %v40_v15 }
   0x6   :  { %v2156_v19 = vld [vmem:[%s2753_s5] ss:$0 sm:$0xff]  ;;  %v2205_v62 = vld [vmem:[%s2753_s5 + $0x1] ss:$0 sm:$0xff] }
   0x7   :  { %v42_v20 = vrot.slane %v24_v17, %v41_v16  ;;  %v46_v25 = vrot.slane %v24_v17, %v45_v18 }
   0x8   :  { %1778 = vmatpush3.bf16.msra.mxu1 %v2093_v6  ;;  %105 = vmatpush1.bf16.msra.mxu0 %v1918_v7 }
   0x9   :  { %1783 = vmatprep.subr.bf16.mxu1 %v2027_v0  ;;  %1807 = vmatprep.subr.bf16.mxu0 %v2027_v0 }
   0xb   :  { %1780 = vmatmul.mubr.bf16.vlgmr.msra.gmra.mrb[0].mxu1 %v2029_v3  ;;  %1652 = vmatmul.mubr.msk.bf16.vlgmr.msra.gmra.mrb[0].mxu0 %vm89_vm1, %v1919_v8 }
   0xc   :  { %1784 = vmatpush3.bf16.msra.mxu1 %v2106_v9  ;;  %144 = vmatprep.mubr.bf16.mxu0 %v2029_v3 }
   0xd   :  { %1785 = vmatprep.subr.bf16.mxu1 %v2027_v0  ;;  %1787 = vmatprep.mubr.msk.bf16.mxu1 %vm2028_vm0, %v2027_v0 }
   0xe   :  { %1808 = vmatpush3.bf16.msra.mxu0 %v2077_v2 }
   0xf   :  { %1809 = vmatprep.subr.bf16.mxu0 %v2027_v0 }
  0x10   :  { %1786 = vmatpush3.bf16.msra.mxu1 %v2115_v10 }
  0x11   :  { %1791 = vmatprep.subr.bf16.mxu1 %v2027_v0 }
  0x12   :  { %1810 = vmatpush3.bf16.msra.mxu0 %v2093_v6 }
  0x13   :  { %1788 = vmatmul.mubr.bf16.vlgmr.msra.gmra.mrb[4].mxu1 %v2029_v3  ;;  %1823 = vmatprep.subr.bf16.mxu0 %v2027_v0 }
  0x14   :  { %1653 = vmatmul.mubr.msk.bf16.gmra.mrb[4].mxu0 %vm89_vm1, %v1920_v11  ;;  %1792 = vmatpush3.bf16.msra.mxu1 %v2077_v2 }
  0x15   :  { %154 = vmatprep.mubr.bf16.mxu0 %v2029_v3  ;;  %1793 = vmatprep.subr.bf16.mxu1 %v2027_v0 }
  0x16   :  { %1795 = vmatprep.mubr.msk.bf16.mxu1 %vm2028_vm0, %v2027_v0 }
  0x18   :  { %1794 = vmatpush3.bf16.msra.mxu1 %v2093_v6 }
  0x19   :  { %1799 = vmatprep.subr.bf16.mxu1 %v2027_v0 }
  0x1c   :  { %1654 = vmatmul.mubr.msk.bf16.gmra.mrb[8].mxu0 %vm89_vm1, %v1921_v12  ;;  %v2215_v12 = vld [vmem:[%s2754_s1] sm:$0xff]  ;;  %s2032_s1 = smov 96  }
  0x1d   :  { %164 = vmatprep.mubr.bf16.mxu0 %v2029_v3  ;;  %vm269_vm3 = vcmp.gt.s32.totalorder %v2215_v12, 0  ;;  %vm270_vm4 = vcmp.gt.s32.totalorder %v2215_v12, 7  ;;  %vm469_vm8 = vcmp.gt.s32.totalorder %v2215_v12, 1  ;;  %vm470_vm9 = vcmp.gt.s32.totalorder %v2215_v12, 6 }
  0x1e   :  { %v360_v16 = vsel %vm269_vm3, 1, %v2029_v3  ;;  %vm642_vm12 = vcmp.gt.s32.totalorder %v2215_v12, 2  ;;  %vm643_vm13 = vcmp.gt.s32.totalorder %v2215_v12, 5  ;;  %vm818_vm3 = vcmp.gt.s32.totalorder %v2215_v12, 3 }
  0x24   :  { %1655 = vmatmul.mubr.msk.bf16.gmra.mrb[12].mxu0 %vm89_vm1, %v1922_v13 }
  0x25   :  { %1811 = vmatprep.mubr.msk.bf16.mxu0 %vm2028_vm0, %v2027_v0 }
  0xde   :  { %v328_v21 = vpop.f32.mrb[0].mxu1  ;;  %v136_v23 = vpop.f32.mrb[0].mxu0 }
  0xdf   :  { %v329_v22 = vadd.f32 %v2156_v19, %v328_v21  ;;  %v1781_v24 = vpop.f32.mrb[1].mxu1  ;;  %v2159_v26 = vadd.f32 %v136_v23, %v42_v20  ;;  %v138_v28 = vpop.f32.mrb[1].mxu0 }
  0xe0   :  { %v331_v27 = vpop.f32.mrb[2].mxu1  ;;  %v2162_v30 = vadd.f32 %v138_v28, %v46_v25  ;;  %v140_v31 = vpop.f32.mrb[2].mxu0 }
  0xe1   :  { %342 = vrot.lane.b32.xlu0 %v329_v22, %s2030_s0  ;;  %v1782_v29 = vpop.f32.mrb[3].mxu1  ;;  %176 = vst.msk [vmem:[#allocation2] sm:$0xff] %vm175_vm2, %v2159_v26  ;;  %v2166_v32 = vadd.f32 %v140_v31, %v42_v20  ;;  %v142_v33 = vpop.f32.mrb[3].mxu0 }
  0xe2   :  { %v2168_v34 = vadd.f32 %v142_v33, %v46_v25 }
  0xe3   :  { %177 = vst.msk [vmem:[#allocation2 + $0x8] sm:$0xff] %vm175_vm2, %v2166_v32 }
  0xe6   :  { %v418_v35 = vpop.f32.mrb[4].mxu1 }
  0xe7   :  { %v146_v36 = vpop.f32.mrb[4].mxu0  ;;  %v1789_v37 = vpop.f32.mrb[5].mxu1  ;;  %v419_v1 = vadd.f32 %v2205_v62, %v418_v35 }
  0xe8   :  { %v2172_v38 = vadd.f32 %v146_v36, %v42_v20  ;;  %v148_v39 = vpop.f32.mrb[5].mxu0  ;;  %v421_v40 = vpop.f32.mrb[6].mxu1  ;;  %v271_v4 = vld [vmem:[#allocation2] sm:$0xff]  ;;  %v450_v36 = vsel %vm270_vm4, 1, %v2029_v3  ;;  %vm819_vm4 = vcmp.gt.s32.totalorder %v2215_v12, 4 }
  0xe9   :  { %v2174_v41 = vadd.f32 %v148_v39, %v46_v25  ;;  %v150_v42 = vpop.f32.mrb[6].mxu0  ;;  %v1790_v43 = vpop.f32.mrb[7].mxu1  ;;  %v334_v5 = vadd.f32 %v329_v22, %v271_v4 }
  0xea   :  { %178 = vst.msk [vmem:[#allocation2 + $0x10] sm:$0xff] %vm175_vm2, %v2172_v38  ;;  %v2178_v44 = vadd.f32 %v150_v42, %v42_v20  ;;  %v152_v45 = vpop.f32.mrb[7].mxu0 }
  0xeb   :  { %v2180_v46 = vadd.f32 %v152_v45, %v46_v25  ;;  %v1664_v7 = vmul.f32 -1.442695, %v334_v5 }
  0xec   :  { %179 = vst.msk [vmem:[#allocation2 + $0x18] sm:$0xff] %vm175_vm2, %v2178_v44 }
  0xed   :  { %1925 = vpow2.f32 %v1664_v7 }
  0xef   :  { %v156_v47 = vpop.f32.mrb[8].mxu0 }
  0xf0   :  { %v2184_v48 = vadd.f32 %v156_v47, %v42_v20  ;;  %v158_v49 = vpop.f32.mrb[9].mxu0 }
  0xf1   :  { %v2186_v50 = vadd.f32 %v158_v49, %v46_v25  ;;  %v160_v51 = vpop.f32.mrb[10].mxu0 }
  0xf2   :  { %180 = vst.msk [vmem:[#allocation2 + $0x20] sm:$0xff] %vm175_vm2, %v2184_v48  ;;  %v2190_v52 = vadd.f32 %v160_v51, %v42_v20  ;;  %v162_v53 = vpop.f32.mrb[11].mxu0 }
  0xf3   :  { %v2192_v54 = vadd.f32 %v162_v53, %v46_v25 }
  0xf4   :  { %181 = vst.msk [vmem:[#allocation2 + $0x28] sm:$0xff] %vm175_vm2, %v2190_v52 }
  0xf7   :  { %v166_v55 = vpop.f32.mrb[12].mxu0  ;;  %v1926_v8 = vpop.eup %1925 }
  0xf8   :  { %v2196_v56 = vadd.f32 %v166_v55, %v42_v20  ;;  %v168_v57 = vpop.f32.mrb[13].mxu0  ;;  %v338_v11 = vadd.f32 1.0, %v1926_v8 }
  0xf9   :  { %v2198_v58 = vadd.f32 %v168_v57, %v46_v25  ;;  %v170_v59 = vpop.f32.mrb[14].mxu0 }
  0xfa   :  { %182 = vst.msk [vmem:[#allocation2 + $0x30] sm:$0xff] %vm175_vm2, %v2196_v56  ;;  %v171_v60 = vadd.f32 %v170_v59, %v42_v20  ;;  %v172_v61 = vpop.f32.mrb[15].mxu0  ;;  %1927 = vrcp.f32 %v338_v11 }
  0xfb   :  { %v173_v63 = vadd.f32 %v172_v61, %v46_v25 }
  0xfc   :  { %183 = vst.msk [vmem:[#allocation2 + $0x38] sm:$0xff] %vm175_vm2, %v171_v60  ;;  %228 = vrot.lane.b32.xlu0 %v171_v60, %s2031_s25 }
  0xfd   :  { %230 = vrot.lane.b32.xlu1 %v173_v63, %s2031_s25 }
 0x101   :  { %432 = vrot.lane.b32.xlu1 %v419_v1, %s2030_s0 }
 0x104   :  { %v1928_v13 = vpop.eup %1927 }
 0x105   :  { %v352_v42 = vsub.f32 1.0, %v1928_v13  ;;  %v358_v47 = vmul.f32 0.0, %v1928_v13 }
 0x153   :  { %v343_v14 = vpop.permute.xlu0 %342 }
 0x154   :  { %v345_v15 = vmul.f32 %v1928_v13, %v343_v14 }
 0x156   :  { %347 = vrot.lane.b32.xlu0 %v345_v15, %s2030_s0 }
 0x15a   :  { %362 = vperm.xlu0 %1909, %v360_v16  }
 0x16e   :  { %v229_v17 = vpop.permute.xlu0 %228 }
 0x16f   :  { %v231_v18 = vpop.permute.xlu1 %230 }
 0x170   :  { %v239_v20 = vsel %vm89_vm1, %v229_v17, %v231_v18 }
 0x171   :  { %256 = vst.msk [vmem:[#allocation2 + $0x78] sm:$0xff] %vm175_vm2, %v239_v20 }
 0x173   :  { %v433_v27 = vpop.permute.xlu1 %432 }
 0x178   :  { %v272_v21 = vld [vmem:[#allocation2 + $0x78] sm:$0xff] }
 0x179   :  { %v424_v22 = vadd.f32 %v419_v1, %v272_v21 }
 0x17b   :  { %v1668_v23 = vmul.f32 -1.442695, %v424_v22  ;;  %v471_v22 = vld [vmem:[#allocation2 + $0x8] sm:$0xff] }
 0x17d   :  { %1929 = vpow2.f32 %v1668_v23 }
 0x187   :  { %v1930_v24 = vpop.eup %1929 }
 0x188   :  { %v428_v25 = vadd.f32 1.0, %v1930_v24 }
 0x18a   :  { %1931 = vrcp.f32 %v428_v25 }
 0x194   :  { %v1932_v28 = vpop.eup %1931 }
 0x195   :  { %v435_v29 = vmul.f32 %v1932_v28, %v433_v27  ;;  %v442_v57 = vsub.f32 1.0, %v1932_v28  ;;  %v448_v61 = vmul.f32 0.0, %v1932_v28 }
 0x197   :  { %437 = vrot.lane.b32.xlu1 %v435_v29, %s2030_s0 }
 0x1c8   :  { %v348_v31 = vpop.permute.xlu0 %347 }
 0x1c9   :  { %v350_v33 = vadd.f32 %v348_v31, %v271_v4 }
 0x1cb   :  { %1933 = vtanh.f32 %v350_v33 }
 0x1d5   :  { %v1934_v35 = vpop.eup %1933 }
 0x1d6   :  { %354 = vrot.lane.b32.xlu1 %v1934_v35, %s2032_s1  ;;  %v544_v35 = vsel %vm469_vm8, 1, %v2029_v3 }
 0x1d9   :  { %v2227_v43 = vpop.permute.xlu0 %362 }
 0x1da   :  { %452 = vperm.xlu1 %1910, %v450_v36   ;;  %vm364_vm5 = vcmp.eq.s32.totalorder %v2227_v43, 1 }
 0x209   :  { %v438_v37 = vpop.permute.xlu1 %437 }
 0x20a   :  { %v440_v39 = vadd.f32 %v438_v37, %v272_v21  ;;  %v623_v37 = vsel %vm470_vm9, 1, %v2029_v3 }
 0x20c   :  { %1935 = vtanh.f32 %v440_v39 }
 0x216   :  { %v1936_v40 = vpop.eup %1935 }
 0x217   :  { %444 = vrot.lane.b32.xlu0 %v1936_v40, %s2032_s1 }
 0x248   :  { %v355_v45 = vpop.permute.xlu1 %354 }
 0x249   :  { %v357_v49 = vmul.f32 %v355_v45, %v352_v42 }
 0x24b   :  { %v359_v51 = vadd.f32 %v358_v47, %v357_v49 }
 0x24d   :  { %v2232_v53 = vsel %vm364_vm5, %v359_v51, 0.0 }
 0x24e   :  { %v2236_v55 = vpack.c.bf16 %v2232_v53, %v2232_v53 }
 0x250   :  { %473 = vrot.lane.b32.xlu1 %v2236_v55, %s2032_s1 }
 0x259   :  { %v2240_v59 = vpop.permute.xlu1 %452 }
 0x25a   :  { %vm454_vm6 = vcmp.eq.s32.totalorder %v2240_v59, 1 }
 0x289   :  { %v445_v60 = vpop.permute.xlu0 %444 }
 0x28a   :  { %v447_v63 = vmul.f32 %v445_v60, %v442_v57 }
 0x28c   :  { %v449_v1 = vadd.f32 %v448_v61, %v447_v63 }
 0x28e   :  { %v2245_v4 = vsel %vm454_vm6, %v449_v1, 0.0 }
 0x28f   :  { %v465_v5 = vpack.c.bf16 %v2245_v4, %v2245_v4 }
 0x291   :  { %552 = vrot.lane.b32.xlu0 %v465_v5, %s2032_s1  ;;  %1670 = vst.msk [vmem:[%s2755_s6 + $0x1c] sm:$0xf] %vm467_vm7, %v465_v5 }
 0x295   :  { %224 = vrot.lane.b32.xlu0 %v2196_v56, %s2031_s25 }
 0x2c2   :  { %v474_v7 = vpop.permute.xlu1 %473 }
 0x2c3   :  { %1796 = vmatmul.mubr.msk.bf16.vlgmr.msra.gmra.mrb[8].mxu1 %vm89_vm1, %v474_v7 }
 0x2c4   :  { %1800 = vmatpush3.bf16.msra.mxu1 %v2106_v9  ;;  %1803 = vmatprep.mubr.msk.bf16.mxu1 %vm2028_vm0, %v2027_v0 }
 0x2c5   :  { %1801 = vmatprep.subr.bf16.mxu1 %v2027_v0 }
 0x2c8   :  { %1802 = vmatpush3.bf16.msra.mxu1 %v2115_v10 }
 0x2c9   :  { %1815 = vmatprep.subr.bf16.mxu1 %v2027_v0 }
 0x303   :  { %v553_v8 = vpop.permute.xlu0 %552 }
 0x304   :  { %1804 = vmatmul.mubr.msk.bf16.vlgmr.msra.gmra.mrb[12].mxu1 %vm89_vm1, %v553_v8 }
 0x305   :  { %1816 = vmatpush3.bf16.msra.mxu1 %v2106_v9  ;;  %1819 = vmatprep.mubr.msk.bf16.mxu1 %vm2028_vm0, %v2027_v0 }
 0x306   :  { %1817 = vmatprep.subr.bf16.mxu1 %v2027_v0 }
 0x309   :  { %1818 = vmatpush3.bf16.msra.mxu1 %v2115_v10 }
 0x30a   :  { %1831 = vmatprep.subr.bf16.mxu1 %v2027_v0 }
 0x396   :  { %v512_v56 = vpop.f32.mrb[8].mxu1 }
 0x397   :  { %v513_v11 = vadd.f32 %v2156_v19, %v512_v56  ;;  %v1797_v13 = vpop.f32.mrb[9].mxu1 }
 0x398   :  { %v515_v14 = vpop.f32.mrb[10].mxu1 }
 0x399   :  { %526 = vrot.lane.b32.xlu1 %v513_v11, %s2030_s0  ;;  %v1798_v15 = vpop.f32.mrb[11].mxu1  ;;  %v518_v23 = vadd.f32 %v513_v11, %v471_v22 }
 0x39b   :  { %v1672_v24 = vmul.f32 -1.442695, %v518_v23 }
 0x39d   :  { %226 = vrot.lane.b32.xlu1 %v2198_v58, %s2031_s25  ;;  %1937 = vpow2.f32 %v1672_v24  ;;  %v225_v58 = vpop.permute.xlu0 %224 }
 0x3a7   :  { %v1938_v25 = vpop.eup %1937 }
 0x3a8   :  { %v522_v27 = vadd.f32 1.0, %v1938_v25 }
 0x3aa   :  { %1939 = vrcp.f32 %v522_v27 }
 0x3b4   :  { %v1940_v28 = vpop.eup %1939 }
 0x3b5   :  { %v536_v8 = vsub.f32 1.0, %v1940_v28  ;;  %v542_v13 = vmul.f32 %v1940_v28, %v2232_v53 }
 0x3d7   :  { %v591_v16 = vpop.f32.mrb[12].mxu1 }
 0x3d8   :  { %v592_v17 = vadd.f32 %v2205_v62, %v591_v16  ;;  %v1805_v18 = vpop.f32.mrb[13].mxu1 }
 0x3d9   :  { %v594_v20 = vpop.f32.mrb[14].mxu1 }
 0x3da   :  { %605 = vrot.lane.b32.xlu0 %v592_v17, %s2030_s0  ;;  %v1806_v21 = vpop.f32.mrb[15].mxu1 }
 0x40b   :  { %v527_v29 = vpop.permute.xlu1 %526 }
 0x40c   :  { %v529_v31 = vmul.f32 %v1940_v28, %v527_v29 }
 0x40e   :  { %531 = vrot.lane.b32.xlu1 %v529_v31, %s2030_s0 }
 0x40f   :  { %v227_v33 = vpop.permute.xlu1 %226 }
 0x410   :  { %v238_v36 = vsel %vm89_vm1, %v225_v58, %v227_v33 }
 0x411   :  { %255 = vst.msk [vmem:[#allocation2 + $0x70] sm:$0xff] %vm175_vm2, %v238_v36 }
 0x412   :  { %546 = vperm.xlu1 %1910, %v544_v35  }
 0x416   :  { %625 = vperm.xlu1 %1910, %v623_v37  }
 0x418   :  { %v472_v39 = vld [vmem:[#allocation2 + $0x70] sm:$0xff] }
 0x419   :  { %v597_v40 = vadd.f32 %v592_v17, %v472_v39 }
 0x41b   :  { %v1674_v42 = vmul.f32 -1.442695, %v597_v40 }
 0x41d   :  { %1941 = vpow2.f32 %v1674_v42 }
 0x427   :  { %v1942_v45 = vpop.eup %1941 }
 0x428   :  { %v601_v47 = vadd.f32 1.0, %v1942_v45  ;;  %v644_v45 = vld [vmem:[#allocation2 + $0x10] sm:$0xff] }
 0x42a   :  { %1943 = vrcp.f32 %v601_v47 }
 0x434   :  { %v1944_v49 = vpop.eup %1943 }
 0x435   :  { %v615_v18 = vsub.f32 1.0, %v1944_v49 }
 0x44c   :  { %v606_v51 = vpop.permute.xlu0 %605 }
 0x44d   :  { %v608_v57 = vmul.f32 %v1944_v49, %v606_v51 }
 0x44f   :  { %610 = vrot.lane.b32.xlu0 %v608_v57, %s2030_s0 }
 0x480   :  { %v532_v60 = vpop.permute.xlu1 %531 }
 0x481   :  { %v534_v61 = vadd.f32 %v532_v60, %v471_v22  ;;  %v621_v22 = vmul.f32 %v1944_v49, %v2245_v4 }
 0x483   :  { %1945 = vtanh.f32 %v534_v61 }
 0x48d   :  { %v1946_v63 = vpop.eup %1945 }
 0x48e   :  { %538 = vrot.lane.b32.xlu0 %v1946_v63, %s2032_s1 }
 0x491   :  { %v2286_v11 = vpop.permute.xlu1 %546 }
 0x492   :  { %vm548_vm10 = vcmp.eq.s32.totalorder %v2286_v11, 1 }
 0x495   :  { %v2301_v21 = vpop.permute.xlu1 %625 }
 0x496   :  { %vm627_vm11 = vcmp.eq.s32.totalorder %v2301_v21, 1 }
 0x4c1   :  { %v611_v1 = vpop.permute.xlu0 %610 }
 0x4c2   :  { %v613_v5 = vadd.f32 %v611_v1, %v472_v39 }
 0x4c4   :  { %1947 = vtanh.f32 %v613_v5  ;;  %v719_v5 = vsel %vm642_vm12, 1, %v2029_v3 }
 0x4ce   :  { %v1948_v7 = vpop.eup %1947 }
 0x4cf   :  { %617 = vrot.lane.b32.xlu0 %v1948_v7, %s2032_s1 }
 0x500   :  { %v539_v56 = vpop.permute.xlu0 %538 }
 0x501   :  { %v541_v14 = vmul.f32 %v539_v56, %v536_v8  ;;  %v799_v8 = vsel %vm643_vm13, 1, %v2029_v3 }
 0x503   :  { %v2289_v15 = vadd.f32 %v542_v13, %v541_v14 }
 0x505   :  { %v2296_v16 = vsel %vm548_vm10, %v2289_v15, %v2232_v53 }
 0x506   :  { %v646_v17 = vpack.c.bf16 %v2296_v16, %v2296_v16 }
 0x508   :  { %648 = vrot.lane.b32.xlu1 %v646_v17, %s2032_s1 }
 0x541   :  { %v618_v20 = vpop.permute.xlu0 %617 }
 0x542   :  { %v620_v23 = vmul.f32 %v618_v20, %v615_v18 }
 0x544   :  { %v622_v24 = vadd.f32 %v621_v22, %v620_v23 }
 0x546   :  { %v629_v25 = vsel %vm627_vm11, %v622_v24, 0.0  ;;  %v2310_v53 = vsel %vm627_vm11, %v622_v24, %v2245_v4 }
 0x547   :  { %v639_v27 = vpack.c.bf16 %v629_v25, %v629_v25  ;;  %v726_v28 = vpack.c.bf16 %v2310_v53, %v2310_v53 }
 0x549   :  { %728 = vrot.lane.b32.xlu0 %v726_v28, %s2032_s1  ;;  %1677 = vst.msk [vmem:[%s2755_s6 + $0x18] sm:$0xf] %vm467_vm7, %v639_v27 }
 0x54d   :  { %220 = vrot.lane.b32.xlu0 %v2190_v52, %s2031_s25 }
 0x57a   :  { %v649_v29 = vpop.permute.xlu1 %648 }
 0x57b   :  { %1812 = vmatmul.mubr.msk.bf16.vlgmr.msra.gmra.mrb[16].mxu0 %vm89_vm1, %v649_v29 }
 0x57c   :  { %1824 = vmatpush3.bf16.msra.mxu0 %v2077_v2  ;;  %1827 = vmatprep.mubr.msk.bf16.mxu0 %vm2028_vm0, %v2027_v0 }
 0x57d   :  { %1825 = vmatprep.subr.bf16.mxu0 %v2027_v0 }
 0x580   :  { %1826 = vmatpush3.bf16.msra.mxu0 %v2093_v6 }
 0x581   :  { %1839 = vmatprep.subr.bf16.mxu0 %v2027_v0 }
 0x5bb   :  { %v729_v4 = vpop.permute.xlu0 %728 }
 0x5bc   :  { %1820 = vmatmul.mubr.msk.bf16.vlgmr.msra.gmra.mrb[16].mxu1 %vm89_vm1, %v729_v4 }
 0x5bd   :  { %1832 = vmatpush3.bf16.msra.mxu1 %v2106_v9  ;;  %1835 = vmatprep.mubr.msk.bf16.mxu1 %vm2028_vm0, %v2027_v0 }
 0x5be   :  { %1833 = vmatprep.subr.bf16.mxu1 %v2027_v0 }
 0x5c1   :  { %1834 = vmatpush3.bf16.msra.mxu1 %v2115_v10 }
 0x5c2   :  { %1847 = vmatprep.subr.bf16.mxu1 %v2027_v0 }
 0x64e   :  { %v687_v52 = vpop.f32.mrb[16].mxu0 }
 0x64f   :  { %v688_v31 = vadd.f32 %v2156_v19, %v687_v52  ;;  %v1813_v58 = vpop.f32.mrb[17].mxu0 }
 0x650   :  { %v690_v33 = vpop.f32.mrb[18].mxu0 }
 0x651   :  { %701 = vrot.lane.b32.xlu1 %v688_v31, %s2030_s0  ;;  %v1814_v35 = vpop.f32.mrb[19].mxu0  ;;  %v693_v47 = vadd.f32 %v688_v31, %v644_v45 }
 0x653   :  { %v1679_v49 = vmul.f32 -1.442695, %v693_v47 }
 0x655   :  { %222 = vrot.lane.b32.xlu1 %v2192_v54, %s2031_s25  ;;  %1949 = vpow2.f32 %v1679_v49  ;;  %v221_v54 = vpop.permute.xlu0 %220 }
 0x65f   :  { %v1950_v51 = vpop.eup %1949 }
 0x660   :  { %v697_v57 = vadd.f32 1.0, %v1950_v51 }
 0x662   :  { %1951 = vrcp.f32 %v697_v57 }
 0x66c   :  { %v1952_v60 = vpop.eup %1951 }
 0x66d   :  { %v711_v52 = vsub.f32 1.0, %v1952_v60  ;;  %v717_v33 = vmul.f32 %v1952_v60, %v2296_v16 }
 0x68f   :  { %v767_v36 = vpop.f32.mrb[16].mxu1 }
 0x690   :  { %v768_v37 = vadd.f32 %v2205_v62, %v767_v36  ;;  %v1821_v39 = vpop.f32.mrb[17].mxu1 }
 0x691   :  { %v770_v40 = vpop.f32.mrb[18].mxu1 }
 0x692   :  { %781 = vrot.lane.b32.xlu0 %v768_v37, %s2030_s0  ;;  %v1822_v42 = vpop.f32.mrb[19].mxu1 }
 0x6c3   :  { %v702_v61 = vpop.permute.xlu1 %701 }
 0x6c4   :  { %v704_v63 = vmul.f32 %v1952_v60, %v702_v61 }
 0x6c6   :  { %706 = vrot.lane.b32.xlu1 %v704_v63, %s2030_s0 }
 0x6c7   :  { %v223_v1 = vpop.permute.xlu1 %222 }
 0x6c8   :  { %v237_v7 = vsel %vm89_vm1, %v221_v54, %v223_v1 }
 0x6c9   :  { %254 = vst.msk [vmem:[#allocation2 + $0x68] sm:$0xff] %vm175_vm2, %v237_v7 }
 0x6ca   :  { %721 = vperm.xlu1 %1910, %v719_v5  }
 0x6ce   :  { %801 = vperm.xlu1 %1910, %v799_v8  }
 0x6d0   :  { %v645_v56 = vld [vmem:[#allocation2 + $0x68] sm:$0xff] }
 0x6d1   :  { %v773_v13 = vadd.f32 %v768_v37, %v645_v56 }
 0x6d3   :  { %v1681_v14 = vmul.f32 -1.442695, %v773_v13 }
 0x6d5   :  { %1953 = vpow2.f32 %v1681_v14 }
 0x6df   :  { %v1954_v17 = vpop.eup %1953 }
 0x6e0   :  { %v777_v18 = vadd.f32 1.0, %v1954_v17 }
 0x6e2   :  { %1955 = vrcp.f32 %v777_v18  ;;  %v820_v18 = vld [vmem:[#allocation2 + $0x18] sm:$0xff] }
 0x6ec   :  { %v1956_v20 = vpop.eup %1955 }
 0x6ed   :  { %v791_v40 = vsub.f32 1.0, %v1956_v20  ;;  %v797_v47 = vmul.f32 %v1956_v20, %v2310_v53 }
 0x704   :  { %v782_v22 = vpop.permute.xlu0 %781 }
 0x705   :  { %v784_v23 = vmul.f32 %v1956_v20, %v782_v22 }
 0x707   :  { %786 = vrot.lane.b32.xlu0 %v784_v23, %s2030_s0 }
 0x738   :  { %v707_v24 = vpop.permute.xlu1 %706 }
 0x739   :  { %v709_v25 = vadd.f32 %v707_v24, %v644_v45 }
 0x73b   :  { %1957 = vtanh.f32 %v709_v25 }
 0x745   :  { %v1958_v27 = vpop.eup %1957 }
 0x746   :  { %713 = vrot.lane.b32.xlu0 %v1958_v27, %s2032_s1 }
 0x749   :  { %v2351_v58 = vpop.permute.xlu1 %721 }
 0x74a   :  { %vm723_vm14 = vcmp.eq.s32.totalorder %v2351_v58, 1 }
 0x74d   :  { %v2366_v45 = vpop.permute.xlu1 %801 }
 0x74e   :  { %vm803_vm15 = vcmp.eq.s32.totalorder %v2366_v45, 1 }
 0x779   :  { %v787_v28 = vpop.permute.xlu0 %786 }
 0x77a   :  { %v789_v29 = vadd.f32 %v787_v28, %v645_v56 }
 0x77c   :  { %1959 = vtanh.f32 %v789_v29 }
 0x786   :  { %v1960_v4 = vpop.eup %1959 }
 0x787   :  { %793 = vrot.lane.b32.xlu0 %v1960_v4, %s2032_s1  ;;  %v895_v4 = vsel %vm818_vm3, 1, %v2029_v3 }
 0x7b8   :  { %v714_v31 = vpop.permute.xlu0 %713 }
 0x7b9   :  { %v716_v35 = vmul.f32 %v714_v31, %v711_v52  ;;  %v975_v31 = vsel %vm819_vm4, 1, %v2029_v3 }
 0x7bb   :  { %v2354_v36 = vadd.f32 %v717_v33, %v716_v35 }
 0x7bd   :  { %v2361_v37 = vsel %vm723_vm14, %v2354_v36, %v2296_v16 }
 0x7be   :  { %v822_v39 = vpack.c.bf16 %v2361_v37, %v2361_v37 }
 0x7c0   :  { %824 = vrot.lane.b32.xlu1 %v822_v39, %s2032_s1 }
 0x7f9   :  { %v794_v42 = vpop.permute.xlu0 %793 }
 0x7fa   :  { %v796_v49 = vmul.f32 %v794_v42, %v791_v40 }
 0x7fc   :  { %v798_v51 = vadd.f32 %v797_v47, %v796_v49 }
 0x7fe   :  { %v805_v57 = vsel %vm803_vm15, %v798_v51, 0.0  ;;  %v2375_v16 = vsel %vm803_vm15, %v798_v51, %v2310_v53 }
 0x7ff   :  { %v815_v60 = vpack.c.bf16 %v805_v57, %v805_v57  ;;  %v902_v61 = vpack.c.bf16 %v2375_v16, %v2375_v16 }
 0x801   :  { %904 = vrot.lane.b32.xlu0 %v902_v61, %s2032_s1  ;;  %1684 = vst.msk [vmem:[%s2755_s6 + $0x14] sm:$0xf] %vm467_vm7, %v815_v60 }
 0x805   :  { %216 = vrot.lane.b32.xlu0 %v2184_v48, %s2031_s25 }
 0x832   :  { %v825_v63 = vpop.permute.xlu1 %824 }
 0x833   :  { %1828 = vmatmul.mubr.msk.bf16.vlgmr.msra.gmra.mrb[20].mxu0 %vm89_vm1, %v825_v63 }
 0x834   :  { %1840 = vmatpush3.bf16.msra.mxu0 %v2077_v2  ;;  %1843 = vmatprep.mubr.msk.bf16.mxu0 %vm2028_vm0, %v2027_v0 }
 0x835   :  { %1841 = vmatprep.subr.bf16.mxu0 %v2027_v0 }
 0x838   :  { %1842 = vmatpush3.bf16.msra.mxu0 %v2093_v6 }
 0x839   :  { %1855 = vmatprep.subr.bf16.mxu0 %v2027_v0 }
 0x873   :  { %v905_v53 = vpop.permute.xlu0 %904 }
 0x874   :  { %1836 = vmatmul.mubr.msk.bf16.vlgmr.msra.gmra.mrb[20].mxu1 %vm89_vm1, %v905_v53 }
 0x875   :  { %1848 = vmatpush3.bf16.msra.mxu1 %v2106_v9  ;;  %1851 = vmatprep.mubr.msk.bf16.mxu1 %vm2028_vm0, %v2027_v0 }
 0x876   :  { %1849 = vmatprep.subr.bf16.mxu1 %v2027_v0 }
 0x879   :  { %1850 = vmatpush3.bf16.msra.mxu1 %v2115_v10 }
 0x87a   :  { %1863 = vmatprep.subr.bf16.mxu1 %v2027_v0 }
 0x906   :  { %v863_v48 = vpop.f32.mrb[20].mxu0 }
 0x907   :  { %v864_v54 = vadd.f32 %v2156_v19, %v863_v48  ;;  %v1829_v1 = vpop.f32.mrb[21].mxu0 }
 0x908   :  { %v866_v5 = vpop.f32.mrb[22].mxu0 }
 0x909   :  { %877 = vrot.lane.b32.xlu1 %v864_v54, %s2030_s0  ;;  %v1830_v7 = vpop.f32.mrb[23].mxu0  ;;  %v869_v20 = vadd.f32 %v864_v54, %v820_v18 }
 0x90b   :  { %v1686_v22 = vmul.f32 -1.442695, %v869_v20 }
 0x90d   :  { %218 = vrot.lane.b32.xlu1 %v2186_v50, %s2031_s25  ;;  %1961 = vpow2.f32 %v1686_v22  ;;  %v217_v50 = vpop.permute.xlu0 %216 }
 0x917   :  { %v1962_v23 = vpop.eup %1961 }
 0x918   :  { %v873_v24 = vadd.f32 1.0, %v1962_v23 }
 0x91a   :  { %1963 = vrcp.f32 %v873_v24 }
 0x924   :  { %v1964_v25 = vpop.eup %1963 }
 0x925   :  { %v887_v53 = vsub.f32 1.0, %v1964_v25  ;;  %v893_v1 = vmul.f32 %v1964_v25, %v2361_v37 }
 0x947   :  { %v943_v8 = vpop.f32.mrb[20].mxu1 }
 0x948   :  { %v944_v56 = vadd.f32 %v2205_v62, %v943_v8  ;;  %v1837_v13 = vpop.f32.mrb[21].mxu1 }
 0x949   :  { %v946_v14 = vpop.f32.mrb[22].mxu1 }
 0x94a   :  { %957 = vrot.lane.b32.xlu0 %v944_v56, %s2030_s0  ;;  %v1838_v17 = vpop.f32.mrb[23].mxu1 }
 0x97b   :  { %v878_v27 = vpop.permute.xlu1 %877 }
 0x97c   :  { %v880_v28 = vmul.f32 %v1964_v25, %v878_v27 }
 0x97e   :  { %882 = vrot.lane.b32.xlu1 %v880_v28, %s2030_s0 }
 0x97f   :  { %v219_v29 = vpop.permute.xlu1 %218 }
 0x980   :  { %v236_v52 = vsel %vm89_vm1, %v217_v50, %v219_v29 }
 0x981   :  { %253 = vst.msk [vmem:[#allocation2 + $0x60] sm:$0xff] %vm175_vm2, %v236_v52 }
 0x982   :  { %897 = vperm.xlu1 %1910, %v895_v4  }
 0x986   :  { %977 = vperm.xlu1 %1910, %v975_v31   ;;  %v994_v31 = vld [vmem:[#allocation2 + $0x20] sm:$0xff] }
 0x988   :  { %v821_v33 = vld [vmem:[#allocation2 + $0x60] sm:$0xff] }
 0x989   :  { %v949_v35 = vadd.f32 %v944_v56, %v821_v33 }
 0x98b   :  { %v1688_v39 = vmul.f32 -1.442695, %v949_v35 }
 0x98d   :  { %1965 = vpow2.f32 %v1688_v39 }
 0x997   :  { %v1966_v40 = vpop.eup %1965 }
 0x998   :  { %v953_v42 = vadd.f32 1.0, %v1966_v40 }
 0x99a   :  { %1967 = vrcp.f32 %v953_v42 }
 0x9a4   :  { %v1968_v47 = vpop.eup %1967 }
 0x9a5   :  { %v967_v13 = vsub.f32 1.0, %v1968_v47 }
 0x9bc   :  { %v958_v49 = vpop.permute.xlu0 %957 }
 0x9bd   :  { %v960_v51 = vmul.f32 %v1968_v47, %v958_v49 }
 0x9bf   :  { %962 = vrot.lane.b32.xlu0 %v960_v51, %s2030_s0 }
 0x9f0   :  { %v883_v57 = vpop.permute.xlu1 %882 }
 0x9f1   :  { %v885_v12 = vadd.f32 %v883_v57, %v820_v18  ;;  %v973_v18 = vmul.f32 %v1968_v47, %v2375_v16 }
 0x9f3   :  { %1969 = vtanh.f32 %v885_v12 }
 0x9fd   :  { %v1970_v60 = vpop.eup %1969 }
 0x9fe   :  { %889 = vrot.lane.b32.xlu0 %v1970_v60, %s2032_s1 }
 0xa01   :  { %v2416_v54 = vpop.permute.xlu1 %897 }
 0xa02   :  { %vm899_vm8 = vcmp.eq.s32.totalorder %v2416_v54, 1 }
 0xa05   :  { %v2431_v17 = vpop.permute.xlu1 %977 }
 0xa06   :  { %vm979_vm9 = vcmp.eq.s32.totalorder %v2431_v17, 1 }
 0xa31   :  { %v963_v3 = vpop.permute.xlu0 %962 }
 0xa32   :  { %v965_v61 = vadd.f32 %v963_v3, %v821_v33 }
 0xa34   :  { %1971 = vtanh.f32 %v965_v61 }
 0xa3e   :  { %v1972_v63 = vpop.eup %1971 }
 0xa3f   :  { %969 = vrot.lane.b32.xlu0 %v1972_v63, %s2032_s1 }
 0xa70   :  { %v890_v48 = vpop.permute.xlu0 %889 }
 0xa71   :  { %v892_v5 = vmul.f32 %v890_v48, %v887_v53 }
 0xa73   :  { %v2419_v7 = vadd.f32 %v893_v1, %v892_v5 }
 0xa75   :  { %v2426_v8 = vsel %vm899_vm8, %v2419_v7, %v2361_v37 }
 0xa76   :  { %v996_v56 = vpack.c.bf16 %v2426_v8, %v2426_v8 }
 0xa78   :  { %998 = vrot.lane.b32.xlu1 %v996_v56, %s2032_s1 }
 0xab1   :  { %v970_v14 = vpop.permute.xlu0 %969 }
 0xab2   :  { %v972_v20 = vmul.f32 %v970_v14, %v967_v13 }
 0xab4   :  { %v974_v22 = vadd.f32 %v973_v18, %v972_v20 }
 0xab6   :  { %v981_v23 = vsel %vm979_vm9, %v974_v22, 0.0  ;;  %v2440_v37 = vsel %vm979_vm9, %v974_v22, %v2375_v16 }
 0xab7   :  { %v991_v24 = vpack.c.bf16 %v981_v23, %v981_v23  ;;  %v1071_v25 = vpack.c.bf16 %v2440_v37, %v2440_v37 }
 0xab9   :  { %1073 = vrot.lane.b32.xlu0 %v1071_v25, %s2032_s1  ;;  %1691 = vst.msk [vmem:[%s2755_s6 + $0x10] sm:$0xf] %vm467_vm7, %v991_v24 }
 0xabd   :  { %212 = vrot.lane.b32.xlu0 %v2178_v44, %s2031_s25 }
 0xaea   :  { %v999_v27 = vpop.permute.xlu1 %998 }
 0xaeb   :  { %1844 = vmatmul.mubr.msk.bf16.vlgmr.msra.gmra.mrb[24].mxu0 %vm89_vm1, %v999_v27 }
 0xaec   :  { %1856 = vmatpush3.bf16.msra.mxu0 %v2077_v2  ;;  %1859 = vmatprep.mubr.msk.bf16.mxu0 %vm2028_vm0, %v2027_v0 }
 0xaed   :  { %1857 = vmatprep.subr.bf16.mxu0 %v2027_v0 }
 0xaf0   :  { %1858 = vmatpush3.bf16.msra.mxu0 %v2093_v6 }
 0xaf1   :  { %1871 = vmatprep.subr.bf16.mxu0 %v2027_v0 }
 0xb2b   :  { %v1074_v16 = vpop.permute.xlu0 %1073 }
 0xb2c   :  { %1852 = vmatmul.mubr.msk.bf16.vlgmr.msra.gmra.mrb[24].mxu1 %vm89_vm1, %v1074_v16 }
 0xb2d   :  { %1864 = vmatpush3.bf16.msra.mxu1 %v2106_v9  ;;  %1867 = vmatprep.mubr.msk.bf16.mxu1 %vm2028_vm0, %v2027_v0 }
 0xb2e   :  { %1865 = vmatprep.subr.bf16.mxu1 %v2027_v0 }
 0xb31   :  { %1866 = vmatpush3.bf16.msra.mxu1 %v2115_v10 }
 0xb32   :  { %1879 = vmatprep.subr.bf16.mxu1 %v2027_v0 }
 0xbbe   :  { %v1037_v2 = vpop.f32.mrb[24].mxu0 }
 0xbbf   :  { %v1038_v44 = vadd.f32 %v2156_v19, %v1037_v2  ;;  %v1845_v6 = vpop.f32.mrb[25].mxu0 }
 0xbc0   :  { %v1040_v28 = vpop.f32.mrb[26].mxu0 }
 0xbc1   :  { %1051 = vrot.lane.b32.xlu1 %v1038_v44, %s2030_s0  ;;  %v1846_v50 = vpop.f32.mrb[27].mxu0  ;;  %v1043_v33 = vadd.f32 %v1038_v44, %v994_v31 }
 0xbc3   :  { %v1693_v35 = vmul.f32 -1.442695, %v1043_v33 }
 0xbc5   :  { %214 = vrot.lane.b32.xlu1 %v2180_v46, %s2031_s25  ;;  %1973 = vpow2.f32 %v1693_v35  ;;  %v213_v46 = vpop.permute.xlu0 %212 }
 0xbcf   :  { %v1974_v39 = vpop.eup %1973 }
 0xbd0   :  { %v1047_v40 = vadd.f32 1.0, %v1974_v39 }
 0xbd2   :  { %1975 = vrcp.f32 %v1047_v40 }
 0xbdc   :  { %v1976_v42 = vpop.eup %1975 }
 0xbdd   :  { %v1061_v22 = vsub.f32 1.0, %v1976_v42  ;;  %v1067_v24 = vmul.f32 %v1976_v42, %v2426_v8 }
 0xbff   :  { %v1112_v9 = vpop.f32.mrb[24].mxu1 }
 0xc00   :  { %v1113_v29 = vadd.f32 %v2205_v62, %v1112_v9  ;;  %v1853_v4 = vpop.f32.mrb[25].mxu1 }
 0xc01   :  { %v1115_v52 = vpop.f32.mrb[26].mxu1 }
 0xc02   :  { %1126 = vrot.lane.b32.xlu0 %v1113_v29, %s2030_s0  ;;  %v1854_v10 = vpop.f32.mrb[27].mxu1  ;;  %v2507_v52 = vld [vmem:[%s2750_s3] sm:$0xff]  }
 0xc03   :  { %v2524_v10 = vld [vmem:[%s2750_s3 + $0x10] sm:$0xff]  }
 0xc33   :  { %v1052_v47 = vpop.permute.xlu1 %1051 }
 0xc34   :  { %v1054_v49 = vmul.f32 %v1976_v42, %v1052_v47 }
 0xc36   :  { %1056 = vrot.lane.b32.xlu1 %v1054_v49, %s2030_s0 }
 0xc37   :  { %v215_v51 = vpop.permute.xlu1 %214 }
 0xc38   :  { %v235_v57 = vsel %vm89_vm1, %v213_v46, %v215_v51 }
 0xc39   :  { %252 = vst.msk [vmem:[#allocation2 + $0x58] sm:$0xff] %vm175_vm2, %v235_v57 }
 0xc40   :  { %v995_v12 = vld [vmem:[#allocation2 + $0x58] sm:$0xff] }
 0xc41   :  { %v1118_v60 = vadd.f32 %v1113_v29, %v995_v12 }
 0xc43   :  { %v1695_v3 = vmul.f32 -1.442695, %v1118_v60 }
 0xc45   :  { %1977 = vpow2.f32 %v1695_v3 }
 0xc4f   :  { %v1978_v61 = vpop.eup %1977 }
 0xc50   :  { %v1122_v63 = vadd.f32 1.0, %v1978_v61 }
 0xc52   :  { %1979 = vrcp.f32 %v1122_v63 }
 0xc5c   :  { %v1980_v53 = vpop.eup %1979 }
 0xc5d   :  { %v1136_v44 = vsub.f32 1.0, %v1980_v53  ;;  %v1142_v28 = vmul.f32 %v1980_v53, %v2440_v37 }
 0xc74   :  { %v1127_v48 = vpop.permute.xlu0 %1126 }
 0xc75   :  { %v1129_v1 = vmul.f32 %v1980_v53, %v1127_v48 }
 0xc77   :  { %1131 = vrot.lane.b32.xlu0 %v1129_v1, %s2030_s0 }
 0xca8   :  { %v1057_v5 = vpop.permute.xlu1 %1056 }
 0xca9   :  { %v1059_v56 = vadd.f32 %v1057_v5, %v994_v31  ;;  %v2533_v31 = vld [vmem:[%s2750_s3 + $0x18] sm:$0xff]  }
 0xcab   :  { %1981 = vtanh.f32 %v1059_v56 }
 0xcb5   :  { %v1982_v13 = vpop.eup %1981 }
 0xcb6   :  { %1063 = vrot.lane.b32.xlu1 %v1982_v13, %s2032_s1 }
 0xce9   :  { %v1132_v14 = vpop.permute.xlu0 %1131 }
 0xcea   :  { %v1134_v18 = vadd.f32 %v1132_v14, %v995_v12  ;;  %v1156_v12 = vld [vmem:[#allocation2 + $0x28] sm:$0xff] }
 0xcec   :  { %1983 = vtanh.f32 %v1134_v18 }
 0xcf6   :  { %v1984_v20 = vpop.eup %1983 }
 0xcf7   :  { %1138 = vrot.lane.b32.xlu0 %v1984_v20, %s2032_s1 }
 0xd28   :  { %v1064_v23 = vpop.permute.xlu1 %1063 }
 0xd29   :  { %v1066_v25 = vmul.f32 %v1064_v23, %v1061_v22 }
 0xd2b   :  { %v2478_v27 = vadd.f32 %v1067_v24, %v1066_v25 }
 0xd2d   :  { %v2484_v16 = vsel %vm979_vm9, %v2478_v27, %v2426_v8 }
 0xd2e   :  { %v1158_v2 = vpack.c.bf16 %v2484_v16, %v2484_v16 }
 0xd30   :  { %1160 = vrot.lane.b32.xlu1 %v1158_v2, %s2032_s1 }
 0xd69   :  { %v1139_v6 = vpop.permute.xlu0 %1138 }
 0xd6a   :  { %v1141_v50 = vmul.f32 %v1139_v6, %v1136_v44 }
 0xd6c   :  { %v2490_v9 = vadd.f32 %v1142_v28, %v1141_v50 }
 0xd6e   :  { %v2496_v29 = vsel %vm899_vm8, %v2490_v9, %v2440_v37  ;;  %v2516_v37 = vld [vmem:[%s2750_s3 + $0x8] sm:$0xff]   ;;  %v1145_v21 = vsel %vm899_vm8, %v2490_v9, 0.0 }
 0xd6f   :  { %v1233_v8 = vpack.c.bf16 %v2496_v29, %v2496_v29  ;;  %v1154_v11 = vpack.c.bf16 %v1145_v21, %v1145_v21 }
 0xd71   :  { %1235 = vrot.lane.b32.xlu0 %v1233_v8, %s2032_s1 }
 0xd75   :  { %208 = vrot.lane.b32.xlu0 %v2172_v38, %s2031_s25 }
 0xda2   :  { %v1161_v4 = vpop.permute.xlu1 %1160 }
 0xda3   :  { %1860 = vmatmul.mubr.msk.bf16.vlgmr.msra.gmra.mrb[28].mxu0 %vm89_vm1, %v1161_v4 }
 0xda4   :  { %1872 = vmatpush3.bf16.msra.mxu0 %v2507_v52  ;;  %1875 = vmatprep.mubr.msk.bf16.mxu0 %vm2028_vm0, %v2027_v0 }
 0xda5   :  { %1873 = vmatprep.subr.bf16.mxu0 %v2027_v0 }
 0xda8   :  { %1874 = vmatpush3.bf16.msra.mxu0 %v2516_v37 }
 0xda9   :  { %1887 = vmatprep.subr.bf16.mxu0 %v2027_v0 }
 0xde3   :  { %v1236_v38 = vpop.permute.xlu0 %1235 }
 0xde4   :  { %1868 = vmatmul.mubr.msk.bf16.vlgmr.msra.gmra.mrb[28].mxu1 %vm89_vm1, %v1236_v38 }
 0xde5   :  { %1880 = vmatpush3.bf16.msra.mxu1 %v2524_v10  ;;  %1883 = vmatprep.mubr.msk.bf16.mxu1 %vm2028_vm0, %v2027_v0 }
 0xde6   :  { %1881 = vmatprep.subr.bf16.mxu1 %v2027_v0 }
 0xde9   :  { %1882 = vmatpush3.bf16.msra.mxu1 %v2533_v31 }
 0xdea   :  { %1895 = vmatprep.subr.bf16.mxu1 %v2027_v0 }
 0xe76   :  { %v1199_v33 = vpop.f32.mrb[28].mxu0 }
 0xe77   :  { %v1200_v35 = vadd.f32 %v2156_v19, %v1199_v33  ;;  %v1861_v39 = vpop.f32.mrb[29].mxu0 }
 0xe78   :  { %v1202_v40 = vpop.f32.mrb[30].mxu0 }
 0xe79   :  { %1213 = vrot.lane.b32.xlu1 %v1200_v35, %s2030_s0  ;;  %v1862_v42 = vpop.f32.mrb[31].mxu0  ;;  %v1205_v60 = vadd.f32 %v1200_v35, %v1156_v12 }
 0xe7b   :  { %v1700_v3 = vmul.f32 -1.442695, %v1205_v60 }
 0xe7d   :  { %210 = vrot.lane.b32.xlu1 %v2174_v41, %s2031_s25  ;;  %1985 = vpow2.f32 %v1700_v3  ;;  %v209_v41 = vpop.permute.xlu0 %208 }
 0xe87   :  { %v1986_v19 = vpop.eup %1985 }
 0xe88   :  { %v1209_v61 = vadd.f32 1.0, %v1986_v19 }
 0xe8a   :  { %1987 = vrcp.f32 %v1209_v61 }
 0xe94   :  { %v1988_v63 = vpop.eup %1987 }
 0xe95   :  { %v1223_v50 = vsub.f32 1.0, %v1988_v63  ;;  %v1229_v4 = vmul.f32 %v1988_v63, %v2484_v16 }
 0xeb7   :  { %v1274_v47 = vpop.f32.mrb[28].mxu1 }
 0xeb8   :  { %v1275_v49 = vadd.f32 %v2205_v62, %v1274_v47  ;;  %v1869_v46 = vpop.f32.mrb[29].mxu1 }
 0xeb9   :  { %v1277_v51 = vpop.f32.mrb[30].mxu1 }
 0xeba   :  { %1288 = vrot.lane.b32.xlu0 %v1275_v49, %s2030_s0  ;;  %v1870_v57 = vpop.f32.mrb[31].mxu1 }
 0xeeb   :  { %v1214_v53 = vpop.permute.xlu1 %1213 }
 0xeec   :  { %v1216_v48 = vmul.f32 %v1988_v63, %v1214_v53  ;;  %v1318_v53 = vld [vmem:[#allocation2 + $0x30] sm:$0xff] }
 0xeee   :  { %1218 = vrot.lane.b32.xlu1 %v1216_v48, %s2030_s0 }
 0xeef   :  { %v211_v1 = vpop.permute.xlu1 %210 }
 0xef0   :  { %v234_v62 = vsel %vm89_vm1, %v209_v41, %v211_v1 }
 0xef1   :  { %251 = vst.msk [vmem:[#allocation2 + $0x50] sm:$0xff] %vm175_vm2, %v234_v62 }
 0xef8   :  { %v1157_v5 = vld [vmem:[#allocation2 + $0x50] sm:$0xff] }
 0xef9   :  { %v1280_v56 = vadd.f32 %v1275_v49, %v1157_v5 }
 0xefb   :  { %v1702_v13 = vmul.f32 -1.442695, %v1280_v56 }
 0xefd   :  { %1989 = vpow2.f32 %v1702_v13 }
 0xf07   :  { %v1990_v14 = vpop.eup %1989 }
 0xf08   :  { %v1284_v18 = vadd.f32 1.0, %v1990_v14 }
 0xf0a   :  { %1991 = vrcp.f32 %v1284_v18 }
 0xf14   :  { %v1992_v20 = vpop.eup %1991 }
 0xf15   :  { %v1298_v40 = vsub.f32 1.0, %v1992_v20  ;;  %v1304_v47 = vmul.f32 %v1992_v20, %v2496_v29 }
 0xf2c   :  { %v1289_v22 = vpop.permute.xlu0 %1288 }
 0xf2d   :  { %v1291_v23 = vmul.f32 %v1992_v20, %v1289_v22 }
 0xf2f   :  { %1293 = vrot.lane.b32.xlu0 %v1291_v23, %s2030_s0 }
 0xf60   :  { %v1219_v24 = vpop.permute.xlu1 %1218 }
 0xf61   :  { %v1221_v25 = vadd.f32 %v1219_v24, %v1156_v12 }
 0xf63   :  { %1993 = vtanh.f32 %v1221_v25 }
 0xf6d   :  { %v1994_v2 = vpop.eup %1993 }
 0xf6e   :  { %1225 = vrot.lane.b32.xlu1 %v1994_v2, %s2032_s1 }
 0xfa1   :  { %v1294_v44 = vpop.permute.xlu0 %1293 }
 0xfa2   :  { %v1296_v6 = vadd.f32 %v1294_v44, %v1157_v5 }
 0xfa4   :  { %1995 = vtanh.f32 %v1296_v6 }
 0xfae   :  { %v1996_v28 = vpop.eup %1995 }
 0xfaf   :  { %1300 = vrot.lane.b32.xlu0 %v1996_v28, %s2032_s1 }
 0xfe0   :  { %v1226_v8 = vpop.permute.xlu1 %1225 }
 0xfe1   :  { %v1228_v38 = vmul.f32 %v1226_v8, %v1223_v50 }
 0xfe3   :  { %v2550_v33 = vadd.f32 %v1229_v4, %v1228_v38 }
 0xfe5   :  { %v2556_v35 = vsel %vm803_vm15, %v2550_v33, %v2484_v16  ;;  %v1232_v9 = vsel %vm803_vm15, %v2550_v33, 0.0 }
 0xfe6   :  { %v1320_v39 = vpack.c.bf16 %v2556_v35, %v2556_v35 }
 0xfe8   :  { %1322 = vrot.lane.b32.xlu1 %v1320_v39, %s2032_s1 }
0x1021   :  { %v1301_v42 = vpop.permute.xlu0 %1300 }
0x1022   :  { %v1303_v49 = vmul.f32 %v1301_v42, %v1298_v40 }
0x1024   :  { %v2562_v46 = vadd.f32 %v1304_v47, %v1303_v49 }
0x1026   :  { %v2568_v51 = vsel %vm723_vm14, %v2562_v46, %v2496_v29 }
0x1027   :  { %v1395_v16 = vpack.c.bf16 %v2568_v51, %v2568_v51 }
0x1029   :  { %1397 = vrot.lane.b32.xlu0 %v1395_v16, %s2032_s1 }
0x102d   :  { %204 = vrot.lane.b32.xlu0 %v2166_v32, %s2031_s25 }
0x105a   :  { %v1323_v57 = vpop.permute.xlu1 %1322 }
0x105b   :  { %1876 = vmatmul.mubr.msk.bf16.vlgmr.msra.gmra.mrb[32].mxu0 %vm89_vm1, %v1323_v57 }
0x105c   :  { %1888 = vmatpush3.bf16.msra.mxu0 %v2507_v52  ;;  %1891 = vmatprep.mubr.msk.bf16.mxu0 %vm2028_vm0, %v2027_v0  ;;  %v2590_v52 = vld [vmem:[%s2753_s5] ss:$0 sm:$0xff] }
0x105d   :  { %1889 = vmatprep.subr.bf16.mxu0 %v2027_v0 }
0x1060   :  { %1890 = vmatpush3.bf16.msra.mxu0 %v2516_v37 }
0x109b   :  { %v1398_v29 = vpop.permute.xlu0 %1397 }
0x109c   :  { %1884 = vmatmul.mubr.msk.bf16.vlgmr.msra.gmra.mrb[32].mxu1 %vm89_vm1, %v1398_v29 }
0x109d   :  { %1896 = vmatpush3.bf16.msra.mxu1 %v2524_v10  ;;  %1899 = vmatprep.mubr.msk.bf16.mxu1 %vm2028_vm0, %v2027_v0  ;;  %vm463_vm0 = vcmask 257024  }
0x109e   :  { %1897 = vmatprep.subr.bf16.mxu1 %v2027_v0  ;;  %v2599_v0 = vld [vmem:[%s2753_s5 + $0x1] ss:$0 sm:$0xff] }
0x109f   :  { %v205_v13 = vpop.permute.xlu0 %204 }
0x10a1   :  { %1898 = vmatpush3.bf16.msra.mxu1 %v2533_v31 }
0x112e   :  { %v1361_v32 = vpop.f32.mrb[32].mxu0 }
0x112f   :  { %v1362_v37 = vadd.f32 %v2590_v52, %v1361_v32  ;;  %v1877_v12 = vpop.f32.mrb[33].mxu0 }
0x1130   :  { %v1364_v60 = vpop.f32.mrb[34].mxu0 }
0x1131   :  { %1375 = vrot.lane.b32.xlu1 %v1362_v37, %s2030_s0  ;;  %v1878_v10 = vpop.f32.mrb[35].mxu0  ;;  %v1367_v48 = vadd.f32 %v1362_v37, %v1318_v53 }
0x1133   :  { %v1707_v41 = vmul.f32 -1.442695, %v1367_v48 }
0x1135   :  { %206 = vrot.lane.b32.xlu1 %v2168_v34, %s2031_s25  ;;  %1997 = vpow2.f32 %v1707_v41 }
0x113f   :  { %v1998_v1 = vpop.eup %1997 }
0x1140   :  { %v1371_v62 = vadd.f32 1.0, %v1998_v1 }
0x1142   :  { %1999 = vrcp.f32 %v1371_v62 }
0x114c   :  { %v2000_v34 = vpop.eup %1999 }
0x114d   :  { %v1385_v40 = vsub.f32 1.0, %v2000_v34  ;;  %v1391_v47 = vmul.f32 %v2000_v34, %v2556_v35 }
0x116f   :  { %v1436_v3 = vpop.f32.mrb[32].mxu1 }
0x1170   :  { %v1437_v31 = vadd.f32 %v2599_v0, %v1436_v3  ;;  %v1885_v19 = vpop.f32.mrb[33].mxu1 }
0x1171   :  { %v1439_v61 = vpop.f32.mrb[34].mxu1 }
0x1172   :  { %1450 = vrot.lane.b32.xlu0 %v1437_v31, %s2030_s0  ;;  %v1886_v63 = vpop.f32.mrb[35].mxu1 }
0x11a3   :  { %v1376_v5 = vpop.permute.xlu1 %1375 }
0x11a4   :  { %v1378_v56 = vmul.f32 %v2000_v34, %v1376_v5  ;;  %v1480_v5 = vld [vmem:[#allocation2 + $0x38] sm:$0xff] }
0x11a6   :  { %1380 = vrot.lane.b32.xlu1 %v1378_v56, %s2030_s0 }
0x11a7   :  { %v207_v14 = vpop.permute.xlu1 %206 }
0x11a8   :  { %v233_v18 = vsel %vm89_vm1, %v205_v13, %v207_v14 }
0x11a9   :  { %250 = vst.msk [vmem:[#allocation2 + $0x48] sm:$0xff] %vm175_vm2, %v233_v18 }
0x11b0   :  { %v1319_v20 = vld [vmem:[#allocation2 + $0x48] sm:$0xff] }
0x11b1   :  { %v1442_v22 = vadd.f32 %v1437_v31, %v1319_v20 }
0x11b3   :  { %v1709_v23 = vmul.f32 -1.442695, %v1442_v22 }
0x11b5   :  { %2001 = vpow2.f32 %v1709_v23 }
0x11bf   :  { %v2002_v24 = vpop.eup %2001 }
0x11c0   :  { %v1446_v25 = vadd.f32 1.0, %v2002_v24 }
0x11c2   :  { %2003 = vrcp.f32 %v1446_v25 }
0x11cc   :  { %v2004_v2 = vpop.eup %2003 }
0x11cd   :  { %v1460_v32 = vsub.f32 1.0, %v2004_v2  ;;  %v1466_v12 = vmul.f32 %v2004_v2, %v2568_v51 }
0x11e4   :  { %v1451_v44 = vpop.permute.xlu0 %1450 }
0x11e5   :  { %v1453_v6 = vmul.f32 %v2004_v2, %v1451_v44 }
0x11e7   :  { %1455 = vrot.lane.b32.xlu0 %v1453_v6, %s2030_s0 }
0x1218   :  { %v1381_v28 = vpop.permute.xlu1 %1380 }
0x1219   :  { %v1383_v50 = vadd.f32 %v1381_v28, %v1318_v53 }
0x121b   :  { %2005 = vtanh.f32 %v1383_v50 }
0x1225   :  { %v2006_v8 = vpop.eup %2005 }
0x1226   :  { %1387 = vrot.lane.b32.xlu1 %v2006_v8, %s2032_s1 }
0x1259   :  { %v1456_v4 = vpop.permute.xlu0 %1455 }
0x125a   :  { %v1458_v38 = vadd.f32 %v1456_v4, %v1319_v20  ;;  %v550_v4 = vsel %vm548_vm10, %v2289_v15, 0.0  ;;  %v725_v15 = vsel %vm723_vm14, %v2354_v36, 0.0 }
0x125c   :  { %2007 = vtanh.f32 %v1458_v38  ;;  %v1720_v38 = vpack.c.bf16 %v550_v4, %v550_v4 }
0x1266   :  { %v2008_v39 = vpop.eup %2007 }
0x1267   :  { %1462 = vrot.lane.b32.xlu0 %v2008_v39, %s2032_s1  ;;  %v901_v39 = vsel %vm899_vm8, %v2419_v7, 0.0  ;;  %v1070_v7 = vsel %vm979_vm9, %v2478_v27, 0.0 }
0x1298   :  { %v1388_v42 = vpop.permute.xlu1 %1387 }
0x1299   :  { %v1390_v49 = vmul.f32 %v1388_v42, %v1385_v40  ;;  %v1722_v40 = vpack.c.bf16 %v901_v39, %v901_v39 }
0x129b   :  { %v2610_v16 = vadd.f32 %v1391_v47, %v1390_v49 }
0x129d   :  { %v2616_v57 = vsel %vm627_vm11, %v2610_v16, %v2556_v35 }
0x129e   :  { %v1482_v29 = vpack.c.bf16 %v2616_v57, %v2616_v57 }
0x12a0   :  { %1484 = vrot.lane.b32.xlu1 %v1482_v29, %s2032_s1  ;;  %v1721_v29 = vpack.c.bf16 %v725_v15, %v725_v15 }
0x12d9   :  { %v1463_v37 = vpop.permute.xlu0 %1462 }
0x12da   :  { %v1465_v60 = vmul.f32 %v1463_v37, %v1460_v32  ;;  %v1723_v32 = vpack.c.bf16 %v1070_v7, %v1070_v7  ;;  %v1394_v37 = vsel %vm627_vm11, %v2610_v16, 0.0 }
0x12dc   :  { %v2622_v10 = vadd.f32 %v1466_v12, %v1465_v60  ;;  %v1725_v12 = vpack.c.bf16 %v1394_v37, %v1394_v37 }
0x12de   :  { %v2628_v3 = vsel %vm548_vm10, %v2622_v10, %v2568_v51 }
0x12df   :  { %v1556_v35 = vpack.c.bf16 %v2628_v3, %v2628_v3 }
0x12e1   :  { %1558 = vrot.lane.b32.xlu0 %v1556_v35, %s2032_s1 }
0x12e5   :  { %200 = vrot.lane.b32.xlu0 %v2159_v26, %s2031_s25 }
0x1312   :  { %v1485_v31 = vpop.permute.xlu1 %1484 }
0x1313   :  { %1892 = vmatmul.mubr.msk.bf16.vlgmr.msra.gmra.mrb[36].mxu0 %vm89_vm1, %v1485_v31 }
0x1353   :  { %v1559_v19 = vpop.permute.xlu0 %1558 }
0x1354   :  { %1900 = vmatmul.mubr.msk.bf16.vlgmr.msra.gmra.mrb[36].mxu1 %vm89_vm1, %v1559_v19 }
0x13e6   :  { %v1523_v61 = vpop.f32.mrb[36].mxu0 }
0x13e7   :  { %v1524_v63 = vadd.f32 %v2590_v52, %v1523_v61  ;;  %v1893_v53 = vpop.f32.mrb[37].mxu0 }
0x13e8   :  { %v1526_v51 = vpop.f32.mrb[38].mxu0 }
0x13e9   :  { %1537 = vrot.lane.b32.xlu1 %v1524_v63, %s2030_s0  ;;  %v1894_v48 = vpop.f32.mrb[39].mxu0  ;;  %v1529_v56 = vadd.f32 %v1524_v63, %v1480_v5  ;;  %v1307_v51 = vsel %vm723_vm14, %v2562_v46, 0.0 }
0x13ea   :  { %v1316_v48 = vpack.c.bf16 %v1307_v51, %v1307_v51 }
0x13eb   :  { %v1714_v13 = vmul.f32 -1.442695, %v1529_v56 }
0x13ed   :  { %202 = vrot.lane.b32.xlu1 %v2162_v30, %s2031_s25  ;;  %2009 = vpow2.f32 %v1714_v13 }
0x13f7   :  { %v2010_v52 = vpop.eup %2009 }
0x13f8   :  { %v1533_v14 = vadd.f32 1.0, %v2010_v52 }
0x13fa   :  { %2011 = vrcp.f32 %v1533_v14 }
0x1404   :  { %v2643_v18 = vpop.eup %2011 }
0x1405   :  { %v1547_v35 = vsub.f32 1.0, %v2643_v18  ;;  %v1553_v19 = vmul.f32 %v2643_v18, %v2616_v57 }
0x1427   :  { %v1597_v41 = vpop.f32.mrb[36].mxu1 }
0x1428   :  { %v1598_v26 = vadd.f32 %v2599_v0, %v1597_v41  ;;  %v1901_v1 = vpop.f32.mrb[37].mxu1  ;;  %v201_v0 = vpop.permute.xlu0 %200 }
0x1429   :  { %v1600_v62 = vpop.f32.mrb[38].mxu1 }
0x142a   :  { %1611 = vrot.lane.b32.xlu0 %v1598_v26, %s2030_s0  ;;  %v1902_v34 = vpop.f32.mrb[39].mxu1 }
0x145b   :  { %v1538_v20 = vpop.permute.xlu1 %1537 }
0x145c   :  { %v1540_v30 = vmul.f32 %v2643_v18, %v1538_v20 }
0x145e   :  { %1542 = vrot.lane.b32.xlu1 %v1540_v30, %s2030_s0 }
0x145f   :  { %v203_v22 = vpop.permute.xlu1 %202 }
0x1460   :  { %v232_v23 = vsel %vm89_vm1, %v201_v0, %v203_v22 }
0x1461   :  { %249 = vst.msk [vmem:[#allocation2 + $0x40] sm:$0xff] %vm175_vm2, %v232_v23 }
0x1468   :  { %v1481_v24 = vld [vmem:[#allocation2 + $0x40] sm:$0xff] }
0x1469   :  { %v1603_v25 = vadd.f32 %v1598_v26, %v1481_v24 }
0x146b   :  { %v1716_v2 = vmul.f32 -1.442695, %v1603_v25 }
0x146d   :  { %2013 = vpow2.f32 %v1716_v2 }
0x1477   :  { %v2014_v44 = vpop.eup %2013 }
0x1478   :  { %v1607_v6 = vadd.f32 1.0, %v2014_v44 }
0x147a   :  { %2015 = vrcp.f32 %v1607_v6 }
0x1484   :  { %v2649_v28 = vpop.eup %2015 }
0x1485   :  { %v1621_v46 = vsub.f32 1.0, %v2649_v28  ;;  %v1627_v26 = vmul.f32 %v2649_v28, %v2628_v3 }
0x149c   :  { %v1612_v50 = vpop.permute.xlu0 %1611 }
0x149d   :  { %v1614_v8 = vmul.f32 %v2649_v28, %v1612_v50 }
0x149f   :  { %1616 = vrot.lane.b32.xlu0 %v1614_v8, %s2030_s0 }
0x14a3   :  { %634 = vrot.lane.b32.xlu0 %v1720_v38, %s2032_s1 }
0x14a7   :  { %986 = vrot.lane.b32.xlu0 %v1722_v40, %s2032_s1 }
0x14d0   :  { %v1543_v42 = vpop.permute.xlu1 %1542 }
0x14d1   :  { %v1545_v47 = vadd.f32 %v1543_v42, %v1480_v5 }
0x14d3   :  { %2017 = vtanh.f32 %v1545_v47 }
0x14dd   :  { %v2018_v49 = vpop.eup %2017 }
0x14de   :  { %1549 = vrot.lane.b32.xlu1 %v2018_v49, %s2032_s1 }
0x14e2   :  { %460 = vrot.lane.b32.xlu1 %v2236_v55, %s2032_s1  ;;  %v1469_v55 = vsel %vm548_vm10, %v2622_v10, 0.0  ;;  %v1724_v10 = vpack.c.bf16 %v1232_v9, %v1232_v9 }
0x14e3   :  { %v1478_v17 = vpack.c.bf16 %v1469_v55, %v1469_v55 }
0x14e6   :  { %810 = vrot.lane.b32.xlu1 %v1721_v29, %s2032_s1 }
0x14ea   :  { %1150 = vrot.lane.b32.xlu1 %v1723_v32, %s2032_s1 }
0x14ee   :  { %1474 = vrot.lane.b32.xlu1 %v1725_v12, %s2032_s1 }
0x1511   :  { %v1617_v36 = vpop.permute.xlu0 %1616 }
0x1512   :  { %v1619_v60 = vadd.f32 %v1617_v36, %v1481_v24 }
0x1514   :  { %2019 = vtanh.f32 %v1619_v60 }
0x1515   :  { %v635_v27 = vpop.permute.xlu0 %634 }
0x1516   :  { %1676 = vst.msk [vmem:[%s2755_s6 + $0x4] sm:$0xf] %vm463_vm0, %v635_v27 }
0x1517   :  { %1712 = vst.msk [vmem:[%s2755_s6 + $0x4] sm:$0xf] %vm467_vm7, %v1478_v17 }
0x1519   :  { %v987_v16 = vpop.permute.xlu0 %986 }
0x151a   :  { %1690 = vst.msk [vmem:[%s2755_s6 + $0xc] sm:$0xf] %vm463_vm0, %v987_v16 }
0x151b   :  { %1698 = vst.msk [vmem:[%s2755_s6 + $0xc] sm:$0xf] %vm467_vm7, %v1154_v11 }
0x151e   :  { %v2020_v54 = vpop.eup %2019 }
0x151f   :  { %1623 = vrot.lane.b32.xlu0 %v2020_v54, %s2032_s1 }
0x1523   :  { %1312 = vrot.lane.b32.xlu0 %v1724_v10, %s2032_s1 }
0x1550   :  { %v1550_v31 = vpop.permute.xlu1 %1549 }
0x1551   :  { %v1552_v61 = vmul.f32 %v1550_v31, %v1547_v35 }
0x1553   :  { %v1554_v63 = vadd.f32 %v1553_v19, %v1552_v61 }
0x1554   :  { %v461_v53 = vpop.permute.xlu1 %460 }
0x1555   :  { %464 = vst.msk [vmem:[%s2755_s6] sm:$0xf] %vm463_vm0, %v461_v53  ;;  %v1555_v45 = vsel %vm454_vm6, %v1554_v63, 0.0 }
0x1556   :  { %v1726_v33 = vpack.c.bf16 %v1555_v45, %v1555_v45 }
0x1558   :  { %v811_v41 = vpop.permute.xlu1 %810  ;;  %1634 = vrot.lane.b32.xlu0 %v1726_v33, %s2032_s1 }
0x1559   :  { %1683 = vst.msk [vmem:[%s2755_s6 + $0x8] sm:$0xf] %vm463_vm0, %v811_v41 }
0x155a   :  { %1705 = vst.msk [vmem:[%s2755_s6 + $0x8] sm:$0xf] %vm467_vm7, %v1316_v48 }
0x155c   :  { %v1151_v58 = vpop.permute.xlu1 %1150 }
0x155d   :  { %1697 = vst.msk [vmem:[%s2755_s6 + $0x10] sm:$0xf] %vm463_vm0, %v1151_v58 }
0x1560   :  { %v1475_v59 = vpop.permute.xlu1 %1474 }
0x1561   :  { %1711 = vst.msk [vmem:[%s2755_s6 + $0x18] sm:$0xf] %vm463_vm0, %v1475_v59 }
0x1591   :  { %v1624_v57 = vpop.permute.xlu0 %1623 }
0x1592   :  { %v1626_v1 = vmul.f32 %v1624_v57, %v1621_v46 }
0x1594   :  { %v1628_v62 = vadd.f32 %v1627_v26, %v1626_v1 }
0x1595   :  { %v1313_v34 = vpop.permute.xlu0 %1312 }
0x1596   :  { %v1629_v5 = vsel %vm364_vm5, %v1628_v62, 0.0  ;;  %1704 = vst.msk [vmem:[%s2755_s6 + $0x14] sm:$0xf] %vm463_vm0, %v1313_v34 }
0x1597   :  { %v1638_v56 = vpack.c.bf16 %v1629_v5, %v1629_v5 }
0x1599   :  { %1639 = vst.msk [vmem:[%s2755_s6] sm:$0xf] %vm467_vm7, %v1638_v56 }
0x15ca   :  { %v1635_v13 = vpop.permute.xlu0 %1634 }
0x15cb   :  { %1718 = vst.msk [vmem:[%s2755_s6 + $0x1c] sm:$0xf] %vm463_vm0, %v1635_v13 }

</bundles_post_ra>
